<compile_context>
chip_gen: v5e
topology: v5e:2x2
jax: 0.10.0
libtpu: 0.0.40
codegen_flags: <defaults>
</compile_context>

<pallas_src>
import functools

import jax
import jax.numpy as jnp
from jax.experimental import pallas as pl
from jax.experimental.pallas import tpu as pltpu

# ----------------------------- configuration -----------------------------
FRAME = 320          # raw-sample downsampling factor of the encoder
K_PAD = 384          # FRAME zero-padded to a multiple of 128 lanes
ENC_DIM = 128        # encoder_dim
PRED_DIM = 128       # predictor_dim (== embedding dim == predictor output dim)
HID_DIM = 128        # predictor_hidden_dim (LSTM hidden size)
JOINT_DIM = 128      # joint_dim
VOCAB = 64           # vocab_size
VOCAB_PAD = 128      # padded so joint output stores are lane-dense
BLANK_ID = 0

# Whole-array, VMEM-resident spec (weights / small activations).
VMEM_RESIDENT = pl.BlockSpec(memory_space=pltpu.MemorySpace.VMEM)


def _round_up(x, m):
    return ((x + m - 1) // m) * m


# ------------------------------ encoder kernel ----------------------------
def _encoder_kernel(frames_ref, wf_ref, bf_ref, we_ref, be_ref,
                    enc_h_ref, enc_p_ref):
    # frames_ref: (ROW_TILE, K_PAD)   wf: (K_PAD, ENC_DIM)   we: (ENC_DIM, JOINT_DIM)
    enc_h = jnp.maximum(
        jnp.dot(frames_ref[...], wf_ref[...], preferred_element_type=jnp.float32)
        + bf_ref[...],
        0.0,
    )                                                      # (ROW_TILE, ENC_DIM)
    enc_h_ref[...] = enc_h
    # Fused enc -> joint projection (saves an HBM round-trip of enc_h).
    enc_p_ref[...] = (
        jnp.dot(enc_h, we_ref[...], preferred_element_type=jnp.float32)
        + be_ref[...]
    )                                                      # (ROW_TILE, JOINT_DIM)


def encoder_forward(input_values, params):
    B, S = input_values.shape
    T = S // FRAME
    BT = B * T
    frames = input_values[:, : T * FRAME].reshape(BT, FRAME)

    # Row tiling: big enough to hide DMA, small enough for v7x's 64 MiB VMEM.
    row_tile = 256 if BT >= 256 else _round_up(BT, 8)
    BT_pad = _round_up(BT, row_tile)

    frames = jnp.pad(frames, ((0, BT_pad - BT), (0, K_PAD - FRAME)))
    w_frame = jnp.pad(params["w_frame"], ((0, K_PAD - FRAME), (0, 0)))

    enc_h, enc_p = pl.pallas_call(
        _encoder_kernel,
        out_shape=(jax.ShapeDtypeStruct((BT_pad, ENC_DIM), jnp.float32),
                   jax.ShapeDtypeStruct((BT_pad, JOINT_DIM), jnp.float32)),
        grid=(BT_pad // row_tile,),
        in_specs=[
            pl.BlockSpec((row_tile, K_PAD), lambda r: (r, 0)),
            VMEM_RESIDENT, VMEM_RESIDENT, VMEM_RESIDENT, VMEM_RESIDENT,
        ],
        out_specs=(pl.BlockSpec((row_tile, ENC_DIM), lambda r: (r, 0)),
                   pl.BlockSpec((row_tile, JOINT_DIM), lambda r: (r, 0))),
        compiler_params=pltpu.CompilerParams(
            dimension_semantics=("parallel",)),
    )(frames, w_frame, params["b_frame"],
      params["w_enc_joint"], params["b_enc_joint"])

    enc_h = enc_h[:BT].reshape(B, T, ENC_DIM)
    enc_p = enc_p[:BT].reshape(B, T, JOINT_DIM)
    return enc_h, enc_p


# ----------------------------- predictor kernel ---------------------------
def _predictor_kernel(emb_ref, w_ih_ref, w_hh_ref, b_lstm_ref,
                      w_out_ref, b_out_ref, w_pj_ref, b_pj_ref,
                      out_ref, h_all_ref):
    # emb_ref: (U, B, PRED_DIM) time-major.  out_ref: (U, B, JOINT_DIM).
    U, B, D = emb_ref.shape
    H = HID_DIM

    # Hoisted input projection: ONE big MXU matmul for all U steps.
    emb2d = emb_ref[...].reshape(U * B, D)
    gates_x = (
        jnp.dot(emb2d, w_ih_ref[...], preferred_element_type=jnp.float32)
        + b_lstm_ref[...]
    )                                                      # (U*B, 4H)

    h = jnp.zeros((B, H), jnp.float32)
    c = jnp.zeros((B, H), jnp.float32)

    # Fully unrolled recurrence (U is small & static) -> LLO can overlap the
    # h @ w_hh MXU push with the previous step's sigmoid/tanh VPU/EUP work.
    for u in range(U):
        gates = (
            gates_x[u * B:(u + 1) * B, :]
            + jnp.dot(h, w_hh_ref[...], preferred_element_type=jnp.float32)
        )                                                  # (B, 4H)
        i_g = jax.nn.sigmoid(gates[:, 0 * H:1 * H])
        f_g = jax.nn.sigmoid(gates[:, 1 * H:2 * H])
        g_g = jnp.tanh(gates[:, 2 * H:3 * H])
        o_g = jax.nn.sigmoid(gates[:, 3 * H:4 * H])
        c = f_g * c + i_g * g_g
        h = o_g * jnp.tanh(c)
        h_all_ref[u] = h

    # Hoisted output + pred->joint projections as two big matmuls.
    h2d = h_all_ref[...].reshape(U * B, H)
    pred_h = (
        jnp.dot(h2d, w_out_ref[...], preferred_element_type=jnp.float32)
        + b_out_ref[...]
    )                                                      # (U*B, PRED_DIM)
    pred_p = (
        jnp.dot(pred_h, w_pj_ref[...], preferred_element_type=jnp.float32)
        + b_pj_ref[...]
    )                                                      # (U*B, JOINT_DIM)
    out_ref[...] = pred_p.reshape(U, B, JOINT_DIM)


def predictor_forward(predictor_labels, params):
    # Embedding gather stays as JAX glue (no clean Pallas gather here).
    emb = params["emb_table"][predictor_labels]            # (B, U, PRED_DIM)
    B, U, _ = emb.shape
    emb_tm = jnp.swapaxes(emb, 0, 1)                       # (U, B, PRED_DIM)
    pred_p_tm = pl.pallas_call(
        _predictor_kernel,
        out_shape=jax.ShapeDtypeStruct((U, B, JOINT_DIM), jnp.float32),
        in_specs=[VMEM_RESIDENT] * 8,
        out_specs=VMEM_RESIDENT,
        scratch_shapes=[pltpu.VMEM((U, B, HID_DIM), jnp.float32)],
    )(emb_tm, params["w_ih"], params["w_hh"], params["b_lstm"],
      params["w_pred_out"], params["b_pred_out"],
      params["w_pred_joint"], params["b_pred_joint"])
    return jnp.swapaxes(pred_p_tm, 0, 1)                   # (B, U, JOINT_DIM)


# ------------------------------- joint kernel ------------------------------
def _joint_kernel(enc_p_ref, pred_p_ref, wo_ref, bo_ref, out_ref):
    # enc_p_ref: (1, TT, J)   pred_p_ref: (1, U, J)   out_ref: (1, TT, U, VOCAB_PAD)
    enc_p = enc_p_ref[0]                                   # (TT, J)
    pred_p = pred_p_ref[0]                                 # (U, J)
    TT = enc_p.shape[0]
    U = pred_p.shape[0]
    # f32 tanh path: valid on v5e (no bf16 VPU/EUP); bf16 would only help v6e/v7x.
    joint = jnp.tanh(enc_p[:, None, :] + pred_p[None, :, :])   # (TT, U, J)
    # Single large 2-D MXU matmul; output last dim = 128 -> lane-dense stores.
    logits = (
        jnp.dot(joint.reshape(TT * U, JOINT_DIM), wo_ref[...],
                preferred_element_type=jnp.float32)
        + bo_ref[...]
    )                                                      # (TT*U, VOCAB_PAD)
    out_ref[0] = logits.reshape(TT, U, VOCAB_PAD)


def joint_forward(enc_p, pred_p, params):
    B, T, _ = enc_p.shape
    U = pred_p.shape[1]

    TT = T if T <= 128 else 128
    T_pad = _round_up(T, TT)
    if T_pad != T:
        enc_p = jnp.pad(enc_p, ((0, 0), (0, T_pad - T), (0, 0)))

    # Pad vocab to 128 so every store is unmasked; slice back in the wrapper.
    wo = jnp.pad(params["w_joint_out"], ((0, 0), (0, VOCAB_PAD - VOCAB)))
    bo = jnp.pad(params["b_joint_out"], ((0, 0), (0, VOCAB_PAD - VOCAB)))

    out = pl.pallas_call(
        _joint_kernel,
        out_shape=jax.ShapeDtypeStruct((B, T_pad, U, VOCAB_PAD), jnp.float32),
        grid=(B, T_pad // TT),
        in_specs=[
            pl.BlockSpec((1, TT, JOINT_DIM), lambda b, t: (b, t, 0)),
            pl.BlockSpec((1, U, JOINT_DIM), lambda b, t: (b, 0, 0)),
            VMEM_RESIDENT, VMEM_RESIDENT,
        ],
        out_specs=pl.BlockSpec((1, TT, U, VOCAB_PAD),
                               lambda b, t: (b, t, 0, 0)),
        compiler_params=pltpu.CompilerParams(
            dimension_semantics=("parallel", "parallel")),
    )(enc_p, pred_p, wo, bo)
    return out[:, :T, :, :VOCAB]


# -------------------------- full transducer forward ------------------------
def xlsr_transducer_forward(params, input_values, attention_mask=None,
                            labels=None, label_lengths=None):
    enc_h, enc_p = encoder_forward(input_values, params)
    enc_h = jnp.nan_to_num(enc_h, nan=0.0)    # matches PyTorch NaN guard (glue)

    if labels is None or label_lengths is None:
        return {"encoder_outputs": enc_h}

    U = labels.shape[1]
    _fixed_lens = jnp.clip(label_lengths, 1, U)  # clamped as in PyTorch; unused
    blank_col = jnp.full((labels.shape[0], 1), BLANK_ID, dtype=labels.dtype)
    predictor_labels = jnp.concatenate([blank_col, labels[:, :-1]], axis=1)

    pred_p = predictor_forward(predictor_labels, params)

    logits = joint_forward(enc_p, pred_p, params)
    logits = jnp.nan_to_num(logits, nan=0.0)
    return {"logits": logits, "encoder_outputs": enc_h}


# ------------------------------ pure-JAX reference --------------------------
def reference_forward(params, input_values, labels, label_lengths):
    B, S = input_values.shape
    T = S // FRAME
    frames = input_values[:, : T * FRAME].reshape(B, T, FRAME)
    enc_h = jnp.maximum(frames @ params["w_frame"] + params["b_frame"], 0.0)

    U = labels.shape[1]
    blank_col = jnp.full((B, 1), BLANK_ID, dtype=labels.dtype)
    predictor_labels = jnp.concatenate([blank_col, labels[:, :-1]], axis=1)
    emb = params["emb_table"][predictor_labels]            # (B, U, PRED_DIM)

    H = HID_DIM

    def step(carry, x):
        h, c = carry
        gates = x @ params["w_ih"] + h @ params["w_hh"] + params["b_lstm"]
        i = jax.nn.sigmoid(gates[:, :H])
        f = jax.nn.sigmoid(gates[:, H:2 * H])
        g = jnp.tanh(gates[:, 2 * H:3 * H])
        o = jax.nn.sigmoid(gates[:, 3 * H:])
        c = f * c + i * g
        h = o * jnp.tanh(c)
        return (h, c), h @ params["w_pred_out"] + params["b_pred_out"]

    init = (jnp.zeros((B, H), jnp.float32), jnp.zeros((B, H), jnp.float32))
    _, ys = jax.lax.scan(step, init, jnp.swapaxes(emb, 0, 1))
    pred_h = jnp.swapaxes(ys, 0, 1)                        # (B, U, PRED_DIM)

    enc_p = enc_h @ params["w_enc_joint"] + params["b_enc_joint"]      # (B,T,J)
    pred_p = pred_h @ params["w_pred_joint"] + params["b_pred_joint"]  # (B,U,J)
    joint = jnp.tanh(enc_p[:, :, None, :] + pred_p[:, None, :, :])
    logits = joint @ params["w_joint_out"] + params["b_joint_out"]
    return logits, enc_h


# --------------------------------- main -------------------------------------
def make_params(key):
    ks = jax.random.split(key, 12)
    n = lambda k, shape, scale: (scale * jax.random.normal(k, shape)).astype(jnp.float32)
    return {
        "w_frame":      n(ks[0], (FRAME, ENC_DIM), 0.05),
        "b_frame":      n(ks[1], (1, ENC_DIM), 0.05),
        "emb_table":    n(ks[2], (VOCAB, PRED_DIM), 0.1),
        "w_ih":         n(ks[3], (PRED_DIM, 4 * HID_DIM), 0.05),
        "w_hh":         n(ks[4], (HID_DIM, 4 * HID_DIM), 0.05),
        "b_lstm":       n(ks[5], (1, 4 * HID_DIM), 0.05),
        "w_pred_out":   n(ks[6], (HID_DIM, PRED_DIM), 0.05),
        "b_pred_out":   n(ks[7], (1, PRED_DIM), 0.05),
        "w_enc_joint":  n(ks[8], (ENC_DIM, JOINT_DIM), 0.05),
        "b_enc_joint":  n(ks[9], (1, JOINT_DIM), 0.05),
        "w_pred_joint": n(ks[10], (PRED_DIM, JOINT_DIM), 0.05),
        "b_pred_joint": n(ks[11], (1, JOINT_DIM), 0.05),
        "w_joint_out":  n(jax.random.fold_in(key, 100), (JOINT_DIM, VOCAB), 0.05),
        "b_joint_out":  n(jax.random.fold_in(key, 101), (1, VOCAB), 0.05),
    }


if __name__ == "__main__":
    key = jax.random.PRNGKey(0)
    k_in, k_lab, k_par = jax.random.split(key, 3)

    B, S, U = 2, 2560, 8          # T = S // 320 = 8 encoder frames
    input_values = jax.random.normal(k_in, (B, S), dtype=jnp.float32)
    labels = jax.random.randint(k_lab, (B, U), 1, VOCAB, dtype=jnp.int32)
    label_lengths = jnp.array([U, U - 2], dtype=jnp.int32)
    params = make_params(k_par)

    fwd = jax.jit(functools.partial(xlsr_transducer_forward, params))
    out = fwd(input_values, None, labels, label_lengths)
    logits = jax.block_until_ready(out["logits"])
    enc_out = jax.block_until_ready(out["encoder_outputs"])

    ref_logits, ref_enc = reference_forward(params, input_values, labels,
                                            label_lengths)
    assert logits.shape == (B, S // FRAME, U, VOCAB), logits.shape
    assert enc_out.shape == (B, S // FRAME, ENC_DIM), enc_out.shape
    assert jnp.allclose(enc_out, ref_enc, atol=1e-4, rtol=1e-4)
    assert jnp.allclose(logits, ref_logits, atol=1e-3, rtol=1e-3)

    print("KERNEL_OK")
</pallas_src>

<mosaic_0001>
module attributes {stable_mosaic.version = 11 : i64} {
  func.func @_predictor_kernel(%arg0: memref<8x2x128xf32, #tpu.memory_space<vmem>>, %arg1: memref<128x512xf32, #tpu.memory_space<vmem>>, %arg2: memref<128x512xf32, #tpu.memory_space<vmem>>, %arg3: memref<1x512xf32, #tpu.memory_space<vmem>>, %arg4: memref<128x128xf32, #tpu.memory_space<vmem>>, %arg5: memref<1x128xf32, #tpu.memory_space<vmem>>, %arg6: memref<128x128xf32, #tpu.memory_space<vmem>>, %arg7: memref<1x128xf32, #tpu.memory_space<vmem>>, %arg8: memref<8x2x128xf32, #tpu.memory_space<vmem>>, %arg9: memref<8x2x128xf32, #tpu.memory_space<vmem>>) attributes {dimension_semantics = [], scalar_prefetch = 0 : i64, scratch_operands = 1 : i64, tpu.core_type = #tpu.core_type<tc>} {
    %c0 = arith.constant 0 : index
    %c0_0 = arith.constant 0 : index
    %c0_1 = arith.constant 0 : index
    %0 = vector.load %arg0[%c0, %c0_0, %c0_1] : memref<8x2x128xf32, #tpu.memory_space<vmem>>, vector<8x2x128xf32>
    %1 = vector.shape_cast %0 : vector<8x2x128xf32> to vector<16x128xf32>
    %c0_2 = arith.constant 0 : index
    %c0_3 = arith.constant 0 : index
    %2 = vector.load %arg1[%c0_2, %c0_3] : memref<128x512xf32, #tpu.memory_space<vmem>>, vector<128x512xf32>
    %cst = arith.constant dense<0.000000e+00> : vector<16x512xf32>
    %3 = tpu.matmul %1, %2, %cst {dimension_numbers = #tpu.dot_dimension_numbers<[1], [0], [0], [1], [0, 0, 1, 1], [], []>} : vector<16x128xf32>, vector<128x512xf32>, vector<16x512xf32> -> vector<16x512xf32>
    %c0_4 = arith.constant 0 : index
    %c0_5 = arith.constant 0 : index
    %4 = vector.load %arg3[%c0_4, %c0_5] : memref<1x512xf32, #tpu.memory_space<vmem>>, vector<1x512xf32>
    %5 = vector.broadcast %4 : vector<1x512xf32> to vector<16x512xf32>
    %6 = arith.addf %3, %5 : vector<16x512xf32>
    %cst_6 = arith.constant 0.000000e+00 : f32
    %7 = vector.broadcast %cst_6 : f32 to vector<2x128xf32>
    %cst_7 = arith.constant 0.000000e+00 : f32
    %8 = vector.broadcast %cst_7 : f32 to vector<2x128xf32>
    %9 = vector.extract_strided_slice %6 {offsets = [0, 0], sizes = [2, 512], strides = [1, 1]} : vector<16x512xf32> to vector<2x512xf32>
    %c0_8 = arith.constant 0 : index
    %c0_9 = arith.constant 0 : index
    %10 = vector.load %arg2[%c0_8, %c0_9] : memref<128x512xf32, #tpu.memory_space<vmem>>, vector<128x512xf32>
    %cst_10 = arith.constant dense<0.000000e+00> : vector<2x512xf32>
    %11 = tpu.matmul %7, %10, %cst_10 {dimension_numbers = #tpu.dot_dimension_numbers<[1], [0], [0], [1], [0, 0, 1, 1], [], []>} : vector<2x128xf32>, vector<128x512xf32>, vector<2x512xf32> -> vector<2x512xf32>
    %12 = arith.addf %9, %11 : vector<2x512xf32>
    %13 = vector.extract_strided_slice %12 {offsets = [0, 0], sizes = [2, 128], strides = [1, 1]} : vector<2x512xf32> to vector<2x128xf32>
    %14 = arith.negf %13 : vector<2x128xf32>
    %15 = math.exp %14 : vector<2x128xf32>
    %cst_11 = arith.constant 1.000000e+00 : f32
    %16 = vector.broadcast %cst_11 : f32 to vector<2x128xf32>
    %17 = arith.addf %16, %15 : vector<2x128xf32>
    %18 = arith.divf %16, %17 : vector<2x128xf32>
    %19 = vector.extract_strided_slice %12 {offsets = [0, 128], sizes = [2, 128], strides = [1, 1]} : vector<2x512xf32> to vector<2x128xf32>
    %20 = arith.negf %19 : vector<2x128xf32>
    %21 = math.exp %20 : vector<2x128xf32>
    %cst_12 = arith.constant 1.000000e+00 : f32
    %22 = vector.broadcast %cst_12 : f32 to vector<2x128xf32>
    %23 = arith.addf %22, %21 : vector<2x128xf32>
    %24 = arith.divf %22, %23 : vector<2x128xf32>
    %25 = vector.extract_strided_slice %12 {offsets = [0, 256], sizes = [2, 128], strides = [1, 1]} : vector<2x512xf32> to vector<2x128xf32>
    %26 = math.tanh %25 : vector<2x128xf32>
    %27 = vector.extract_strided_slice %12 {offsets = [0, 384], sizes = [2, 128], strides = [1, 1]} : vector<2x512xf32> to vector<2x128xf32>
    %28 = arith.negf %27 : vector<2x128xf32>
    %29 = math.exp %28 : vector<2x128xf32>
    %cst_13 = arith.constant 1.000000e+00 : f32
    %30 = vector.broadcast %cst_13 : f32 to vector<2x128xf32>
    %31 = arith.addf %30, %29 : vector<2x128xf32>
    %32 = arith.divf %30, %31 : vector<2x128xf32>
    %33 = arith.mulf %24, %8 : vector<2x128xf32>
    %34 = arith.mulf %18, %26 : vector<2x128xf32>
    %35 = arith.addf %33, %34 : vector<2x128xf32>
    %36 = math.tanh %35 : vector<2x128xf32>
    %37 = arith.mulf %32, %36 : vector<2x128xf32>
    %c0_14 = arith.constant 0 : index
    %c0_15 = arith.constant 0 : index
    %c0_16 = arith.constant 0 : index
    %38 = vector.load %arg9[%c0_14, %c0_15, %c0_16] : memref<8x2x128xf32, #tpu.memory_space<vmem>>, vector<1x2x128xf32>
    %39 = vector.shape_cast %38 : vector<1x2x128xf32> to vector<2x128xf32>
    %40 = vector.shape_cast %37 : vector<2x128xf32> to vector<1x2x128xf32>
    tpu.vector_store %arg9[%c0_14, %c0_15, %c0_16], %40 {strides = array<i32>} : memref<8x2x128xf32, #tpu.memory_space<vmem>>, vector<1x2x128xf32>,
    %41 = vector.extract_strided_slice %6 {offsets = [2, 0], sizes = [2, 512], strides = [1, 1]} : vector<16x512xf32> to vector<2x512xf32>
    %c0_17 = arith.constant 0 : index
    %c0_18 = arith.constant 0 : index
    %42 = vector.load %arg2[%c0_17, %c0_18] : memref<128x512xf32, #tpu.memory_space<vmem>>, vector<128x512xf32>
    %cst_19 = arith.constant dense<0.000000e+00> : vector<2x512xf32>
    %43 = tpu.matmul %37, %42, %cst_19 {dimension_numbers = #tpu.dot_dimension_numbers<[1], [0], [0], [1], [0, 0, 1, 1], [], []>} : vector<2x128xf32>, vector<128x512xf32>, vector<2x512xf32> -> vector<2x512xf32>
    %44 = arith.addf %41, %43 : vector<2x512xf32>
    %45 = vector.extract_strided_slice %44 {offsets = [0, 0], sizes = [2, 128], strides = [1, 1]} : vector<2x512xf32> to vector<2x128xf32>
    %46 = arith.negf %45 : vector<2x128xf32>
    %47 = math.exp %46 : vector<2x128xf32>
    %cst_20 = arith.constant 1.000000e+00 : f32
    %48 = vector.broadcast %cst_20 : f32 to vector<2x128xf32>
    %49 = arith.addf %48, %47 : vector<2x128xf32>
    %50 = arith.divf %48, %49 : vector<2x128xf32>
    %51 = vector.extract_strided_slice %44 {offsets = [0, 128], sizes = [2, 128], strides = [1, 1]} : vector<2x512xf32> to vector<2x128xf32>
    %52 = arith.negf %51 : vector<2x128xf32>
    %53 = math.exp %52 : vector<2x128xf32>
    %cst_21 = arith.constant 1.000000e+00 : f32
    %54 = vector.broadcast %cst_21 : f32 to vector<2x128xf32>
    %55 = arith.addf %54, %53 : vector<2x128xf32>
    %56 = arith.divf %54, %55 : vector<2x128xf32>
    %57 = vector.extract_strided_slice %44 {offsets = [0, 256], sizes = [2, 128], strides = [1, 1]} : vector<2x512xf32> to vector<2x128xf32>
    %58 = math.tanh %57 : vector<2x128xf32>
    %59 = vector.extract_strided_slice %44 {offsets = [0, 384], sizes = [2, 128], strides = [1, 1]} : vector<2x512xf32> to vector<2x128xf32>
    %60 = arith.negf %59 : vector<2x128xf32>
    %61 = math.exp %60 : vector<2x128xf32>
    %cst_22 = arith.constant 1.000000e+00 : f32
    %62 = vector.broadcast %cst_22 : f32 to vector<2x128xf32>
    %63 = arith.addf %62, %61 : vector<2x128xf32>
    %64 = arith.divf %62, %63 : vector<2x128xf32>
    %65 = arith.mulf %56, %35 : vector<2x128xf32>
    %66 = arith.mulf %50, %58 : vector<2x128xf32>
    %67 = arith.addf %65, %66 : vector<2x128xf32>
    %68 = math.tanh %67 : vector<2x128xf32>
    %69 = arith.mulf %64, %68 : vector<2x128xf32>
    %c1 = arith.constant 1 : index
    %c0_23 = arith.constant 0 : index
    %c0_24 = arith.constant 0 : index
    %70 = vector.load %arg9[%c1, %c0_23, %c0_24] : memref<8x2x128xf32, #tpu.memory_space<vmem>>, vector<1x2x128xf32>
    %71 = vector.shape_cast %70 : vector<1x2x128xf32> to vector<2x128xf32>
    %72 = vector.shape_cast %69 : vector<2x128xf32> to vector<1x2x128xf32>
    tpu.vector_store %arg9[%c1, %c0_23, %c0_24], %72 {strides = array<i32>} : memref<8x2x128xf32, #tpu.memory_space<vmem>>, vector<1x2x128xf32>,
    %73 = vector.extract_strided_slice %6 {offsets = [4, 0], sizes = [2, 512], strides = [1, 1]} : vector<16x512xf32> to vector<2x512xf32>
    %c0_25 = arith.constant 0 : index
    %c0_26 = arith.constant 0 : index
    %74 = vector.load %arg2[%c0_25, %c0_26] : memref<128x512xf32, #tpu.memory_space<vmem>>, vector<128x512xf32>
    %cst_27 = arith.constant dense<0.000000e+00> : vector<2x512xf32>
    %75 = tpu.matmul %69, %74, %cst_27 {dimension_numbers = #tpu.dot_dimension_numbers<[1], [0], [0], [1], [0, 0, 1, 1], [], []>} : vector<2x128xf32>, vector<128x512xf32>, vector<2x512xf32> -> vector<2x512xf32>
    %76 = arith.addf %73, %75 : vector<2x512xf32>
    %77 = vector.extract_strided_slice %76 {offsets = [0, 0], sizes = [2, 128], strides = [1, 1]} : vector<2x512xf32> to vector<2x128xf32>
    %78 = arith.negf %77 : vector<2x128xf32>
    %79 = math.exp %78 : vector<2x128xf32>
    %cst_28 = arith.constant 1.000000e+00 : f32
    %80 = vector.broadcast %cst_28 : f32 to vector<2x128xf32>
    %81 = arith.addf %80, %79 : vector<2x128xf32>
    %82 = arith.divf %80, %81 : vector<2x128xf32>
    %83 = vector.extract_strided_slice %76 {offsets = [0, 128], sizes = [2, 128], strides = [1, 1]} : vector<2x512xf32> to vector<2x128xf32>
    %84 = arith.negf %83 : vector<2x128xf32>
    %85 = math.exp %84 : vector<2x128xf32>
    %cst_29 = arith.constant 1.000000e+00 : f32
    %86 = vector.broadcast %cst_29 : f32 to vector<2x128xf32>
    %87 = arith.addf %86, %85 : vector<2x128xf32>
    %88 = arith.divf %86, %87 : vector<2x128xf32>
    %89 = vector.extract_strided_slice %76 {offsets = [0, 256], sizes = [2, 128], strides = [1, 1]} : vector<2x512xf32> to vector<2x128xf32>
    %90 = math.tanh %89 : vector<2x128xf32>
    %91 = vector.extract_strided_slice %76 {offsets = [0, 384], sizes = [2, 128], strides = [1, 1]} : vector<2x512xf32> to vector<2x128xf32>
    %92 = arith.negf %91 : vector<2x128xf32>
    %93 = math.exp %92 : vector<2x128xf32>
    %cst_30 = arith.constant 1.000000e+00 : f32
    %94 = vector.broadcast %cst_30 : f32 to vector<2x128xf32>
    %95 = arith.addf %94, %93 : vector<2x128xf32>
    %96 = arith.divf %94, %95 : vector<2x128xf32>
    %97 = arith.mulf %88, %67 : vector<2x128xf32>
    %98 = arith.mulf %82, %90 : vector<2x128xf32>
    %99 = arith.addf %97, %98 : vector<2x128xf32>
    %100 = math.tanh %99 : vector<2x128xf32>
    %101 = arith.mulf %96, %100 : vector<2x128xf32>
    %c2 = arith.constant 2 : index
    %c0_31 = arith.constant 0 : index
    %c0_32 = arith.constant 0 : index
    %102 = vector.load %arg9[%c2, %c0_31, %c0_32] : memref<8x2x128xf32, #tpu.memory_space<vmem>>, vector<1x2x128xf32>
    %103 = vector.shape_cast %102 : vector<1x2x128xf32> to vector<2x128xf32>
    %104 = vector.shape_cast %101 : vector<2x128xf32> to vector<1x2x128xf32>
    tpu.vector_store %arg9[%c2, %c0_31, %c0_32], %104 {strides = array<i32>} : memref<8x2x128xf32, #tpu.memory_space<vmem>>, vector<1x2x128xf32>,
    %105 = vector.extract_strided_slice %6 {offsets = [6, 0], sizes = [2, 512], strides = [1, 1]} : vector<16x512xf32> to vector<2x512xf32>
    %c0_33 = arith.constant 0 : index
    %c0_34 = arith.constant 0 : index
    %106 = vector.load %arg2[%c0_33, %c0_34] : memref<128x512xf32, #tpu.memory_space<vmem>>, vector<128x512xf32>
    %cst_35 = arith.constant dense<0.000000e+00> : vector<2x512xf32>
    %107 = tpu.matmul %101, %106, %cst_35 {dimension_numbers = #tpu.dot_dimension_numbers<[1], [0], [0], [1], [0, 0, 1, 1], [], []>} : vector<2x128xf32>, vector<128x512xf32>, vector<2x512xf32> -> vector<2x512xf32>
    %108 = arith.addf %105, %107 : vector<2x512xf32>
    %109 = vector.extract_strided_slice %108 {offsets = [0, 0], sizes = [2, 128], strides = [1, 1]} : vector<2x512xf32> to vector<2x128xf32>
    %110 = arith.negf %109 : vector<2x128xf32>
    %111 = math.exp %110 : vector<2x128xf32>
    %cst_36 = arith.constant 1.000000e+00 : f32
    %112 = vector.broadcast %cst_36 : f32 to vector<2x128xf32>
    %113 = arith.addf %112, %111 : vector<2x128xf32>
    %114 = arith.divf %112, %113 : vector<2x128xf32>
    %115 = vector.extract_strided_slice %108 {offsets = [0, 128], sizes = [2, 128], strides = [1, 1]} : vector<2x512xf32> to vector<2x128xf32>
    %116 = arith.negf %115 : vector<2x128xf32>
    %117 = math.exp %116 : vector<2x128xf32>
    %cst_37 = arith.constant 1.000000e+00 : f32
    %118 = vector.broadcast %cst_37 : f32 to vector<2x128xf32>
    %119 = arith.addf %118, %117 : vector<2x128xf32>
    %120 = arith.divf %118, %119 : vector<2x128xf32>
    %121 = vector.extract_strided_slice %108 {offsets = [0, 256], sizes = [2, 128], strides = [1, 1]} : vector<2x512xf32> to vector<2x128xf32>
    %122 = math.tanh %121 : vector<2x128xf32>
    %123 = vector.extract_strided_slice %108 {offsets = [0, 384], sizes = [2, 128], strides = [1, 1]} : vector<2x512xf32> to vector<2x128xf32>
    %124 = arith.negf %123 : vector<2x128xf32>
    %125 = math.exp %124 : vector<2x128xf32>
    %cst_38 = arith.constant 1.000000e+00 : f32
    %126 = vector.broadcast %cst_38 : f32 to vector<2x128xf32>
    %127 = arith.addf %126, %125 : vector<2x128xf32>
    %128 = arith.divf %126, %127 : vector<2x128xf32>
    %129 = arith.mulf %120, %99 : vector<2x128xf32>
    %130 = arith.mulf %114, %122 : vector<2x128xf32>
    %131 = arith.addf %129, %130 : vector<2x128xf32>
    %132 = math.tanh %131 : vector<2x128xf32>
    %133 = arith.mulf %128, %132 : vector<2x128xf32>
    %c3 = arith.constant 3 : index
    %c0_39 = arith.constant 0 : index
    %c0_40 = arith.constant 0 : index
    %134 = vector.load %arg9[%c3, %c0_39, %c0_40] : memref<8x2x128xf32, #tpu.memory_space<vmem>>, vector<1x2x128xf32>
    %135 = vector.shape_cast %134 : vector<1x2x128xf32> to vector<2x128xf32>
    %136 = vector.shape_cast %133 : vector<2x128xf32> to vector<1x2x128xf32>
    tpu.vector_store %arg9[%c3, %c0_39, %c0_40], %136 {strides = array<i32>} : memref<8x2x128xf32, #tpu.memory_space<vmem>>, vector<1x2x128xf32>,
    %137 = vector.extract_strided_slice %6 {offsets = [8, 0], sizes = [2, 512], strides = [1, 1]} : vector<16x512xf32> to vector<2x512xf32>
    %c0_41 = arith.constant 0 : index
    %c0_42 = arith.constant 0 : index
    %138 = vector.load %arg2[%c0_41, %c0_42] : memref<128x512xf32, #tpu.memory_space<vmem>>, vector<128x512xf32>
    %cst_43 = arith.constant dense<0.000000e+00> : vector<2x512xf32>
    %139 = tpu.matmul %133, %138, %cst_43 {dimension_numbers = #tpu.dot_dimension_numbers<[1], [0], [0], [1], [0, 0, 1, 1], [], []>} : vector<2x128xf32>, vector<128x512xf32>, vector<2x512xf32> -> vector<2x512xf32>
    %140 = arith.addf %137, %139 : vector<2x512xf32>
    %141 = vector.extract_strided_slice %140 {offsets = [0, 0], sizes = [2, 128], strides = [1, 1]} : vector<2x512xf32> to vector<2x128xf32>
    %142 = arith.negf %141 : vector<2x128xf32>
    %143 = math.exp %142 : vector<2x128xf32>
    %cst_44 = arith.constant 1.000000e+00 : f32
    %144 = vector.broadcast %cst_44 : f32 to vector<2x128xf32>
    %145 = arith.addf %144, %143 : vector<2x128xf32>
    %146 = arith.divf %144, %145 : vector<2x128xf32>
    %147 = vector.extract_strided_slice %140 {offsets = [0, 128], sizes = [2, 128], strides = [1, 1]} : vector<2x512xf32> to vector<2x128xf32>
    %148 = arith.negf %147 : vector<2x128xf32>
    %149 = math.exp %148 : vector<2x128xf32>
    %cst_45 = arith.constant 1.000000e+00 : f32
    %150 = vector.broadcast %cst_45 : f32 to vector<2x128xf32>
    %151 = arith.addf %150, %149 : vector<2x128xf32>
    %152 = arith.divf %150, %151 : vector<2x128xf32>
    %153 = vector.extract_strided_slice %140 {offsets = [0, 256], sizes = [2, 128], strides = [1, 1]} : vector<2x512xf32> to vector<2x128xf32>
    %154 = math.tanh %153 : vector<2x128xf32>
    %155 = vector.extract_strided_slice %140 {offsets = [0, 384], sizes = [2, 128], strides = [1, 1]} : vector<2x512xf32> to vector<2x128xf32>
    %156 = arith.negf %155 : vector<2x128xf32>
    %157 = math.exp %156 : vector<2x128xf32>
    %cst_46 = arith.constant 1.000000e+00 : f32
    %158 = vector.broadcast %cst_46 : f32 to vector<2x128xf32>
    %159 = arith.addf %158, %157 : vector<2x128xf32>
    %160 = arith.divf %158, %159 : vector<2x128xf32>
    %161 = arith.mulf %152, %131 : vector<2x128xf32>
    %162 = arith.mulf %146, %154 : vector<2x128xf32>
    %163 = arith.addf %161, %162 : vector<2x128xf32>
    %164 = math.tanh %163 : vector<2x128xf32>
    %165 = arith.mulf %160, %164 : vector<2x128xf32>
    %c4 = arith.constant 4 : index
    %c0_47 = arith.constant 0 : index
    %c0_48 = arith.constant 0 : index
    %166 = vector.load %arg9[%c4, %c0_47, %c0_48] : memref<8x2x128xf32, #tpu.memory_space<vmem>>, vector<1x2x128xf32>
    %167 = vector.shape_cast %166 : vector<1x2x128xf32> to vector<2x128xf32>
    %168 = vector.shape_cast %165 : vector<2x128xf32> to vector<1x2x128xf32>
    tpu.vector_store %arg9[%c4, %c0_47, %c0_48], %168 {strides = array<i32>} : memref<8x2x128xf32, #tpu.memory_space<vmem>>, vector<1x2x128xf32>,
    %169 = vector.extract_strided_slice %6 {offsets = [10, 0], sizes = [2, 512], strides = [1, 1]} : vector<16x512xf32> to vector<2x512xf32>
    %c0_49 = arith.constant 0 : index
    %c0_50 = arith.constant 0 : index
    %170 = vector.load %arg2[%c0_49, %c0_50] : memref<128x512xf32, #tpu.memory_space<vmem>>, vector<128x512xf32>
    %cst_51 = arith.constant dense<0.000000e+00> : vector<2x512xf32>
    %171 = tpu.matmul %165, %170, %cst_51 {dimension_numbers = #tpu.dot_dimension_numbers<[1], [0], [0], [1], [0, 0, 1, 1], [], []>} : vector<2x128xf32>, vector<128x512xf32>, vector<2x512xf32> -> vector<2x512xf32>
    %172 = arith.addf %169, %171 : vector<2x512xf32>
    %173 = vector.extract_strided_slice %172 {offsets = [0, 0], sizes = [2, 128], strides = [1, 1]} : vector<2x512xf32> to vector<2x128xf32>
    %174 = arith.negf %173 : vector<2x128xf32>
    %175 = math.exp %174 : vector<2x128xf32>
    %cst_52 = arith.constant 1.000000e+00 : f32
    %176 = vector.broadcast %cst_52 : f32 to vector<2x128xf32>
    %177 = arith.addf %176, %175 : vector<2x128xf32>
    %178 = arith.divf %176, %177 : vector<2x128xf32>
    %179 = vector.extract_strided_slice %172 {offsets = [0, 128], sizes = [2, 128], strides = [1, 1]} : vector<2x512xf32> to vector<2x128xf32>
    %180 = arith.negf %179 : vector<2x128xf32>
    %181 = math.exp %180 : vector<2x128xf32>
    %cst_53 = arith.constant 1.000000e+00 : f32
    %182 = vector.broadcast %cst_53 : f32 to vector<2x128xf32>
    %183 = arith.addf %182, %181 : vector<2x128xf32>
    %184 = arith.divf %182, %183 : vector<2x128xf32>
    %185 = vector.extract_strided_slice %172 {offsets = [0, 256], sizes = [2, 128], strides = [1, 1]} : vector<2x512xf32> to vector<2x128xf32>
    %186 = math.tanh %185 : vector<2x128xf32>
    %187 = vector.extract_strided_slice %172 {offsets = [0, 384], sizes = [2, 128], strides = [1, 1]} : vector<2x512xf32> to vector<2x128xf32>
    %188 = arith.negf %187 : vector<2x128xf32>
    %189 = math.exp %188 : vector<2x128xf32>
    %cst_54 = arith.constant 1.000000e+00 : f32
    %190 = vector.broadcast %cst_54 : f32 to vector<2x128xf32>
    %191 = arith.addf %190, %189 : vector<2x128xf32>
    %192 = arith.divf %190, %191 : vector<2x128xf32>
    %193 = arith.mulf %184, %163 : vector<2x128xf32>
    %194 = arith.mulf %178, %186 : vector<2x128xf32>
    %195 = arith.addf %193, %194 : vector<2x128xf32>
    %196 = math.tanh %195 : vector<2x128xf32>
    %197 = arith.mulf %192, %196 : vector<2x128xf32>
    %c5 = arith.constant 5 : index
    %c0_55 = arith.constant 0 : index
    %c0_56 = arith.constant 0 : index
    %198 = vector.load %arg9[%c5, %c0_55, %c0_56] : memref<8x2x128xf32, #tpu.memory_space<vmem>>, vector<1x2x128xf32>
    %199 = vector.shape_cast %198 : vector<1x2x128xf32> to vector<2x128xf32>
    %200 = vector.shape_cast %197 : vector<2x128xf32> to vector<1x2x128xf32>
    tpu.vector_store %arg9[%c5, %c0_55, %c0_56], %200 {strides = array<i32>} : memref<8x2x128xf32, #tpu.memory_space<vmem>>, vector<1x2x128xf32>,
    %201 = vector.extract_strided_slice %6 {offsets = [12, 0], sizes = [2, 512], strides = [1, 1]} : vector<16x512xf32> to vector<2x512xf32>
    %c0_57 = arith.constant 0 : index
    %c0_58 = arith.constant 0 : index
    %202 = vector.load %arg2[%c0_57, %c0_58] : memref<128x512xf32, #tpu.memory_space<vmem>>, vector<128x512xf32>
    %cst_59 = arith.constant dense<0.000000e+00> : vector<2x512xf32>
    %203 = tpu.matmul %197, %202, %cst_59 {dimension_numbers = #tpu.dot_dimension_numbers<[1], [0], [0], [1], [0, 0, 1, 1], [], []>} : vector<2x128xf32>, vector<128x512xf32>, vector<2x512xf32> -> vector<2x512xf32>
    %204 = arith.addf %201, %203 : vector<2x512xf32>
    %205 = vector.extract_strided_slice %204 {offsets = [0, 0], sizes = [2, 128], strides = [1, 1]} : vector<2x512xf32> to vector<2x128xf32>
    %206 = arith.negf %205 : vector<2x128xf32>
    %207 = math.exp %206 : vector<2x128xf32>
    %cst_60 = arith.constant 1.000000e+00 : f32
    %208 = vector.broadcast %cst_60 : f32 to vector<2x128xf32>
    %209 = arith.addf %208, %207 : vector<2x128xf32>
    %210 = arith.divf %208, %209 : vector<2x128xf32>
    %211 = vector.extract_strided_slice %204 {offsets = [0, 128], sizes = [2, 128], strides = [1, 1]} : vector<2x512xf32> to vector<2x128xf32>
    %212 = arith.negf %211 : vector<2x128xf32>
    %213 = math.exp %212 : vector<2x128xf32>
    %cst_61 = arith.constant 1.000000e+00 : f32
    %214 = vector.broadcast %cst_61 : f32 to vector<2x128xf32>
    %215 = arith.addf %214, %213 : vector<2x128xf32>
    %216 = arith.divf %214, %215 : vector<2x128xf32>
    %217 = vector.extract_strided_slice %204 {offsets = [0, 256], sizes = [2, 128], strides = [1, 1]} : vector<2x512xf32> to vector<2x128xf32>
    %218 = math.tanh %217 : vector<2x128xf32>
    %219 = vector.extract_strided_slice %204 {offsets = [0, 384], sizes = [2, 128], strides = [1, 1]} : vector<2x512xf32> to vector<2x128xf32>
    %220 = arith.negf %219 : vector<2x128xf32>
    %221 = math.exp %220 : vector<2x128xf32>
    %cst_62 = arith.constant 1.000000e+00 : f32
    %222 = vector.broadcast %cst_62 : f32 to vector<2x128xf32>
    %223 = arith.addf %222, %221 : vector<2x128xf32>
    %224 = arith.divf %222, %223 : vector<2x128xf32>
    %225 = arith.mulf %216, %195 : vector<2x128xf32>
    %226 = arith.mulf %210, %218 : vector<2x128xf32>
    %227 = arith.addf %225, %226 : vector<2x128xf32>
    %228 = math.tanh %227 : vector<2x128xf32>
    %229 = arith.mulf %224, %228 : vector<2x128xf32>
    %c6 = arith.constant 6 : index
    %c0_63 = arith.constant 0 : index
    %c0_64 = arith.constant 0 : index
    %230 = vector.load %arg9[%c6, %c0_63, %c0_64] : memref<8x2x128xf32, #tpu.memory_space<vmem>>, vector<1x2x128xf32>
    %231 = vector.shape_cast %230 : vector<1x2x128xf32> to vector<2x128xf32>
    %232 = vector.shape_cast %229 : vector<2x128xf32> to vector<1x2x128xf32>
    tpu.vector_store %arg9[%c6, %c0_63, %c0_64], %232 {strides = array<i32>} : memref<8x2x128xf32, #tpu.memory_space<vmem>>, vector<1x2x128xf32>,
    %233 = vector.extract_strided_slice %6 {offsets = [14, 0], sizes = [2, 512], strides = [1, 1]} : vector<16x512xf32> to vector<2x512xf32>
    %c0_65 = arith.constant 0 : index
    %c0_66 = arith.constant 0 : index
    %234 = vector.load %arg2[%c0_65, %c0_66] : memref<128x512xf32, #tpu.memory_space<vmem>>, vector<128x512xf32>
    %cst_67 = arith.constant dense<0.000000e+00> : vector<2x512xf32>
    %235 = tpu.matmul %229, %234, %cst_67 {dimension_numbers = #tpu.dot_dimension_numbers<[1], [0], [0], [1], [0, 0, 1, 1], [], []>} : vector<2x128xf32>, vector<128x512xf32>, vector<2x512xf32> -> vector<2x512xf32>
    %236 = arith.addf %233, %235 : vector<2x512xf32>
    %237 = vector.extract_strided_slice %236 {offsets = [0, 0], sizes = [2, 128], strides = [1, 1]} : vector<2x512xf32> to vector<2x128xf32>
    %238 = arith.negf %237 : vector<2x128xf32>
    %239 = math.exp %238 : vector<2x128xf32>
    %cst_68 = arith.constant 1.000000e+00 : f32
    %240 = vector.broadcast %cst_68 : f32 to vector<2x128xf32>
    %241 = arith.addf %240, %239 : vector<2x128xf32>
    %242 = arith.divf %240, %241 : vector<2x128xf32>
    %243 = vector.extract_strided_slice %236 {offsets = [0, 128], sizes = [2, 128], strides = [1, 1]} : vector<2x512xf32> to vector<2x128xf32>
    %244 = arith.negf %243 : vector<2x128xf32>
    %245 = math.exp %244 : vector<2x128xf32>
    %cst_69 = arith.constant 1.000000e+00 : f32
    %246 = vector.broadcast %cst_69 : f32 to vector<2x128xf32>
    %247 = arith.addf %246, %245 : vector<2x128xf32>
    %248 = arith.divf %246, %247 : vector<2x128xf32>
    %249 = vector.extract_strided_slice %236 {offsets = [0, 256], sizes = [2, 128], strides = [1, 1]} : vector<2x512xf32> to vector<2x128xf32>
    %250 = math.tanh %249 : vector<2x128xf32>
    %251 = vector.extract_strided_slice %236 {offsets = [0, 384], sizes = [2, 128], strides = [1, 1]} : vector<2x512xf32> to vector<2x128xf32>
    %252 = arith.negf %251 : vector<2x128xf32>
    %253 = math.exp %252 : vector<2x128xf32>
    %cst_70 = arith.constant 1.000000e+00 : f32
    %254 = vector.broadcast %cst_70 : f32 to vector<2x128xf32>
    %255 = arith.addf %254, %253 : vector<2x128xf32>
    %256 = arith.divf %254, %255 : vector<2x128xf32>
    %257 = arith.mulf %248, %227 : vector<2x128xf32>
    %258 = arith.mulf %242, %250 : vector<2x128xf32>
    %259 = arith.addf %257, %258 : vector<2x128xf32>
    %260 = math.tanh %259 : vector<2x128xf32>
    %261 = arith.mulf %256, %260 : vector<2x128xf32>
    %c7 = arith.constant 7 : index
    %c0_71 = arith.constant 0 : index
    %c0_72 = arith.constant 0 : index
    %262 = vector.load %arg9[%c7, %c0_71, %c0_72] : memref<8x2x128xf32, #tpu.memory_space<vmem>>, vector<1x2x128xf32>
    %263 = vector.shape_cast %262 : vector<1x2x128xf32> to vector<2x128xf32>
    %264 = vector.shape_cast %261 : vector<2x128xf32> to vector<1x2x128xf32>
    tpu.vector_store %arg9[%c7, %c0_71, %c0_72], %264 {strides = array<i32>} : memref<8x2x128xf32, #tpu.memory_space<vmem>>, vector<1x2x128xf32>,
    %c0_73 = arith.constant 0 : index
    %c0_74 = arith.constant 0 : index
    %c0_75 = arith.constant 0 : index
    %265 = vector.load %arg9[%c0_73, %c0_74, %c0_75] : memref<8x2x128xf32, #tpu.memory_space<vmem>>, vector<8x2x128xf32>
    %266 = vector.shape_cast %265 : vector<8x2x128xf32> to vector<16x128xf32>
    %c0_76 = arith.constant 0 : index
    %c0_77 = arith.constant 0 : index
    %267 = vector.load %arg4[%c0_76, %c0_77] : memref<128x128xf32, #tpu.memory_space<vmem>>, vector<128x128xf32>
    %cst_78 = arith.constant dense<0.000000e+00> : vector<16x128xf32>
    %268 = tpu.matmul %266, %267, %cst_78 {dimension_numbers = #tpu.dot_dimension_numbers<[1], [0], [0], [1], [0, 0, 1, 1], [], []>} : vector<16x128xf32>, vector<128x128xf32>, vector<16x128xf32> -> vector<16x128xf32>
    %c0_79 = arith.constant 0 : index
    %c0_80 = arith.constant 0 : index
    %269 = vector.load %arg5[%c0_79, %c0_80] : memref<1x128xf32, #tpu.memory_space<vmem>>, vector<1x128xf32>
    %270 = vector.broadcast %269 : vector<1x128xf32> to vector<16x128xf32>
    %271 = arith.addf %268, %270 : vector<16x128xf32>
    %c0_81 = arith.constant 0 : index
    %c0_82 = arith.constant 0 : index
    %272 = vector.load %arg6[%c0_81, %c0_82] : memref<128x128xf32, #tpu.memory_space<vmem>>, vector<128x128xf32>
    %cst_83 = arith.constant dense<0.000000e+00> : vector<16x128xf32>
    %273 = tpu.matmul %271, %272, %cst_83 {dimension_numbers = #tpu.dot_dimension_numbers<[1], [0], [0], [1], [0, 0, 1, 1], [], []>} : vector<16x128xf32>, vector<128x128xf32>, vector<16x128xf32> -> vector<16x128xf32>
    %c0_84 = arith.constant 0 : index
    %c0_85 = arith.constant 0 : index
    %274 = vector.load %arg7[%c0_84, %c0_85] : memref<1x128xf32, #tpu.memory_space<vmem>>, vector<1x128xf32>
    %275 = vector.broadcast %274 : vector<1x128xf32> to vector<16x128xf32>
    %276 = arith.addf %273, %275 : vector<16x128xf32>
    %277 = vector.shape_cast %276 : vector<16x128xf32> to vector<8x2x128xf32>
    %c0_86 = arith.constant 0 : index
    %c0_87 = arith.constant 0 : index
    %c0_88 = arith.constant 0 : index
    %278 = vector.load %arg8[%c0_86, %c0_87, %c0_88] : memref<8x2x128xf32, #tpu.memory_space<vmem>>, vector<8x2x128xf32>
    tpu.vector_store %arg8[%c0_86, %c0_87, %c0_88], %277 {strides = array<i32>} : memref<8x2x128xf32, #tpu.memory_space<vmem>>, vector<8x2x128xf32>,
    return
  }
}

module attributes {stable_mosaic.version = 11 : i64} {
  func.func @_joint_kernel(%arg0: i32, %arg1: i32, %arg2: memref<1x8x128xf32, #tpu.memory_space<vmem>>, %arg3: memref<1x8x128xf32, #tpu.memory_space<vmem>>, %arg4: memref<128x128xf32, #tpu.memory_space<vmem>>, %arg5: memref<1x128xf32, #tpu.memory_space<vmem>>, %arg6: memref<1x8x8x128xf32, #tpu.memory_space<vmem>>) attributes {dimension_semantics = [#tpu.dimension_semantics<parallel>, #tpu.dimension_semantics<parallel>], iteration_bounds = array<i64: 2, 1>, scalar_prefetch = 0 : i64, scratch_operands = 0 : i64, tpu.core_type = #tpu.core_type<tc>, window_params = [{transform_indices = @transform_0, window_bounds = array<i64: 1, 8, 128>}, {transform_indices = @transform_1, window_bounds = array<i64: 1, 8, 128>}, {pipeline_mode = #tpu.pipeline_mode<synchronous>, transform_indices = @transform_2, window_bounds = array<i64: 128, 128>}, {pipeline_mode = #tpu.pipeline_mode<synchronous>, transform_indices = @transform_3, window_bounds = array<i64: 1, 128>}, {transform_indices = @transform_4, window_bounds = array<i64: 1, 8, 8, 128>}]} {
    %c0 = arith.constant 0 : index
    %c0_0 = arith.constant 0 : index
    %c0_1 = arith.constant 0 : index
    %0 = vector.load %arg2[%c0, %c0_0, %c0_1] : memref<1x8x128xf32, #tpu.memory_space<vmem>>, vector<1x8x128xf32>
    %1 = vector.shape_cast %0 : vector<1x8x128xf32> to vector<8x128xf32>
    %c0_2 = arith.constant 0 : index
    %c0_3 = arith.constant 0 : index
    %c0_4 = arith.constant 0 : index
    %2 = vector.load %arg3[%c0_2, %c0_3, %c0_4] : memref<1x8x128xf32, #tpu.memory_space<vmem>>, vector<1x8x128xf32>
    %3 = vector.shape_cast %2 : vector<1x8x128xf32> to vector<8x128xf32>
    %4 = vector.shape_cast %1 : vector<8x128xf32> to vector<8x1x128xf32>
    %5 = vector.shape_cast %3 : vector<8x128xf32> to vector<1x8x128xf32>
    %6 = vector.broadcast %4 : vector<8x1x128xf32> to vector<8x8x128xf32>
    %7 = vector.broadcast %5 : vector<1x8x128xf32> to vector<8x8x128xf32>
    %8 = arith.addf %6, %7 : vector<8x8x128xf32>
    %9 = math.tanh %8 : vector<8x8x128xf32>
    %10 = vector.shape_cast %9 : vector<8x8x128xf32> to vector<64x128xf32>
    %c0_5 = arith.constant 0 : index
    %c0_6 = arith.constant 0 : index
    %11 = vector.load %arg4[%c0_5, %c0_6] : memref<128x128xf32, #tpu.memory_space<vmem>>, vector<128x128xf32>
    %cst = arith.constant dense<0.000000e+00> : vector<64x128xf32>
    %12 = tpu.matmul %10, %11, %cst {dimension_numbers = #tpu.dot_dimension_numbers<[1], [0], [0], [1], [0, 0, 1, 1], [], []>} : vector<64x128xf32>, vector<128x128xf32>, vector<64x128xf32> -> vector<64x128xf32>
    %c0_7 = arith.constant 0 : index
    %c0_8 = arith.constant 0 : index
    %13 = vector.load %arg5[%c0_7, %c0_8] : memref<1x128xf32, #tpu.memory_space<vmem>>, vector<1x128xf32>
    %14 = vector.broadcast %13 : vector<1x128xf32> to vector<64x128xf32>
    %15 = arith.addf %12, %14 : vector<64x128xf32>
    %16 = vector.shape_cast %15 : vector<64x128xf32> to vector<8x8x128xf32>
    %c0_9 = arith.constant 0 : index
    %c0_10 = arith.constant 0 : index
    %c0_11 = arith.constant 0 : index
    %c0_12 = arith.constant 0 : index
    %17 = vector.load %arg6[%c0_9, %c0_10, %c0_11, %c0_12] : memref<1x8x8x128xf32, #tpu.memory_space<vmem>>, vector<1x8x8x128xf32>
    %18 = vector.shape_cast %17 : vector<1x8x8x128xf32> to vector<8x8x128xf32>
    %19 = vector.shape_cast %16 : vector<8x8x128xf32> to vector<1x8x8x128xf32>
    tpu.vector_store %arg6[%c0_9, %c0_10, %c0_11, %c0_12], %19 {strides = array<i32>} : memref<1x8x8x128xf32, #tpu.memory_space<vmem>>, vector<1x8x8x128xf32>,
    return
  }
  func.func @transform_0(%arg0: i32, %arg1: i32) -> (i32, i32, i32) {
    %c0_i32 = arith.constant 0 : i32
    %c0_i32_0 = arith.constant 0 : i32
    return %arg0, %arg1, %c0_i32 : i32, i32, i32
  }
  func.func @transform_1(%arg0: i32, %arg1: i32) -> (i32, i32, i32) {
    %c0_i32 = arith.constant 0 : i32
    %c0_i32_0 = arith.constant 0 : i32
    %c0_i32_1 = arith.constant 0 : i32
    return %arg0, %c0_i32, %c0_i32_0 : i32, i32, i32
  }
  func.func @transform_2(%arg0: i32, %arg1: i32) -> (i32, i32) {
    %c0_i32 = arith.constant 0 : i32
    %c0_i32_0 = arith.constant 0 : i32
    %c0_i32_1 = arith.constant 0 : i32
    return %c0_i32, %c0_i32_0 : i32, i32
  }
  func.func @transform_3(%arg0: i32, %arg1: i32) -> (i32, i32) {
    %c0_i32 = arith.constant 0 : i32
    %c0_i32_0 = arith.constant 0 : i32
    %c0_i32_1 = arith.constant 0 : i32
    return %c0_i32, %c0_i32_0 : i32, i32
  }
  func.func @transform_4(%arg0: i32, %arg1: i32) -> (i32, i32, i32, i32) {
    %c0_i32 = arith.constant 0 : i32
    %c0_i32_0 = arith.constant 0 : i32
    %c0_i32_1 = arith.constant 0 : i32
    return %arg0, %arg1, %c0_i32, %c0_i32_0 : i32, i32, i32, i32
  }
}

module attributes {stable_mosaic.version = 11 : i64} {
  func.func @_encoder_kernel(%arg0: i32, %arg1: memref<16x384xf32, #tpu.memory_space<vmem>>, %arg2: memref<384x128xf32, #tpu.memory_space<vmem>>, %arg3: memref<1x128xf32, #tpu.memory_space<vmem>>, %arg4: memref<128x128xf32, #tpu.memory_space<vmem>>, %arg5: memref<1x128xf32, #tpu.memory_space<vmem>>, %arg6: memref<16x128xf32, #tpu.memory_space<vmem>>, %arg7: memref<16x128xf32, #tpu.memory_space<vmem>>) attributes {dimension_semantics = [#tpu.dimension_semantics<parallel>], iteration_bounds = array<i64: 1>, scalar_prefetch = 0 : i64, scratch_operands = 0 : i64, tpu.core_type = #tpu.core_type<tc>, window_params = [{transform_indices = @transform_0, window_bounds = array<i64: 16, 384>}, {pipeline_mode = #tpu.pipeline_mode<synchronous>, transform_indices = @transform_1, window_bounds = array<i64: 384, 128>}, {pipeline_mode = #tpu.pipeline_mode<synchronous>, transform_indices = @transform_2, window_bounds = array<i64: 1, 128>}, {pipeline_mode = #tpu.pipeline_mode<synchronous>, transform_indices = @transform_3, window_bounds = array<i64: 128, 128>}, {pipeline_mode = #tpu.pipeline_mode<synchronous>, transform_indices = @transform_4, window_bounds = array<i64: 1, 128>}, {transform_indices = @transform_5, window_bounds = array<i64: 16, 128>}, {transform_indices = @transform_6, window_bounds = array<i64: 16, 128>}]} {
    %c0 = arith.constant 0 : index
    %c0_0 = arith.constant 0 : index
    %0 = vector.load %arg1[%c0, %c0_0] : memref<16x384xf32, #tpu.memory_space<vmem>>, vector<16x384xf32>
    %c0_1 = arith.constant 0 : index
    %c0_2 = arith.constant 0 : index
    %1 = vector.load %arg2[%c0_1, %c0_2] : memref<384x128xf32, #tpu.memory_space<vmem>>, vector<384x128xf32>
    %cst = arith.constant dense<0.000000e+00> : vector<16x128xf32>
    %2 = tpu.matmul %0, %1, %cst {dimension_numbers = #tpu.dot_dimension_numbers<[1], [0], [0], [1], [0, 0, 1, 1], [], []>} : vector<16x384xf32>, vector<384x128xf32>, vector<16x128xf32> -> vector<16x128xf32>
    %c0_3 = arith.constant 0 : index
    %c0_4 = arith.constant 0 : index
    %3 = vector.load %arg3[%c0_3, %c0_4] : memref<1x128xf32, #tpu.memory_space<vmem>>, vector<1x128xf32>
    %4 = vector.broadcast %3 : vector<1x128xf32> to vector<16x128xf32>
    %5 = arith.addf %2, %4 : vector<16x128xf32>
    %cst_5 = arith.constant 0.000000e+00 : f32
    %6 = vector.broadcast %cst_5 : f32 to vector<16x128xf32>
    %7 = arith.maximumf %5, %6 : vector<16x128xf32>
    %c0_6 = arith.constant 0 : index
    %c0_7 = arith.constant 0 : index
    %8 = vector.load %arg6[%c0_6, %c0_7] : memref<16x128xf32, #tpu.memory_space<vmem>>, vector<16x128xf32>
    tpu.vector_store %arg6[%c0_6, %c0_7], %7 {strides = array<i32>} : memref<16x128xf32, #tpu.memory_space<vmem>>, vector<16x128xf32>,
    %c0_8 = arith.constant 0 : index
    %c0_9 = arith.constant 0 : index
    %9 = vector.load %arg4[%c0_8, %c0_9] : memref<128x128xf32, #tpu.memory_space<vmem>>, vector<128x128xf32>
    %cst_10 = arith.constant dense<0.000000e+00> : vector<16x128xf32>
    %10 = tpu.matmul %7, %9, %cst_10 {dimension_numbers = #tpu.dot_dimension_numbers<[1], [0], [0], [1], [0, 0, 1, 1], [], []>} : vector<16x128xf32>, vector<128x128xf32>, vector<16x128xf32> -> vector<16x128xf32>
    %c0_11 = arith.constant 0 : index
    %c0_12 = arith.constant 0 : index
    %11 = vector.load %arg5[%c0_11, %c0_12] : memref<1x128xf32, #tpu.memory_space<vmem>>, vector<1x128xf32>
    %12 = vector.broadcast %11 : vector<1x128xf32> to vector<16x128xf32>
    %13 = arith.addf %10, %12 : vector<16x128xf32>
    %c0_13 = arith.constant 0 : index
    %c0_14 = arith.constant 0 : index
    %14 = vector.load %arg7[%c0_13, %c0_14] : memref<16x128xf32, #tpu.memory_space<vmem>>, vector<16x128xf32>
    tpu.vector_store %arg7[%c0_13, %c0_14], %13 {strides = array<i32>} : memref<16x128xf32, #tpu.memory_space<vmem>>, vector<16x128xf32>,
    return
  }
  func.func @transform_0(%arg0: i32) -> (i32, i32) {
    %c0_i32 = arith.constant 0 : i32
    %c0_i32_0 = arith.constant 0 : i32
    return %arg0, %c0_i32 : i32, i32
  }
  func.func @transform_1(%arg0: i32) -> (i32, i32) {
    %c0_i32 = arith.constant 0 : i32
    %c0_i32_0 = arith.constant 0 : i32
    %c0_i32_1 = arith.constant 0 : i32
    return %c0_i32, %c0_i32_0 : i32, i32
  }
  func.func @transform_2(%arg0: i32) -> (i32, i32) {
    %c0_i32 = arith.constant 0 : i32
    %c0_i32_0 = arith.constant 0 : i32
    %c0_i32_1 = arith.constant 0 : i32
    return %c0_i32, %c0_i32_0 : i32, i32
  }
  func.func @transform_3(%arg0: i32) -> (i32, i32) {
    %c0_i32 = arith.constant 0 : i32
    %c0_i32_0 = arith.constant 0 : i32
    %c0_i32_1 = arith.constant 0 : i32
    return %c0_i32, %c0_i32_0 : i32, i32
  }
  func.func @transform_4(%arg0: i32) -> (i32, i32) {
    %c0_i32 = arith.constant 0 : i32
    %c0_i32_0 = arith.constant 0 : i32
    %c0_i32_1 = arith.constant 0 : i32
    return %c0_i32, %c0_i32_0 : i32, i32
  }
  func.func @transform_5(%arg0: i32) -> (i32, i32) {
    %c0_i32 = arith.constant 0 : i32
    %c0_i32_0 = arith.constant 0 : i32
    return %arg0, %c0_i32 : i32, i32
  }
  func.func @transform_6(%arg0: i32) -> (i32, i32) {
    %c0_i32 = arith.constant 0 : i32
    %c0_i32_0 = arith.constant 0 : i32
    return %arg0, %c0_i32 : i32, i32
  }
}

</mosaic_0001>

<bundles_post_ra>
// kernel: xlsr_transducer_forward.3
= control target key start
LH: loop header
LB: loop body
LE: loop exit
PB: predicated region body
PF: predicated region fallthrough
CT: control target
= control target key end

     0   :  { %12 = vsyncpa [#allocation3], 0  ;;  %s254_s24 = smov [#allocation2]   ;;  %s255_s26 = smov 128   ;;  %s379_s0 = inlined_call_operand.vmem [shape: f32[16,384], index: 0, kind: input, shape index: {}]   ;;  %s380_s1 = inlined_call_operand.hbm [shape: f32[384,128], index: 1, kind: input, shape index: {}]   ;;  %s381_s2 = inlined_call_operand.vmem [shape: f32[1,128], index: 2, kind: input, shape index: {}]   ;;  %s382_s3 = inlined_call_operand.vmem [shape: f32[128,128], index: 3, kind: input, shape index: {}]   ;;  %s383_s4 = inlined_call_operand.vmem [shape: f32[1,128], index: 4, kind: input, shape index: {}]   ;;  %s384_s5 = inlined_call_operand.vmem [shape: f32[16,128], index: 5, kind: output, shape index: {0}]   ;;  %s385_s6 = inlined_call_operand.vmem [shape: f32[16,128], index: 6, kind: output, shape index: {1}]  }
   0x1   :  { %s19_s23 = sshll.u32 %s380_s1, 4  ;;  %s21_s25 = sshll.u32 %s254_s24, 4  ;;  %s20_s23 = int_to_ptr.hbm [resolvable:$true] %s19_s23  ;;  %s22_s25 = int_to_ptr.vmem [resolvable:$true] %s21_s25 }
   0x2   :  { %s256_s27 = smov 8  }
   0x3   :  { %27 = dma.hbm_to_vmem [thread:$0]  %s20_s23, 6144, %s22_s25, [#allocation3], %s255_s26, %s255_s26, %s256_s27  }
   0x4   :  { %252 = dma.done.wait [#allocation3], 6144  }
   0x5   :  { %253 = vsyncadd [#allocation3], 4294961152  ;;  %v91_v0 = vld [vmem:[#allocation2 + $0x178] sm:$0xff]  ;;  %v90_v2 = vld [vmem:[#allocation2 + $0x170] sm:$0xff] }
   0x6   :  { %v59_v1 = vld [vmem:[#allocation2 + $0x78] sm:$0xff]  ;;  %142 = vmatpush.msra.mxu2 %v91_v0  ;;  %v58_v3 = vld [vmem:[#allocation2 + $0x70] sm:$0xff]  ;;  %v89_v5 = vld [vmem:[#allocation2 + $0x168] sm:$0xff] }
   0x7   :  { %96 = vmatpush.msra.mxu0 %v59_v1  ;;  %v75_v4 = vld [vmem:[#allocation2 + $0xf8] sm:$0xff]  ;;  %v57_v6 = vld [vmem:[#allocation2 + $0x68] sm:$0xff]  ;;  %v74_v7 = vld [vmem:[#allocation2 + $0xf0] sm:$0xff] }
   0x8   :  { %119 = vmatpush.msra.mxu1 %v75_v4  ;;  %143 = vmatpush.msra.mxu2 %v90_v2  ;;  %v73_v8 = vld [vmem:[#allocation2 + $0xe8] sm:$0xff]  ;;  %v88_v9 = vld [vmem:[#allocation2 + $0x160] sm:$0xff]  ;;  %v87_v12 = vld [vmem:[#allocation2 + $0x158] sm:$0xff] }
   0x9   :  { %97 = vmatpush.msra.mxu0 %v58_v3  ;;  %v56_v10 = vld [vmem:[#allocation2 + $0x60] sm:$0xff]  ;;  %v55_v13 = vld [vmem:[#allocation2 + $0x58] sm:$0xff]  ;;  %v86_v15 = vld [vmem:[#allocation2 + $0x150] sm:$0xff] }
   0xa   :  { %120 = vmatpush.msra.mxu1 %v74_v7  ;;  %144 = vmatpush.msra.mxu2 %v89_v5  ;;  %v72_v11 = vld [vmem:[#allocation2 + $0xe0] sm:$0xff]  ;;  %v71_v14 = vld [vmem:[#allocation2 + $0xd8] sm:$0xff]  ;;  %v54_v16 = vld [vmem:[#allocation2 + $0x50] sm:$0xff] }
   0xb   :  { %98 = vmatpush.msra.mxu0 %v57_v6  ;;  %v70_v17 = vld [vmem:[#allocation2 + $0xd0] sm:$0xff]  ;;  %v85_v18 = vld [vmem:[#allocation2 + $0x148] sm:$0xff]  ;;  %v84_v21 = vld [vmem:[#allocation2 + $0x140] sm:$0xff] }
   0xc   :  { %121 = vmatpush.msra.mxu1 %v73_v8  ;;  %145 = vmatpush.msra.mxu2 %v88_v9  ;;  %v53_v19 = vld [vmem:[#allocation2 + $0x48] sm:$0xff]  ;;  %v52_v22 = vld [vmem:[#allocation2 + $0x40] sm:$0xff]  ;;  %v83_v24 = vld [vmem:[#allocation2 + $0x138] sm:$0xff] }
   0xd   :  { %99 = vmatpush.msra.mxu0 %v56_v10  ;;  %v69_v20 = vld [vmem:[#allocation2 + $0xc8] sm:$0xff]  ;;  %v68_v23 = vld [vmem:[#allocation2 + $0xc0] sm:$0xff]  ;;  %v51_v25 = vld [vmem:[#allocation2 + $0x38] sm:$0xff] }
   0xe   :  { %122 = vmatpush.msra.mxu1 %v72_v11  ;;  %146 = vmatpush.msra.mxu2 %v87_v12  ;;  %v67_v26 = vld [vmem:[#allocation2 + $0xb8] sm:$0xff]  ;;  %v82_v27 = vld [vmem:[#allocation2 + $0x130] sm:$0xff]  ;;  %v81_v30 = vld [vmem:[#allocation2 + $0x128] sm:$0xff] }
   0xf   :  { %100 = vmatpush.msra.mxu0 %v55_v13  ;;  %v50_v28 = vld [vmem:[#allocation2 + $0x30] sm:$0xff]  ;;  %v49_v31 = vld [vmem:[#allocation2 + $0x28] sm:$0xff]  ;;  %v184_v32 = vld [vmem:[%s382_s3 + $0x78] sm:$0xff] }
  0x10   :  { %123 = vmatpush.msra.mxu1 %v71_v14  ;;  %147 = vmatpush.msra.mxu2 %v86_v15  ;;  %v66_v29 = vld [vmem:[#allocation2 + $0xb0] sm:$0xff]  ;;  %v65_v33 = vld [vmem:[#allocation2 + $0xa8] sm:$0xff]  ;;  %v80_v35 = vld [vmem:[#allocation2 + $0x120] sm:$0xff] }
  0x11   :  { %101 = vmatpush.msra.mxu0 %v54_v16  ;;  %v183_v34 = vld [vmem:[%s382_s3 + $0x70] sm:$0xff]  ;;  %v48_v36 = vld [vmem:[#allocation2 + $0x20] sm:$0xff]  ;;  %189 = vmatpush.msra.mxu3 %v184_v32  ;;  %v182_v38 = vld [vmem:[%s382_s3 + $0x68] sm:$0xff] }
  0x12   :  { %124 = vmatpush.msra.mxu1 %v70_v17  ;;  %148 = vmatpush.msra.mxu2 %v85_v18  ;;  %v64_v37 = vld [vmem:[#allocation2 + $0xa0] sm:$0xff]  ;;  %v79_v39 = vld [vmem:[#allocation2 + $0x118] sm:$0xff]  ;;  %v78_v43 = vld [vmem:[#allocation2 + $0x110] sm:$0xff] }
  0x13   :  { %102 = vmatpush.msra.mxu0 %v53_v19  ;;  %v47_v40 = vld [vmem:[#allocation2 + $0x18] sm:$0xff]  ;;  %190 = vmatpush.msra.mxu3 %v183_v34  ;;  %v181_v42 = vld [vmem:[%s382_s3 + $0x60] sm:$0xff]  ;;  %v46_v44 = vld [vmem:[#allocation2 + $0x10] sm:$0xff] }
  0x14   :  { %125 = vmatpush.msra.mxu1 %v69_v20  ;;  %149 = vmatpush.msra.mxu2 %v84_v21  ;;  %v63_v41 = vld [vmem:[#allocation2 + $0x98] sm:$0xff]  ;;  %v62_v45 = vld [vmem:[#allocation2 + $0x90] sm:$0xff]  ;;  %v77_v47 = vld [vmem:[#allocation2 + $0x108] sm:$0xff] }
  0x15   :  { %103 = vmatpush.msra.mxu0 %v52_v22  ;;  %191 = vmatpush.msra.mxu3 %v182_v38  ;;  %v180_v46 = vld [vmem:[%s382_s3 + $0x58] sm:$0xff]  ;;  %v45_v48 = vld [vmem:[#allocation2 + $0x8] sm:$0xff]  ;;  %v179_v50 = vld [vmem:[%s382_s3 + $0x50] sm:$0xff] }
  0x16   :  { %126 = vmatpush.msra.mxu1 %v68_v23  ;;  %150 = vmatpush.msra.mxu2 %v83_v24  ;;  %v61_v49 = vld [vmem:[#allocation2 + $0x88] sm:$0xff]  ;;  %v76_v51 = vld [vmem:[#allocation2 + $0x100] sm:$0xff]  ;;  %v40_v53 = vld [vmem:[%s379_s0 + $0x10] sm:$0xff] }
  0x17   :  { %104 = vmatpush.msra.mxu0 %v51_v25  ;;  %192 = vmatpush.msra.mxu3 %v181_v42  ;;  %v44_v52 = vld [vmem:[#allocation2] sm:$0xff]  ;;  %v178_v56 = vld [vmem:[%s382_s3 + $0x48] sm:$0xff]  ;;  %v176_v59 = vld [vmem:[%s382_s3 + $0x38] sm:$0xff] }
  0x18   :  { %127 = vmatpush.msra.mxu1 %v67_v26  ;;  %151 = vmatpush.msra.mxu2 %v82_v27  ;;  %v38_v54 = vld [vmem:[%s379_s0] sm:$0xff]  ;;  %v39_v57 = vld [vmem:[%s379_s0 + $0x8] sm:$0xff]  ;;  %v175_v60 = vld [vmem:[%s382_s3 + $0x30] sm:$0xff] }
  0x19   :  { %105 = vmatpush.msra.mxu0 %v50_v28  ;;  %193 = vmatpush.msra.mxu3 %v180_v46  ;;  %v60_v55 = vld [vmem:[#allocation2 + $0x80] sm:$0xff]  ;;  %v43_v61 = vld [vmem:[%s379_s0 + $0x28] sm:$0xff]  ;;  %v41_v62 = vld [vmem:[%s379_s0 + $0x18] sm:$0xff] }
  0x1a   :  { %128 = vmatpush.msra.mxu1 %v66_v29  ;;  %152 = vmatpush.msra.mxu2 %v81_v30  ;;  %v177_v58 = vld [vmem:[%s382_s3 + $0x40] sm:$0xff]  ;;  %v174_v63 = vld [vmem:[%s382_s3 + $0x28] sm:$0xff]  ;;  %v172_v2 = vld [vmem:[%s382_s3 + $0x18] sm:$0xff] }
  0x1b   :  { %106 = vmatpush.msra.mxu0 %v49_v31  ;;  %194 = vmatpush.msra.mxu3 %v179_v50  ;;  %v42_v0 = vld [vmem:[%s379_s0 + $0x20] sm:$0xff]  ;;  %v171_v3 = vld [vmem:[%s382_s3 + $0x10] sm:$0xff]  ;;  %v170_v4 = vld [vmem:[%s382_s3 + $0x8] sm:$0xff] }
  0x1c   :  { %129 = vmatpush.msra.mxu1 %v65_v33  ;;  %153 = vmatpush.msra.mxu2 %v80_v35  ;;  %v173_v1 = vld [vmem:[%s382_s3 + $0x20] sm:$0xff] }
  0x1d   :  { %107 = vmatpush.msra.mxu0 %v48_v36  ;;  %195 = vmatpush.msra.mxu3 %v178_v56  ;;  %v169_v5 = vld [vmem:[%s382_s3] sm:$0xff] }
  0x1e   :  { %130 = vmatpush.msra.mxu1 %v64_v37  ;;  %154 = vmatpush.msra.mxu2 %v79_v39  ;;  %v226_v6 = vld [vmem:[%s381_s2] ss:$0 sm:$0xff] }
  0x1f   :  { %108 = vmatpush.msra.mxu0 %v47_v40  ;;  %196 = vmatpush.msra.mxu3 %v177_v58  ;;  %v227_v21 = vld [vmem:[%s383_s4] ss:$0 sm:$0xff] }
  0x20   :  { %131 = vmatpush.msra.mxu1 %v63_v41  ;;  %155 = vmatpush.msra.mxu2 %v78_v43 }
  0x21   :  { %109 = vmatpush.msra.mxu0 %v46_v44  ;;  %197 = vmatpush.msra.mxu3 %v176_v59 }
  0x22   :  { %132 = vmatpush.msra.mxu1 %v62_v45  ;;  %156 = vmatpush.msra.mxu2 %v77_v47 }
  0x23   :  { %110 = vmatpush.msra.mxu0 %v45_v48  ;;  %198 = vmatpush.msra.mxu3 %v175_v60 }
  0x24   :  { %133 = vmatpush.msra.mxu1 %v61_v49  ;;  %157 = vmatpush.msra.mxu2 %v76_v51 }
  0x25   :  { %111 = vmatpush.msra.mxu0 %v44_v52  ;;  %158 = vmatmul.f32.vlgmr.msra.gmra.mxu2 %v40_v53 }
  0x26   :  { %112 = vmatmul.f32.vlgmr.msra.gmra.mxu0 %v38_v54  ;;  %134 = vmatpush.msra.mxu1 %v60_v55 }
  0x27   :  { %135 = vmatmul.f32.vlgmr.msra.gmra.mxu1 %v39_v57  ;;  %199 = vmatpush.msra.mxu3 %v174_v63 }
  0x29   :  { %200 = vmatpush.msra.mxu3 %v173_v1 }
  0x2b   :  { %201 = vmatpush.msra.mxu3 %v172_v2 }
  0x2d   :  { %161 = vmatmul.f32.gmra.mxu2 %v43_v61  ;;  %202 = vmatpush.msra.mxu3 %v171_v3 }
  0x2e   :  { %115 = vmatmul.f32.gmra.mxu0 %v41_v62 }
  0x2f   :  { %138 = vmatmul.f32.gmra.mxu1 %v42_v0  ;;  %203 = vmatpush.msra.mxu3 %v170_v4 }
  0x31   :  { %204 = vmatpush.msra.mxu3 %v169_v5 }
  0xa3   :  { %v113_v7 = vpop.f32.mrf.mxu0 }
  0xa4   :  { %v114_v8 = vadd.f32 %v226_v6, %v113_v7  ;;  %v136_v9 = vpop.f32.mrf.mxu1 }
  0xa6   :  { %v137_v10 = vadd.f32 %v136_v9, %v114_v8 }
  0xa8   :  { %v159_v11 = vpop.f32.mrf.mxu2 }
  0xa9   :  { %v160_v12 = vadd.f32 %v159_v11, %v137_v10 }
  0xab   :  { %v116_v13 = vpop.f32.mrf.mxu0  ;;  %v165_v14 = vmax.f32 %v160_v12, 0.0 }
  0xac   :  { %v117_v15 = vadd.f32 %v226_v6, %v116_v13  ;;  %v139_v16 = vpop.f32.mrf.mxu1 }
  0xad   :  { %167 = vst [vmem:[%s384_s5] sm:$0xff] %v165_v14  ;;  %205 = vmatmul.f32.vlgmr.msra.gmra.mxu3 %v165_v14 }
  0xae   :  { %v140_v17 = vadd.f32 %v139_v16, %v117_v15 }
  0xb0   :  { %v162_v18 = vpop.f32.mrf.mxu2 }
  0xb1   :  { %v163_v19 = vadd.f32 %v162_v18, %v140_v17 }
  0xb3   :  { %v166_v20 = vmax.f32 %v163_v19, 0.0 }
  0xb5   :  { %168 = vst [vmem:[%s384_s5 + $0x8] sm:$0xff] %v166_v20  ;;  %208 = vmatmul.f32.gmra.mxu3 %v166_v20 }
 0x130   :  { %v206_v22 = vpop.f32.mrf.mxu3 }
 0x131   :  { %v207_v23 = vadd.f32 %v227_v21, %v206_v22 }
 0x133   :  { %212 = vst [vmem:[%s385_s6] sm:$0xff] %v207_v23 }
 0x138   :  { %v209_v24 = vpop.f32.mrf.mxu3 }
 0x139   :  { %v210_v25 = vadd.f32 %v227_v21, %v209_v24 }
 0x13b   :  { %213 = vst [vmem:[%s385_s6 + $0x8] sm:$0xff] %v210_v25 }
 0x13c   :  { %222 = vsyncpa [#allocation3], 1 }

// kernel: xlsr_transducer_forward.5
= control target key start
LH: loop header
LB: loop body
LE: loop exit
PB: predicated region body
PF: predicated region fallthrough
CT: control target
= control target key end

     0   :  { %s603_s15 = smov 0   ;;  %s605_s16 = smov 0   ;;  %s704_s0 = inlined_call_operand.vmem [shape: f32[2,8,128], index: 0, kind: input, shape index: {}]   ;;  %s705_s1 = inlined_call_operand.vmem [shape: f32[2,8,128], index: 1, kind: input, shape index: {}]   ;;  %s706_s2 = inlined_call_operand.vmem [shape: f32[128,128], index: 2, kind: input, shape index: {}]   ;;  %s707_s3 = inlined_call_operand.vmem [shape: f32[1,128], index: 3, kind: input, shape index: {}]   ;;  %s708_s4 = inlined_call_operand.vmem [shape: f32[2,8,8,128], index: 4, kind: output, shape index: {}]  }
   0x1   :  { %s607_s17 = smov 0  }
   0x2 LB: > { %s26_s18 = sadd.s32 1, %s572_s16  ;;  %p457_p0 = scmp.ge.s32.totalorder %s576_s17, 1  ;;  %s576_s17 = sphi %s607_s17, %s14_s17   ;;  %s572_s16 = sphi %s605_s16, %s710_s16   ;;  %s568_s15 = sphi %s603_s15, %s709_s15  }
   0x3   : > { %p28_p1 = scmp.ge.s32.totalorder %s26_s18, 2  ;;  %p189_p2 = scmp.lt.s32.totalorder %s576_s17, 3 }
   0x5   : > { %s712_s18 = smov (%p28_p1, %s26_s18), 0  ;;  %p190_p3 = pnand %p457_p0, %p189_p2 }
   0x6   : > { %p225_p4 = scmp.lt.s32.totalorder (!%p190_p3), %s568_s15, 1 }
   0x7   : > { %193 = sbr.rel (%p190_p3) target bundleno = 188 (0xbc), region = 36 }
   0xc   : > { %v303_v0 = vld [vmem:[%s706_s2 + $0x78] sm:$0xff]  ;;  %v302_v1 = vld [vmem:[%s706_s2 + $0x70] sm:$0xff]  ;;  %v301_v2 = vld [vmem:[%s706_s2 + $0x68] sm:$0xff]  ;;  %s714_s15 = smov (!%p225_p4, %s568_s15), 1 }
   0xd   : > { %466 = vmatpush.msra.mxu2 %v303_v0  ;;  %467 = vmatpush.msra.mxu3 %v303_v0  ;;  %v300_v3 = vld [vmem:[%s706_s2 + $0x60] sm:$0xff]  ;;  %s458_s27 = sshll.u32 %s714_s15, 3  ;;  %v299_v4 = vld [vmem:[%s706_s2 + $0x58] sm:$0xff]  ;;  %v298_v6 = vld [vmem:[%s706_s2 + $0x50] sm:$0xff]  ;;  %s464_s10 = sshll.u32 %s714_s15, 6 }
   0xe   : > { %308 = vmatpush.msra.mxu0 %v303_v0  ;;  %465 = vmatpush.msra.mxu1 %v303_v0  ;;  %s231_s30 = scalar_lea.vmem %s704_s0, %s458_s27  ;;  %v297_v7 = vld [vmem:[%s706_s2 + $0x48] sm:$0xff]  ;;  %v296_v10 = vld [vmem:[%s706_s2 + $0x40] sm:$0xff]  ;;  %s235_s19 = scalar_lea.vmem %s705_s1, %s458_s27  ;;  %v295_v12 = vld [vmem:[%s706_s2 + $0x38] sm:$0xff] }
   0xf   : > { %469 = vmatpush.msra.mxu2 %v302_v1  ;;  %470 = vmatpush.msra.mxu3 %v302_v1  ;;  %v642_v5 = vld [vmem:[%s231_s30] sm:$0xff]  ;;  %v294_v16 = vld [vmem:[%s706_s2 + $0x30] sm:$0xff]  ;;  %v293_v19 = vld [vmem:[%s706_s2 + $0x28] sm:$0xff] }
  0x10   : > { %309 = vmatpush.msra.mxu0 %v302_v1  ;;  %468 = vmatpush.msra.mxu1 %v302_v1  ;;  %v252_v8 = vrot.slane %v642_v5, 4  ;;  %v254_v9 = vrot.slane %v642_v5, 6  ;;  %v250_v11 = vrot.slane %v642_v5, 2  ;;  %v247_v14 = vld [vmem:[%s235_s19] sm:$0xff]  ;;  %v256_v17 = vperm.slane %v642_v5, 0  ;;  %v291_v29 = vld [vmem:[%s706_s2 + $0x18] sm:$0xff]  ;;  %s244_s19 = scalar_lea.vmem %s708_s4, %s464_s10 }
  0x11   : > { %472 = vmatpush.msra.mxu2 %v301_v2  ;;  %473 = vmatpush.msra.mxu3 %v301_v2  ;;  %v253_v21 = vrot.slane %v642_v5, 5  ;;  %v255_v23 = vrot.slane %v642_v5, 7  ;;  %v292_v24 = vld [vmem:[%s706_s2 + $0x20] sm:$0xff]  ;;  %v249_v26 = vrot.slane %v642_v5, 1  ;;  %v251_v28 = vrot.slane %v642_v5, 3  ;;  %v290_v32 = vld [vmem:[%s706_s2 + $0x10] sm:$0xff] }
  0x12   : > { %310 = vmatpush.msra.mxu0 %v301_v2  ;;  %471 = vmatpush.msra.mxu1 %v301_v2  ;;  %v260_v13 = vperm.slane %v252_v8, 0  ;;  %v262_v15 = vperm.slane %v254_v9, 0  ;;  %v258_v18 = vperm.slane %v250_v11, 0  ;;  %v272_v25 = vadd.f32 %v256_v17, %v247_v14  ;;  %v289_v35 = vld [vmem:[%s706_s2 + $0x8] sm:$0xff]  ;;  %v288_v39 = vld [vmem:[%s706_s2] sm:$0xff] }
  0x13   : > { %475 = vmatpush.msra.mxu2 %v300_v3  ;;  %476 = vmatpush.msra.mxu3 %v300_v3  ;;  %v261_v30 = vperm.slane %v253_v21, 0  ;;  %v263_v31 = vperm.slane %v255_v23, 0  ;;  %v257_v33 = vperm.slane %v249_v26, 0  ;;  %v259_v34 = vperm.slane %v251_v28, 0  ;;  %v537_v49 = vld [vmem:[%s707_s3] ss:$0 sm:$0xff] }
  0x14   : > { %311 = vmatpush.msra.mxu0 %v300_v3  ;;  %474 = vmatpush.msra.mxu1 %v300_v3  ;;  %v276_v20 = vadd.f32 %v260_v13, %v247_v14  ;;  %v278_v22 = vadd.f32 %v262_v15, %v247_v14  ;;  %v274_v27 = vadd.f32 %v258_v18, %v247_v14 }
  0x15   : > { %478 = vmatpush.msra.mxu2 %v299_v4  ;;  %479 = vmatpush.msra.mxu3 %v299_v4  ;;  %v277_v36 = vadd.f32 %v261_v30, %v247_v14  ;;  %v279_v37 = vadd.f32 %v263_v31, %v247_v14  ;;  %v273_v40 = vadd.f32 %v257_v33, %v247_v14 }
  0x16   : > { %312 = vmatpush.msra.mxu0 %v299_v4  ;;  %477 = vmatpush.msra.mxu1 %v299_v4  ;;  %538 = vtanh.f32 %v276_v20  ;;  %v275_v42 = vadd.f32 %v259_v34, %v247_v14 }
  0x17   : > { %481 = vmatpush.msra.mxu2 %v298_v6  ;;  %482 = vmatpush.msra.mxu3 %v298_v6  ;;  %540 = vtanh.f32 %v278_v22 }
  0x18   : > { %313 = vmatpush.msra.mxu0 %v298_v6  ;;  %480 = vmatpush.msra.mxu1 %v298_v6  ;;  %542 = vtanh.f32 %v272_v25 }
  0x19   : > { %484 = vmatpush.msra.mxu2 %v297_v7  ;;  %485 = vmatpush.msra.mxu3 %v297_v7  ;;  %544 = vtanh.f32 %v274_v27 }
  0x1a   : > { %314 = vmatpush.msra.mxu0 %v297_v7  ;;  %483 = vmatpush.msra.mxu1 %v297_v7  ;;  %546 = vtanh.f32 %v277_v36 }
  0x1b   : > { %487 = vmatpush.msra.mxu2 %v296_v10  ;;  %488 = vmatpush.msra.mxu3 %v296_v10  ;;  %548 = vtanh.f32 %v279_v37 }
  0x1c   : > { %315 = vmatpush.msra.mxu0 %v296_v10  ;;  %486 = vmatpush.msra.mxu1 %v296_v10  ;;  %v539_v38 = vpop.eup %538  ;;  %550 = vtanh.f32 %v273_v40 }
  0x1d   : > { %490 = vmatpush.msra.mxu2 %v295_v12  ;;  %491 = vmatpush.msra.mxu3 %v295_v12  ;;  %v541_v41 = vpop.eup %540  ;;  %552 = vtanh.f32 %v275_v42 }
  0x1e   : > { %316 = vmatpush.msra.mxu0 %v295_v12  ;;  %489 = vmatpush.msra.mxu1 %v295_v12  ;;  %v543_v43 = vpop.eup %542 }
  0x1f   : > { %493 = vmatpush.msra.mxu2 %v294_v16  ;;  %494 = vmatpush.msra.mxu3 %v294_v16  ;;  %v545_v44 = vpop.eup %544 }
  0x20   : > { %317 = vmatpush.msra.mxu0 %v294_v16  ;;  %492 = vmatpush.msra.mxu1 %v294_v16  ;;  %v547_v45 = vpop.eup %546 }
  0x21   : > { %496 = vmatpush.msra.mxu2 %v293_v19  ;;  %497 = vmatpush.msra.mxu3 %v293_v19  ;;  %v549_v46 = vpop.eup %548 }
  0x22   : > { %318 = vmatpush.msra.mxu0 %v293_v19  ;;  %495 = vmatpush.msra.mxu1 %v293_v19  ;;  %v551_v47 = vpop.eup %550 }
  0x23   : > { %499 = vmatpush.msra.mxu2 %v292_v24  ;;  %500 = vmatpush.msra.mxu3 %v292_v24  ;;  %v553_v48 = vpop.eup %552 }
  0x24   : > { %319 = vmatpush.msra.mxu0 %v292_v24  ;;  %498 = vmatpush.msra.mxu1 %v292_v24 }
  0x25   : > { %502 = vmatpush.msra.mxu2 %v291_v29  ;;  %503 = vmatpush.msra.mxu3 %v291_v29 }
  0x26   : > { %320 = vmatpush.msra.mxu0 %v291_v29  ;;  %501 = vmatpush.msra.mxu1 %v291_v29 }
  0x27   : > { %505 = vmatpush.msra.mxu2 %v290_v32  ;;  %506 = vmatpush.msra.mxu3 %v290_v32 }
  0x28   : > { %321 = vmatpush.msra.mxu0 %v290_v32  ;;  %504 = vmatpush.msra.mxu1 %v290_v32 }
  0x29   : > { %508 = vmatpush.msra.mxu2 %v289_v35  ;;  %509 = vmatpush.msra.mxu3 %v289_v35 }
  0x2a   : > { %322 = vmatpush.msra.mxu0 %v289_v35  ;;  %507 = vmatpush.msra.mxu1 %v289_v35 }
  0x2b   : > { %511 = vmatpush.msra.mxu2 %v288_v39  ;;  %512 = vmatpush.msra.mxu3 %v288_v39 }
  0x2c   : > { %336 = vmatmul.f32.vlgmr.msra.gmra.mxu2 %v539_v38  ;;  %342 = vmatmul.f32.vlgmr.msra.gmra.mxu3 %v541_v41 }
  0x2d   : > { %323 = vmatpush.msra.mxu0 %v288_v39  ;;  %510 = vmatpush.msra.mxu1 %v288_v39 }
  0x2e   : > { %324 = vmatmul.f32.vlgmr.msra.gmra.mxu0 %v543_v43  ;;  %330 = vmatmul.f32.vlgmr.msra.gmra.mxu1 %v545_v44 }
  0x34   : > { %339 = vmatmul.f32.gmra.mxu2 %v547_v45  ;;  %345 = vmatmul.f32.gmra.mxu3 %v549_v46 }
  0x36   : > { %327 = vmatmul.f32.gmra.mxu0 %v551_v47  ;;  %333 = vmatmul.f32.gmra.mxu1 %v553_v48 }
  0xab   : > { %v325_v50 = vpop.f32.mrf.mxu0  ;;  %v331_v51 = vpop.f32.mrf.mxu1 }
  0xac   : > { %v326_v52 = vadd.f32 %v537_v49, %v325_v50  ;;  %v332_v53 = vadd.f32 %v537_v49, %v331_v51 }
  0xae   : > { %349 = vst [vmem:[%s244_s19] sm:$0xff] %v326_v52 }
  0xaf   : > { %351 = vst [vmem:[%s244_s19 + $0x10] sm:$0xff] %v332_v53  ;;  %v337_v54 = vpop.f32.mrf.mxu2  ;;  %v343_v55 = vpop.f32.mrf.mxu3 }
  0xb0   : > { %v338_v56 = vadd.f32 %v537_v49, %v337_v54  ;;  %v344_v57 = vadd.f32 %v537_v49, %v343_v55 }
  0xb2   : > { %353 = vst [vmem:[%s244_s19 + $0x20] sm:$0xff] %v338_v56 }
  0xb3   : > { %355 = vst [vmem:[%s244_s19 + $0x30] sm:$0xff] %v344_v57  ;;  %v328_v58 = vpop.f32.mrf.mxu0  ;;  %v334_v59 = vpop.f32.mrf.mxu1 }
  0xb4   : > { %v329_v60 = vadd.f32 %v537_v49, %v328_v58  ;;  %v335_v61 = vadd.f32 %v537_v49, %v334_v59 }
  0xb6   : > { %350 = vst [vmem:[%s244_s19 + $0x8] sm:$0xff] %v329_v60 }
  0xb7   : > { %352 = vst [vmem:[%s244_s19 + $0x18] sm:$0xff] %v335_v61  ;;  %v340_v62 = vpop.f32.mrf.mxu2  ;;  %v346_v63 = vpop.f32.mrf.mxu3 }
  0xb8   : > { %v341_v0 = vadd.f32 %v537_v49, %v340_v62  ;;  %v347_v1 = vadd.f32 %v537_v49, %v346_v63 }
  0xba   : > { %354 = vst [vmem:[%s244_s19 + $0x28] sm:$0xff] %v341_v0 }
  0xbb   : > { %356 = vst [vmem:[%s244_s19 + $0x38] sm:$0xff] %v347_v1 }
  0xbc PF: > { %s14_s17 = sadd.s32 1, %s576_s17   ;;  %s709_s15 = smov %s572_s16 }
  0xbd   : > { %p11_p5 = scmp.ge.s32.totalorder %s14_s17, 4   ;;  %s710_s16 = smov %s712_s18 }
  0xbf   :  { %13 = sbr.rel (!%p11_p5) target bundleno = 2 (0x2), region = 69 }

// kernel: xlsr_transducer_forward.4
= control target key start
LH: loop header
LB: loop body
LE: loop exit
PB: predicated region body
PF: predicated region fallthrough
CT: control target
= control target key end

     0   :  { %13 = vsyncpa [#allocation4], 0  ;;  %s3701_s0 = inlined_call_operand.vmem [shape: f32[8,2,128], index: 0, kind: input, shape index: {}]   ;;  %s3702_s1 = inlined_call_operand.hbm [shape: f32[128,512], index: 1, kind: input, shape index: {}]   ;;  %s3703_s2 = inlined_call_operand.hbm [shape: f32[128,512], index: 2, kind: input, shape index: {}]   ;;  %s3704_s3 = inlined_call_operand.vmem [shape: f32[1,512], index: 3, kind: input, shape index: {}]   ;;  %s3705_s4 = inlined_call_operand.hbm [shape: f32[128,128], index: 4, kind: input, shape index: {}]   ;;  %s3706_s5 = inlined_call_operand.vmem [shape: f32[1,128], index: 5, kind: input, shape index: {}]   ;;  %s3707_s6 = inlined_call_operand.hbm [shape: f32[128,128], index: 6, kind: input, shape index: {}]   ;;  %s3708_s7 = inlined_call_operand.vmem [shape: f32[1,128], index: 7, kind: input, shape index: {}]   ;;  %s3709_s8 = inlined_call_operand.vmem [shape: f32[8,2,128], index: 8, kind: output, shape index: {}]  }
   0x1   :  { %14 = vsyncpa [#allocation6], 0 }
   0x2   :  { %15 = vsyncpa [#allocation9], 0  ;;  %s35_s29 = sshll.u32 %s3703_s2, 4  ;;  %s2519_s30 = smov [#allocation5]   ;;  %s36_s29 = int_to_ptr.hbm [resolvable:$true] %s35_s29 }
   0x3   :  { %s37_s9 = sshll.u32 %s2519_s30, 4  ;;  %s22_s12 = sshll.u32 %s3702_s1, 4  ;;  %s38_s9 = int_to_ptr.vmem [resolvable:$true] %s37_s9  ;;  %s23_s12 = int_to_ptr.hbm [resolvable:$true] %s22_s12 }
   0x4   :  { %s2520_s13 = smov 512   ;;  %s2521_s14 = smov 32  }
   0x5   :  { %43 = dma.hbm_to_vmem [thread:$0]  %s36_s29, 8192, %s38_s9, [#allocation6], %s2520_s13, %s2520_s13, %s2521_s14  }
   0x6   :  { %s2522_s15 = smov [#allocation3]   ;;  %s50_s19 = sshll.u32 %s3705_s4, 4  ;;  %s51_s19 = int_to_ptr.hbm [resolvable:$true] %s50_s19 }
   0x7   :  { %s24_s16 = sshll.u32 %s2522_s15, 4  ;;  %s2523_s2 = smov [#allocation7]   ;;  %s25_s16 = int_to_ptr.vmem [resolvable:$true] %s24_s16 }
   0x8   :  { %30 = dma.hbm_to_vmem [thread:$0]  %s23_s12, 8192, %s25_s16, [#allocation4], %s2520_s13, %s2520_s13, %s2521_s14  }
   0x9   :  { %s52_s20 = sshll.u32 %s2523_s2, 4  ;;  %s65_s1 = sshll.u32 %s3707_s6, 4  ;;  %s53_s20 = int_to_ptr.vmem [resolvable:$true] %s52_s20  ;;  %s66_s1 = int_to_ptr.hbm [resolvable:$true] %s65_s1 }
   0xa   :  { %s2524_s23 = smov 128   ;;  %s2525_s24 = smov 8  }
   0xb   :  { %58 = dma.hbm_to_vmem [thread:$0]  %s51_s19, 2048, %s53_s20, [#allocation6], %s2524_s23, %s2524_s23, %s2525_s24  }
   0xc   :  { %s2526_s25 = smov [#allocation8]  }
   0xd   :  { %s67_s26 = sshll.u32 %s2526_s25, 4  ;;  %s68_s26 = int_to_ptr.vmem [resolvable:$true] %s67_s26 }
   0xe   :  { %73 = dma.hbm_to_vmem [thread:$0]  %s66_s1, 2048, %s68_s26, [#allocation9], %s2524_s23, %s2524_s23, %s2525_s24  }
   0xf   :  { %2513 = dma.done.wait [#allocation4], 8192  }
  0x10   :  { %2514 = vsyncadd [#allocation4], 4294959104 }
  0x11   :  { %2515 = dma.done.wait [#allocation6], 10240  }
  0x12   :  { %2516 = vsyncadd [#allocation6], 4294957056 }
  0x13   :  { %2517 = dma.done.wait [#allocation9], 2048  }
  0x14   :  { %2518 = vsyncadd [#allocation9], 4294965248  ;;  %v160_v0 = vld [vmem:[#allocation3 + $0x1e0] sm:$0xff]  ;;  %v161_v1 = vld [vmem:[#allocation3 + $0x1e8] sm:$0xff] }
  0x15   :  { %v156_v2 = vld [vmem:[#allocation3 + $0x1c0] sm:$0xff]  ;;  %201 = vmatpush.msra.mxu2 %v160_v0  ;;  %224 = vmatpush.msra.mxu3 %v161_v1  ;;  %v157_v3 = vld [vmem:[#allocation3 + $0x1c8] sm:$0xff]  ;;  %v162_v55 = vld [vmem:[#allocation3 + $0x1f0] sm:$0xff] }
  0x16   :  { %v152_v4 = vld [vmem:[#allocation3 + $0x1a0] sm:$0xff]  ;;  %v153_v5 = vld [vmem:[#allocation3 + $0x1a8] sm:$0xff]  ;;  %v163_v56 = vld [vmem:[#allocation3 + $0x1f8] sm:$0xff] }
  0x17   :  { %202 = vmatpush.msra.mxu2 %v156_v2  ;;  %225 = vmatpush.msra.mxu3 %v157_v3  ;;  %v148_v6 = vld [vmem:[#allocation3 + $0x180] sm:$0xff]  ;;  %v149_v7 = vld [vmem:[#allocation3 + $0x188] sm:$0xff]  ;;  %v158_v59 = vld [vmem:[#allocation3 + $0x1d0] sm:$0xff] }
  0x18   :  { %v144_v8 = vld [vmem:[#allocation3 + $0x160] sm:$0xff]  ;;  %v145_v9 = vld [vmem:[#allocation3 + $0x168] sm:$0xff]  ;;  %v159_v60 = vld [vmem:[#allocation3 + $0x1d8] sm:$0xff] }
  0x19   :  { %203 = vmatpush.msra.mxu2 %v152_v4  ;;  %226 = vmatpush.msra.mxu3 %v153_v5  ;;  %v140_v10 = vld [vmem:[#allocation3 + $0x140] sm:$0xff]  ;;  %v141_v11 = vld [vmem:[#allocation3 + $0x148] sm:$0xff]  ;;  %v154_v61 = vld [vmem:[#allocation3 + $0x1b0] sm:$0xff] }
  0x1a   :  { %v2585_v12 = vld [vmem:[#allocation5 + $0x1e8] sm:$0xff]  ;;  %v136_v14 = vld [vmem:[#allocation3 + $0x120] sm:$0xff]  ;;  %v155_v63 = vld [vmem:[#allocation3 + $0x1b8] sm:$0xff] }
  0x1b   :  { %204 = vmatpush.msra.mxu2 %v148_v6  ;;  %227 = vmatpush.msra.mxu3 %v149_v7  ;;  %v2587_v13 = vld [vmem:[#allocation5 + $0x1c8] sm:$0xff]  ;;  %v132_v17 = vld [vmem:[#allocation3 + $0x100] sm:$0xff]  ;;  %v150_v0 = vld [vmem:[#allocation3 + $0x190] sm:$0xff] }
  0x1c   :  { %v137_v15 = vld [vmem:[#allocation3 + $0x128] sm:$0xff]  ;;  %377 = vmatpush.msra.mxu1 %v2585_v12  ;;  %v128_v20 = vld [vmem:[#allocation3 + $0xe0] sm:$0xff]  ;;  %v151_v1 = vld [vmem:[#allocation3 + $0x198] sm:$0xff] }
  0x1d   :  { %205 = vmatpush.msra.mxu2 %v144_v8  ;;  %228 = vmatpush.msra.mxu3 %v145_v9  ;;  %v2590_v16 = vld [vmem:[#allocation5 + $0x1a8] sm:$0xff]  ;;  %v2596_v22 = vld [vmem:[#allocation5 + $0x1e0] sm:$0xff]  ;;  %v146_v5 = vld [vmem:[#allocation3 + $0x170] sm:$0xff] }
  0x1e   :  { %v133_v18 = vld [vmem:[#allocation3 + $0x108] sm:$0xff]  ;;  %378 = vmatpush.msra.mxu1 %v2587_v13  ;;  %v2600_v24 = vld [vmem:[#allocation5 + $0x1c0] sm:$0xff]  ;;  %357 = vmatpush.msra.mxu0 %v2596_v22  ;;  %v147_v6 = vld [vmem:[#allocation3 + $0x178] sm:$0xff] }
  0x1f   :  { %206 = vmatpush.msra.mxu2 %v140_v10  ;;  %229 = vmatpush.msra.mxu3 %v141_v11  ;;  %v2593_v19 = vld [vmem:[#allocation5 + $0x188] sm:$0xff]  ;;  %v124_v25 = vld [vmem:[#allocation3 + $0xc0] sm:$0xff]  ;;  %v96_v9 = vld [vmem:[%s3701_s0 + $0x8] sm:$0x3] }
  0x20   :  { %v129_v21 = vld [vmem:[#allocation3 + $0xe8] sm:$0xff]  ;;  %379 = vmatpush.msra.mxu1 %v2590_v16  ;;  %v2606_v28 = vld [vmem:[#allocation5 + $0x1a0] sm:$0xff]  ;;  %358 = vmatpush.msra.mxu0 %v2600_v24  ;;  %v97_v10 = vld [vmem:[%s3701_s0 + $0xa] sm:$0x3]  ;;  %190 = vst [vmem:[#allocation1 + $0x20] ss:$4 sm:$0xff] %v96_v9 }
  0x21   :  { %207 = vmatpush.msra.mxu2 %v136_v14  ;;  %230 = vmatpush.msra.mxu3 %v137_v15  ;;  %v2598_v23 = vld [vmem:[#allocation5 + $0x168] sm:$0xff]  ;;  %v120_v29 = vld [vmem:[#allocation3 + $0xa0] sm:$0xff]  ;;  %v98_v11 = vld [vmem:[%s3701_s0 + $0xc] sm:$0x3]  ;;  %192 = vst [vmem:[#allocation1 + $0x21] ss:$4 sm:$0xff] %v97_v10 }
  0x22   :  { %v125_v26 = vld [vmem:[#allocation3 + $0xc8] sm:$0xff]  ;;  %380 = vmatpush.msra.mxu1 %v2593_v19  ;;  %v2612_v32 = vld [vmem:[#allocation5 + $0x180] sm:$0xff]  ;;  %359 = vmatpush.msra.mxu0 %v2606_v28  ;;  %v99_v14 = vld [vmem:[%s3701_s0 + $0xe] sm:$0x3]  ;;  %194 = vst [vmem:[#allocation1 + $0x22] ss:$4 sm:$0xff] %v98_v11 }
  0x23   :  { %208 = vmatpush.msra.mxu2 %v132_v17  ;;  %231 = vmatpush.msra.mxu3 %v133_v18  ;;  %v2604_v27 = vld [vmem:[#allocation5 + $0x148] sm:$0xff]  ;;  %v116_v33 = vld [vmem:[#allocation3 + $0x80] sm:$0xff]  ;;  %v142_v18 = vld [vmem:[#allocation3 + $0x150] sm:$0xff]  ;;  %196 = vst [vmem:[#allocation1 + $0x23] ss:$4 sm:$0xff] %v99_v14 }
  0x24   :  { %v121_v30 = vld [vmem:[#allocation3 + $0xa8] sm:$0xff]  ;;  %381 = vmatpush.msra.mxu1 %v2598_v23  ;;  %v112_v35 = vld [vmem:[#allocation3 + $0x60] sm:$0xff]  ;;  %360 = vmatpush.msra.mxu0 %v2612_v32  ;;  %v2762_v9 = vld [vmem:[#allocation5 + $0x158] sm:$0xff] }
  0x25   :  { %209 = vmatpush.msra.mxu2 %v128_v20  ;;  %232 = vmatpush.msra.mxu3 %v129_v21  ;;  %v2610_v31 = vld [vmem:[#allocation5 + $0x128] sm:$0xff]  ;;  %v2618_v37 = vld [vmem:[#allocation5 + $0x160] sm:$0xff]  ;;  %v143_v20 = vld [vmem:[#allocation3 + $0x158] sm:$0xff] }
  0x26   :  { %v117_v34 = vld [vmem:[#allocation3 + $0x88] sm:$0xff]  ;;  %382 = vmatpush.msra.mxu1 %v2604_v27  ;;  %v2624_v40 = vld [vmem:[#allocation5 + $0x140] sm:$0xff]  ;;  %361 = vmatpush.msra.mxu0 %v2618_v37  ;;  %v138_v21 = vld [vmem:[#allocation3 + $0x130] sm:$0xff] }
  0x27   :  { %210 = vmatpush.msra.mxu2 %v124_v25  ;;  %233 = vmatpush.msra.mxu3 %v125_v26  ;;  %v2616_v36 = vld [vmem:[#allocation5 + $0x108] sm:$0xff]  ;;  %v108_v44 = vld [vmem:[#allocation3 + $0x40] sm:$0xff]  ;;  %v139_v25 = vld [vmem:[#allocation3 + $0x138] sm:$0xff] }
  0x28   :  { %v113_v38 = vld [vmem:[#allocation3 + $0x68] sm:$0xff]  ;;  %383 = vmatpush.msra.mxu1 %v2610_v31  ;;  %v2642_v48 = vld [vmem:[#allocation5 + $0x120] sm:$0xff]  ;;  %362 = vmatpush.msra.mxu0 %v2624_v40  ;;  %v2770_v10 = vld [vmem:[#allocation5 + $0x138] sm:$0xff] }
  0x29   :  { %211 = vmatpush.msra.mxu2 %v120_v29  ;;  %234 = vmatpush.msra.mxu3 %v121_v30  ;;  %v2622_v39 = vld [vmem:[#allocation5 + $0xe8] sm:$0xff]  ;;  %v104_v49 = vld [vmem:[#allocation3 + $0x20] sm:$0xff]  ;;  %v134_v29 = vld [vmem:[#allocation3 + $0x110] sm:$0xff] }
  0x2a   :  { %v92_v41 = vld [vmem:[%s3701_s0] sm:$0x3]  ;;  %v93_v42 = vld [vmem:[%s3701_s0 + $0x2] sm:$0x3]  ;;  %v94_v43 = vld [vmem:[%s3701_s0 + $0x4] sm:$0x3]  ;;  %384 = vmatpush.msra.mxu1 %v2616_v36  ;;  %363 = vmatpush.msra.mxu0 %v2642_v48 }
  0x2b   :  { %212 = vmatpush.msra.mxu2 %v116_v33  ;;  %235 = vmatpush.msra.mxu3 %v117_v34  ;;  %v109_v45 = vld [vmem:[#allocation3 + $0x48] sm:$0xff]  ;;  %182 = vst [vmem:[#allocation1] ss:$4 sm:$0xff] %v92_v41  ;;  %v2648_v52 = vld [vmem:[#allocation5 + $0x100] sm:$0xff]  ;;  %v135_v30 = vld [vmem:[#allocation3 + $0x118] sm:$0xff]  ;;  %v2527_v33 = vmov 0.0  }
  0x2c   :  { %v95_v46 = vld [vmem:[%s3701_s0 + $0x6] sm:$0x3]  ;;  %184 = vst [vmem:[#allocation1 + $0x1] ss:$4 sm:$0xff] %v93_v42  ;;  %385 = vmatpush.msra.mxu1 %v2622_v39  ;;  %v100_v53 = vld [vmem:[#allocation3] sm:$0xff]  ;;  %364 = vmatpush.msra.mxu0 %v2648_v52  ;;  %v126_v42 = vld [vmem:[#allocation3 + $0xd0] sm:$0xff] }
  0x2d   :  { %213 = vmatpush.msra.mxu2 %v112_v35  ;;  %236 = vmatpush.msra.mxu3 %v113_v38  ;;  %v2640_v47 = vld [vmem:[#allocation5 + $0xc8] sm:$0xff]  ;;  %186 = vst [vmem:[#allocation1 + $0x2] ss:$4 sm:$0xff] %v94_v43  ;;  %v2656_v58 = vld [vmem:[#allocation5 + $0xe0] sm:$0xff]  ;;  %v130_v35 = vld [vmem:[#allocation3 + $0xf0] sm:$0xff] }
  0x2e   :  { %v105_v50 = vld [vmem:[#allocation3 + $0x28] sm:$0xff]  ;;  %188 = vst [vmem:[#allocation1 + $0x3] ss:$4 sm:$0xff] %v95_v46  ;;  %386 = vmatpush.msra.mxu1 %v2640_v47  ;;  %365 = vmatpush.msra.mxu0 %v2656_v58  ;;  %v2666_v4 = vld [vmem:[#allocation5 + $0xc0] sm:$0xff]  ;;  %v131_v38 = vld [vmem:[#allocation3 + $0xf8] sm:$0xff] }
  0x2f   :  { %214 = vmatpush.msra.mxu2 %v108_v44  ;;  %237 = vmatpush.msra.mxu3 %v109_v45  ;;  %v2646_v51 = vld [vmem:[#allocation5 + $0xa8] sm:$0xff]  ;;  %v2672_v8 = vld [vmem:[#allocation5 + $0xa0] sm:$0xff]  ;;  %v127_v43 = vld [vmem:[#allocation3 + $0xd8] sm:$0xff] }
  0x30   :  { %v101_v54 = vld [vmem:[#allocation3 + $0x8] sm:$0xff]  ;;  %387 = vmatpush.msra.mxu1 %v2646_v51  ;;  %366 = vmatpush.msra.mxu0 %v2666_v4  ;;  %v2690_v17 = vld [vmem:[#allocation5 + $0x80] sm:$0xff]  ;;  %v122_v46 = vld [vmem:[#allocation3 + $0xb0] sm:$0xff] }
  0x31   :  { %215 = vmatpush.msra.mxu2 %v104_v49  ;;  %238 = vmatpush.msra.mxu3 %v105_v50  ;;  %v2653_v57 = vld [vmem:[#allocation5 + $0x88] sm:$0xff]  ;;  %v2696_v26 = vld [vmem:[#allocation5 + $0x60] sm:$0xff]  ;;  %v123_v49 = vld [vmem:[#allocation3 + $0xb8] sm:$0xff] }
  0x32   :  { %v2658_v62 = vld [vmem:[#allocation5 + $0x68] sm:$0xff]  ;;  %388 = vmatpush.msra.mxu1 %v2653_v57  ;;  %367 = vmatpush.msra.mxu0 %v2672_v8  ;;  %v2700_v34 = vld [vmem:[#allocation5 + $0x40] sm:$0xff]  ;;  %v119_v50 = vld [vmem:[#allocation3 + $0x98] sm:$0xff] }
  0x33   :  { %216 = vmatpush.msra.mxu2 %v100_v53  ;;  %239 = vmatpush.msra.mxu3 %v101_v54  ;;  %v2664_v3 = vld [vmem:[#allocation5 + $0x48] sm:$0xff]  ;;  %v2704_v41 = vld [vmem:[#allocation5 + $0x20] sm:$0xff]  ;;  %v115_v53 = vld [vmem:[#allocation3 + $0x78] sm:$0xff] }
  0x34   :  { %389 = vmatpush.msra.mxu1 %v2658_v62  ;;  %v2670_v7 = vld [vmem:[#allocation5 + $0x28] sm:$0xff]  ;;  %368 = vmatpush.msra.mxu0 %v2690_v17  ;;  %v2710_v45 = vld [vmem:[#allocation5] sm:$0xff]  ;;  %v110_v54 = vld [vmem:[#allocation3 + $0x50] sm:$0xff] }
  0x35   :  { %247 = vmatpush.msrb.mxu2 %v162_v55  ;;  %270 = vmatpush.msrb.mxu3 %v163_v56  ;;  %v2662_v2 = vld.sshfl [vmem:[#allocation1] sm:$0xff pattern:$0x73625140]  ;;  %v111_v55 = vld [vmem:[#allocation3 + $0x58] sm:$0xff]  ;;  %v106_v56 = vld [vmem:[#allocation3 + $0x30] sm:$0xff] }
  0x36   :  { %240 = vmatmul.f32.vlgmr.msra.gmra.mxu3 %v2662_v2  ;;  %390 = vmatpush.msra.mxu1 %v2664_v3  ;;  %v2688_v15 = vld [vmem:[#allocation5 + $0x8] sm:$0xff]  ;;  %v2778_v11 = vld [vmem:[#allocation5 + $0x118] sm:$0xff] }
  0x37   :  { %248 = vmatpush.msrb.mxu2 %v158_v59  ;;  %271 = vmatpush.msrb.mxu3 %v159_v60  ;;  %v2707_v44 = vld.sshfl [vmem:[#allocation1 + $0x20] sm:$0xff pattern:$0x73625140]  ;;  %v107_v59 = vld [vmem:[#allocation3 + $0x38] sm:$0xff]  ;;  %v102_v60 = vld [vmem:[#allocation3 + $0x10] sm:$0xff] }
  0x38   :  { %391 = vmatpush.msra.mxu1 %v2670_v7  ;;  %217 = vmatmul.f32.vlgmr.msra.gmra.mxu2 %v2662_v2  ;;  %v2786_v14 = vld [vmem:[#allocation5 + $0xf8] sm:$0xff] }
  0x39   :  { %249 = vmatpush.msrb.mxu2 %v154_v61  ;;  %272 = vmatpush.msrb.mxu3 %v155_v63  ;;  %v2724_v61 = vld [vmem:[#allocation5 + $0x1f0] sm:$0xff]  ;;  %v2732_v63 = vld [vmem:[#allocation5 + $0x1d8] sm:$0xff] }
  0x3a   :  { %392 = vmatpush.msra.mxu1 %v2688_v15  ;;  %369 = vmatpush.msra.mxu0 %v2696_v26 }
  0x3b   :  { %250 = vmatpush.msrb.mxu2 %v150_v0  ;;  %273 = vmatpush.msrb.mxu3 %v151_v1  ;;  %v2738_v0 = vld [vmem:[#allocation5 + $0x1b8] sm:$0xff] }
  0x3c   :  { %393 = vmatmul.f32.vlgmr.msra.gmra.mxu1 %v2527_v33  ;;  %370 = vmatpush.msra.mxu0 %v2700_v34  ;;  %v2746_v1 = vld [vmem:[#allocation5 + $0x198] sm:$0xff] }
  0x3d   :  { %251 = vmatpush.msrb.mxu2 %v146_v5  ;;  %274 = vmatpush.msrb.mxu3 %v147_v6  ;;  %v2752_v5 = vld [vmem:[#allocation5 + $0x170] sm:$0xff]  ;;  %v2754_v6 = vld [vmem:[#allocation5 + $0x178] sm:$0xff] }
  0x3e   :  { %589 = vmatpush.msrb.mxu1 %v2585_v12  ;;  %371 = vmatpush.msra.mxu0 %v2704_v41  ;;  %v118_v12 = vld [vmem:[#allocation3 + $0x90] sm:$0xff] }
  0x3f   :  { %252 = vmatpush.msrb.mxu2 %v142_v18  ;;  %275 = vmatpush.msrb.mxu3 %v143_v20  ;;  %v2792_v18 = vld [vmem:[#allocation5 + $0xd0] sm:$0xff]  ;;  %v2794_v20 = vld [vmem:[#allocation5 + $0xd8] sm:$0xff] }
  0x40   :  { %590 = vmatpush.msrb.mxu1 %v2587_v13  ;;  %243 = vmatmul.f32.gmra.mxu3 %v2707_v44  ;;  %v114_v13 = vld [vmem:[#allocation3 + $0x70] sm:$0xff] }
  0x41   :  { %253 = vmatpush.msrb.mxu2 %v138_v21  ;;  %276 = vmatpush.msrb.mxu3 %v139_v25  ;;  %v2802_v21 = vld [vmem:[#allocation5 + $0xb8] sm:$0xff] }
  0x42   :  { %372 = vmatpush.msra.mxu0 %v2710_v45  ;;  %220 = vmatmul.f32.gmra.mxu2 %v2707_v44  ;;  %v2810_v25 = vld [vmem:[#allocation5 + $0x98] sm:$0xff] }
  0x43   :  { %254 = vmatpush.msrb.mxu2 %v134_v29  ;;  %277 = vmatpush.msrb.mxu3 %v135_v30  ;;  %v2816_v29 = vld [vmem:[#allocation5 + $0x70] sm:$0xff]  ;;  %v2818_v30 = vld [vmem:[#allocation5 + $0x78] sm:$0xff] }
  0x44   :  { %373 = vmatmul.f32.vlgmr.msra.gmra.mxu0 %v2527_v33  ;;  %591 = vmatpush.msrb.mxu1 %v2590_v16  ;;  %v103_v16 = vld [vmem:[#allocation3 + $0x18] sm:$0xff] }
  0x45   :  { %255 = vmatpush.msrb.mxu2 %v130_v35  ;;  %278 = vmatpush.msrb.mxu3 %v131_v38  ;;  %v2824_v35 = vld [vmem:[#allocation5 + $0x50] sm:$0xff]  ;;  %v2826_v38 = vld [vmem:[#allocation5 + $0x58] sm:$0xff] }
  0x46   :  { %569 = vmatpush.msrb.mxu0 %v2596_v22  ;;  %592 = vmatpush.msrb.mxu1 %v2593_v19  ;;  %v2726_v19 = vld [vmem:[#allocation5 + $0x1f8] sm:$0xff] }
  0x47   :  { %256 = vmatpush.msrb.mxu2 %v126_v42  ;;  %279 = vmatpush.msrb.mxu3 %v127_v43  ;;  %v2831_v42 = vld [vmem:[#allocation5 + $0x30] sm:$0xff]  ;;  %v2833_v43 = vld [vmem:[#allocation5 + $0x38] sm:$0xff] }
  0x48   :  { %570 = vmatpush.msrb.mxu0 %v2600_v24  ;;  %593 = vmatpush.msrb.mxu1 %v2598_v23  ;;  %v2730_v23 = vld [vmem:[#allocation5 + $0x1d0] sm:$0xff] }
  0x49   :  { %257 = vmatpush.msrb.mxu2 %v122_v46  ;;  %280 = vmatpush.msrb.mxu3 %v123_v49  ;;  %v2840_v46 = vld [vmem:[#allocation5 + $0x18] sm:$0xff] }
  0x4a   :  { %571 = vmatpush.msrb.mxu0 %v2606_v28  ;;  %594 = vmatpush.msrb.mxu1 %v2604_v27  ;;  %v2736_v27 = vld [vmem:[#allocation5 + $0x1b0] sm:$0xff] }
  0x4b   :  { %258 = vmatpush.msrb.mxu2 %v118_v12  ;;  %281 = vmatpush.msrb.mxu3 %v119_v50 }
  0x4c   :  { %572 = vmatpush.msrb.mxu0 %v2612_v32  ;;  %595 = vmatpush.msrb.mxu1 %v2610_v31  ;;  %v2744_v31 = vld [vmem:[#allocation5 + $0x190] sm:$0xff] }
  0x4d   :  { %259 = vmatpush.msrb.mxu2 %v114_v13  ;;  %282 = vmatpush.msrb.mxu3 %v115_v53 }
  0x4e   :  { %573 = vmatpush.msrb.mxu0 %v2618_v37  ;;  %596 = vmatpush.msrb.mxu1 %v2616_v36  ;;  %v2768_v36 = vld [vmem:[#allocation5 + $0x130] sm:$0xff] }
  0x4f   :  { %260 = vmatpush.msrb.mxu2 %v110_v54  ;;  %283 = vmatpush.msrb.mxu3 %v111_v55 }
  0x50   :  { %574 = vmatpush.msrb.mxu0 %v2624_v40  ;;  %597 = vmatpush.msrb.mxu1 %v2622_v39  ;;  %v2776_v39 = vld [vmem:[#allocation5 + $0x110] sm:$0xff] }
  0x51   :  { %261 = vmatpush.msrb.mxu2 %v106_v56  ;;  %284 = vmatpush.msrb.mxu3 %v107_v59 }
  0x52   :  { %575 = vmatpush.msrb.mxu0 %v2642_v48  ;;  %598 = vmatpush.msrb.mxu1 %v2640_v47  ;;  %v2784_v47 = vld [vmem:[#allocation5 + $0xf0] sm:$0xff] }
  0x53   :  { %262 = vmatpush.msrb.mxu2 %v102_v60  ;;  %285 = vmatpush.msrb.mxu3 %v103_v16 }
  0x54   :  { %263 = vmatmul.f32.vlgmr.msrb.gmra.mxu2 %v2662_v2  ;;  %286 = vmatmul.f32.vlgmr.msrb.gmra.mxu3 %v2662_v2  ;;  %v2760_v2 = vld [vmem:[#allocation5 + $0x150] sm:$0xff] }
  0x55   :  { %397 = vmatpush.msra.mxu2 %v2724_v61  ;;  %417 = vmatpush.msra.mxu3 %v2726_v19 }
  0x56   :  { %576 = vmatpush.msrb.mxu0 %v2648_v52  ;;  %599 = vmatpush.msrb.mxu1 %v2646_v51  ;;  %v2800_v51 = vld [vmem:[#allocation5 + $0xb0] sm:$0xff] }
  0x57   :  { %398 = vmatpush.msra.mxu2 %v2730_v23  ;;  %418 = vmatpush.msra.mxu3 %v2732_v63 }
  0x58   :  { %577 = vmatpush.msrb.mxu0 %v2656_v58  ;;  %600 = vmatpush.msrb.mxu1 %v2653_v57  ;;  %v2808_v57 = vld [vmem:[#allocation5 + $0x90] sm:$0xff] }
  0x59   :  { %399 = vmatpush.msra.mxu2 %v2736_v27  ;;  %419 = vmatpush.msra.mxu3 %v2738_v0 }
  0x5a   :  { %578 = vmatpush.msrb.mxu0 %v2666_v4  ;;  %601 = vmatpush.msrb.mxu1 %v2658_v62 }
  0x5b   :  { %400 = vmatpush.msra.mxu2 %v2744_v31  ;;  %420 = vmatpush.msra.mxu3 %v2746_v1 }
  0x5c   :  { %266 = vmatmul.f32.gmra.mxu2 %v2707_v44  ;;  %289 = vmatmul.f32.gmra.mxu3 %v2707_v44  ;;  %v2838_v44 = vld [vmem:[#allocation5 + $0x10] sm:$0xff] }
  0x5d   :  { %401 = vmatpush.msra.mxu2 %v2752_v5  ;;  %421 = vmatpush.msra.mxu3 %v2754_v6 }
  0x5e   :  { %579 = vmatpush.msrb.mxu0 %v2672_v8  ;;  %602 = vmatpush.msrb.mxu1 %v2664_v3 }
  0x5f   :  { %402 = vmatpush.msra.mxu2 %v2760_v2  ;;  %422 = vmatpush.msra.mxu3 %v2762_v9 }
  0x60   :  { %580 = vmatpush.msrb.mxu0 %v2690_v17  ;;  %603 = vmatpush.msrb.mxu1 %v2670_v7 }
  0x61   :  { %403 = vmatpush.msra.mxu2 %v2768_v36  ;;  %423 = vmatpush.msra.mxu3 %v2770_v10 }
  0x62   :  { %581 = vmatpush.msrb.mxu0 %v2696_v26  ;;  %604 = vmatpush.msrb.mxu1 %v2688_v15 }
  0x63   :  { %404 = vmatpush.msra.mxu2 %v2776_v39  ;;  %424 = vmatpush.msra.mxu3 %v2778_v11 }
  0x64   :  { %582 = vmatpush.msrb.mxu0 %v2700_v34 }
  0x65   :  { %405 = vmatpush.msra.mxu2 %v2784_v47  ;;  %425 = vmatpush.msra.mxu3 %v2786_v14 }
  0x66   :  { %583 = vmatpush.msrb.mxu0 %v2704_v41 }
  0x67   :  { %406 = vmatpush.msra.mxu2 %v2792_v18  ;;  %426 = vmatpush.msra.mxu3 %v2794_v20 }
  0x68   :  { %584 = vmatpush.msrb.mxu0 %v2710_v45 }
  0x69   :  { %407 = vmatpush.msra.mxu2 %v2800_v51  ;;  %427 = vmatpush.msra.mxu3 %v2802_v21 }
  0x6a   :  { %800 = vmatpush.msra.mxu0 %v2596_v22 }
  0x6b   :  { %408 = vmatpush.msra.mxu2 %v2808_v57  ;;  %428 = vmatpush.msra.mxu3 %v2810_v25 }
  0x6c   :  { %801 = vmatpush.msra.mxu0 %v2600_v24 }
  0x6d   :  { %409 = vmatpush.msra.mxu2 %v2816_v29  ;;  %429 = vmatpush.msra.mxu3 %v2818_v30 }
  0x6e   :  { %802 = vmatpush.msra.mxu0 %v2606_v28  ;;  %v164_v28 = vld [vmem:[%s3704_s3] sm:$0xf] }
  0x6f   :  { %410 = vmatpush.msra.mxu2 %v2824_v35  ;;  %430 = vmatpush.msra.mxu3 %v2826_v38  ;;  %v168_v50 = vperm.slane %v164_v28, 2  ;;  %v169_v13 = vperm.slane %v164_v28, 3 }
  0x70   :  { %803 = vmatpush.msra.mxu0 %v2612_v32  ;;  %v167_v32 = vperm.slane %v164_v28, 1 }
  0x71   :  { %411 = vmatpush.msra.mxu2 %v2831_v42  ;;  %431 = vmatpush.msra.mxu3 %v2833_v43 }
  0x72   :  { %804 = vmatpush.msra.mxu0 %v2618_v37 }
  0x73   :  { %412 = vmatpush.msra.mxu2 %v2838_v44  ;;  %432 = vmatpush.msra.mxu3 %v2840_v46 }
  0x74   :  { %413 = vmatmul.f32.vlgmr.msra.gmra.mxu2 %v2527_v33  ;;  %433 = vmatmul.f32.vlgmr.msra.gmra.mxu3 %v2527_v33 }
  0x75   :  { %609 = vmatpush.msrb.mxu2 %v2724_v61  ;;  %629 = vmatpush.msrb.mxu3 %v2726_v19 }
  0x76   :  { %805 = vmatpush.msra.mxu0 %v2624_v40  ;;  %v166_v40 = vperm.slane %v164_v28, 0 }
  0x77   :  { %610 = vmatpush.msrb.mxu2 %v2730_v23  ;;  %630 = vmatpush.msrb.mxu3 %v2732_v63 }
  0x78   :  { %806 = vmatpush.msra.mxu0 %v2642_v48 }
  0x79   :  { %611 = vmatpush.msrb.mxu2 %v2736_v27  ;;  %631 = vmatpush.msrb.mxu3 %v2738_v0 }
  0x7a   :  { %807 = vmatpush.msra.mxu0 %v2648_v52 }
  0x7b   :  { %612 = vmatpush.msrb.mxu2 %v2744_v31  ;;  %632 = vmatpush.msrb.mxu3 %v2746_v1 }
  0x7c   :  { %808 = vmatpush.msra.mxu0 %v2656_v58 }
  0x7d   :  { %613 = vmatpush.msrb.mxu2 %v2752_v5  ;;  %633 = vmatpush.msrb.mxu3 %v2754_v6 }
  0x7e   :  { %809 = vmatpush.msra.mxu0 %v2666_v4 }
  0x7f   :  { %614 = vmatpush.msrb.mxu2 %v2760_v2  ;;  %634 = vmatpush.msrb.mxu3 %v2762_v9 }
  0x80   :  { %810 = vmatpush.msra.mxu0 %v2672_v8 }
  0x81   :  { %615 = vmatpush.msrb.mxu2 %v2768_v36  ;;  %635 = vmatpush.msrb.mxu3 %v2770_v10 }
  0x82   :  { %811 = vmatpush.msra.mxu0 %v2690_v17 }
  0x83   :  { %616 = vmatpush.msrb.mxu2 %v2776_v39  ;;  %636 = vmatpush.msrb.mxu3 %v2778_v11 }
  0x84   :  { %812 = vmatpush.msra.mxu0 %v2696_v26 }
  0x85   :  { %617 = vmatpush.msrb.mxu2 %v2784_v47  ;;  %637 = vmatpush.msrb.mxu3 %v2786_v14 }
  0x86   :  { %813 = vmatpush.msra.mxu0 %v2700_v34 }
  0x87   :  { %618 = vmatpush.msrb.mxu2 %v2792_v18  ;;  %638 = vmatpush.msrb.mxu3 %v2794_v20 }
  0x88   :  { %814 = vmatpush.msra.mxu0 %v2704_v41 }
  0x89   :  { %619 = vmatpush.msrb.mxu2 %v2800_v51  ;;  %639 = vmatpush.msrb.mxu3 %v2802_v21 }
  0x8a   :  { %815 = vmatpush.msra.mxu0 %v2710_v45 }
  0x8b   :  { %620 = vmatpush.msrb.mxu2 %v2808_v57  ;;  %640 = vmatpush.msrb.mxu3 %v2810_v25 }
  0x8d   :  { %621 = vmatpush.msrb.mxu2 %v2816_v29  ;;  %641 = vmatpush.msrb.mxu3 %v2818_v30 }
  0x8f   :  { %622 = vmatpush.msrb.mxu2 %v2824_v35  ;;  %642 = vmatpush.msrb.mxu3 %v2826_v38 }
  0x91   :  { %623 = vmatpush.msrb.mxu2 %v2831_v42  ;;  %643 = vmatpush.msrb.mxu3 %v2833_v43 }
  0x93   :  { %624 = vmatpush.msrb.mxu2 %v2838_v44  ;;  %644 = vmatpush.msrb.mxu3 %v2840_v46 }
  0x95   :  { %840 = vmatpush.msra.mxu2 %v2724_v61  ;;  %860 = vmatpush.msra.mxu3 %v2726_v19 }
  0x97   :  { %841 = vmatpush.msra.mxu2 %v2730_v23  ;;  %861 = vmatpush.msra.mxu3 %v2732_v63 }
  0x99   :  { %842 = vmatpush.msra.mxu2 %v2736_v27  ;;  %862 = vmatpush.msra.mxu3 %v2738_v0 }
  0x9b   :  { %843 = vmatpush.msra.mxu2 %v2744_v31  ;;  %863 = vmatpush.msra.mxu3 %v2746_v1 }
  0x9d   :  { %844 = vmatpush.msra.mxu2 %v2752_v5  ;;  %864 = vmatpush.msra.mxu3 %v2754_v6 }
  0x9f   :  { %845 = vmatpush.msra.mxu2 %v2760_v2  ;;  %865 = vmatpush.msra.mxu3 %v2762_v9 }
  0xa1   :  { %846 = vmatpush.msra.mxu2 %v2768_v36  ;;  %866 = vmatpush.msra.mxu3 %v2770_v10 }
  0xa3   :  { %847 = vmatpush.msra.mxu2 %v2776_v39  ;;  %867 = vmatpush.msra.mxu3 %v2778_v11 }
  0xa5   :  { %848 = vmatpush.msra.mxu2 %v2784_v47  ;;  %868 = vmatpush.msra.mxu3 %v2786_v14 }
  0xa7   :  { %849 = vmatpush.msra.mxu2 %v2792_v18  ;;  %869 = vmatpush.msra.mxu3 %v2794_v20 }
  0xa9   :  { %850 = vmatpush.msra.mxu2 %v2800_v51  ;;  %870 = vmatpush.msra.mxu3 %v2802_v21 }
  0xab   :  { %851 = vmatpush.msra.mxu2 %v2808_v57  ;;  %871 = vmatpush.msra.mxu3 %v2810_v25 }
  0xad   :  { %852 = vmatpush.msra.mxu2 %v2816_v29  ;;  %872 = vmatpush.msra.mxu3 %v2818_v30 }
  0xaf   :  { %853 = vmatpush.msra.mxu2 %v2824_v35  ;;  %873 = vmatpush.msra.mxu3 %v2826_v38 }
  0xb1   :  { %854 = vmatpush.msra.mxu2 %v2831_v42  ;;  %874 = vmatpush.msra.mxu3 %v2833_v43 }
  0xb3   :  { %855 = vmatpush.msra.mxu2 %v2838_v44  ;;  %875 = vmatpush.msra.mxu3 %v2840_v46 }
  0xb9   :  { %v241_v22 = vpop.f32.mrf.mxu3  ;;  %v394_v8 = vpop.f32.mrf.mxu1 }
  0xba   :  { %v2936_v4 = vadd.f32 %v241_v22, %v167_v32 }
  0xbb   :  { %v218_v24 = vpop.f32.mrf.mxu2 }
  0xbc   :  { %3752 = vst [vmem:[#allocation15_spill] sm:$0xff] %v2936_v4  ;;  %v2938_v17 = vadd.f32 %v218_v24, %v166_v40  ;;  %v438_v33 = vadd.f32 %v394_v8, %v2936_v4 }
  0xbe   :  { %3753 = vst [vmem:[#allocation16_spill] sm:$0xff] %v2938_v17  ;;  %v2255_v41 = vmul.f32 -1.442695, %v438_v33 }
  0xc0   :  { %2289 = vpow2.f32 %v2255_v41 }
  0xc1   :  { %v374_v26 = vpop.f32.mrf.mxu0 }
  0xc2   :  { %v437_v34 = vadd.f32 %v374_v26, %v2938_v17 }
  0xc3   :  { %v244_v37 = vpop.f32.mrf.mxu3 }
  0xc4   :  { %v2932_v48 = vadd.f32 %v244_v37, %v167_v32  ;;  %v2254_v12 = vmul.f32 -1.442695, %v437_v34 }
  0xc5   :  { %v221_v52 = vpop.f32.mrf.mxu2 }
  0xc6   :  { %3750 = vst [vmem:[#allocation13_spill] sm:$0xff] %v2932_v48  ;;  %v2934_v58 = vadd.f32 %v221_v52, %v166_v40  ;;  %2291 = vpow2.f32 %v2254_v12  ;;  %v2290_v59 = vpop.eup %2289  ;;  %v3138_v48 = vld [vmem:[#allocation5 + $0x50] sm:$0xff] }
  0xc7   :  { %v463_v16 = vadd.f32 1.0, %v2290_v59  ;;  %v2967_v59 = vld [vmem:[#allocation5 + $0x168] sm:$0xff]  ;;  %3770 = vst [vmem:[#allocation33_spill] sm:$0xff] %v3138_v48 }
  0xc8   :  { %3751 = vst [vmem:[#allocation14_spill] sm:$0xff] %v2934_v58  ;;  %v3145_v58 = vld [vmem:[#allocation5 + $0x28] sm:$0xff] }
  0xc9   :  { %2293 = vrcp.f32 %v463_v16  ;;  %vm469_vm0 = vweird.f32 %v463_v16  ;;  %v475_v47 = vand.u32 2147483648, %v463_v16  ;;  %v473_v21 = vand.u32 2147483647, %v463_v16 }
  0xcb   :  { %v476_v25 = vor.u32 1.1754944e-38, %v475_v47  ;;  %vm474_vm7 = vcmp.eq.f32.partialorder %v473_v21, 8.507059e+37 }
  0xcc   :  { %v2292_v60 = vpop.eup %2291 }
  0xcd   :  { %v444_v61 = vadd.f32 1.0, %v2292_v60  ;;  %v2970_v60 = vld [vmem:[#allocation5 + $0x148] sm:$0xff] }
  0xcf   :  { %2295 = vrcp.f32 %v444_v61  ;;  %v2294_v19 = vpop.eup %2293  ;;  %vm450_vm2 = vweird.f32 %v444_v61  ;;  %v456_v14 = vand.u32 2147483648, %v444_v61  ;;  %v454_v20 = vand.u32 2147483647, %v444_v61 }
  0xd0   :  { %v465_v63 = vmul.f32 %v2294_v19, %v463_v16  ;;  %vm470_vm1 = vweird.f32 %v2294_v19  ;;  %v2973_v16 = vld [vmem:[#allocation5 + $0x128] sm:$0xff] }
  0xd1   :  { %vm471_vm4 = vmor %vm469_vm0, %vm470_vm1  ;;  %v457_v29 = vor.u32 1.1754944e-38, %v456_v14  ;;  %vm455_vm6 = vcmp.eq.f32.partialorder %v454_v20, 8.507059e+37 }
  0xd2   :  { %v466_v1 = vsub.f32 1.0, %v465_v63 }
  0xd4   :  { %v467_v39 = vmul.f32 %v2294_v19, %v466_v1 }
  0xd5   :  { %v2296_v23 = vpop.eup %2295 }
  0xd6   :  { %v446_v27 = vmul.f32 %v2296_v23, %v444_v61  ;;  %vm451_vm3 = vweird.f32 %v2296_v23  ;;  %v468_v51 = vadd.f32 %v2294_v19, %v467_v39  ;;  %v2976_v61 = vld [vmem:[#allocation5 + $0x108] sm:$0xff] }
  0xd7   :  { %v264_v45 = vpop.f32.mrf.mxu2  ;;  %v287_v49 = vpop.f32.mrf.mxu3  ;;  %vm452_vm5 = vmor %vm450_vm2, %vm451_vm3  ;;  %v2990_v39 = vld [vmem:[#allocation5 + $0x88] sm:$0xff] }
  0xd8   :  { %v2946_v0 = vadd.f32 %v287_v49, %v169_v13  ;;  %v447_v5 = vsub.f32 1.0, %v446_v27  ;;  %v2949_v9 = vadd.f32 %v264_v45, %v168_v50  ;;  %v472_v38 = vsel %vm471_vm4, %v2294_v19, %v468_v51 }
  0xd9   :  { %v477_v44 = vsel %vm474_vm7, %v476_v25, %v472_v38 }
  0xda   :  { %3756 = vst [vmem:[#allocation19_spill] sm:$0xff] %v2946_v0  ;;  %v448_v11 = vmul.f32 %v2296_v23, %v447_v5  ;;  %v499_v22 = vmul.f32 0.0, %v477_v44 }
  0xdb   :  { %3757 = vst [vmem:[#allocation20_spill] sm:$0xff] %v2949_v9 }
  0xdc   :  { %v449_v18 = vadd.f32 %v2296_v23, %v448_v11 }
  0xde   :  { %v453_v35 = vsel %vm452_vm5, %v2296_v23, %v449_v18 }
  0xdf   :  { %v267_v53 = vpop.f32.mrf.mxu2  ;;  %v290_v54 = vpop.f32.mrf.mxu3  ;;  %v458_v43 = vsel %vm455_vm6, %v457_v29, %v453_v35 }
  0xe0   :  { %v2942_v55 = vadd.f32 %v267_v53, %v168_v50  ;;  %v2944_v56 = vadd.f32 %v290_v54, %v169_v13  ;;  %v2955_v50 = vld [vmem:[#allocation5 + $0x1e8] sm:$0xff] }
  0xe1   :  { %820 = vmatpush.msra.mxu1 %v2955_v50  ;;  %v2958_v13 = vld [vmem:[#allocation5 + $0x1c8] sm:$0xff] }
  0xe2   :  { %3754 = vst [vmem:[#allocation17_spill] sm:$0xff] %v2942_v55  ;;  %v2961_v53 = vld [vmem:[#allocation5 + $0x1a8] sm:$0xff]  ;;  %v3130_v55 = vld [vmem:[#allocation5 + $0x78] sm:$0xff] }
  0xe3   :  { %3755 = vst [vmem:[#allocation18_spill] sm:$0xff] %v2944_v56  ;;  %821 = vmatpush.msra.mxu1 %v2958_v13  ;;  %v2964_v54 = vld [vmem:[#allocation5 + $0x188] sm:$0xff] }
  0xe4   :  { %3767 = vst [vmem:[#allocation30_spill] sm:$0xff] %v3130_v55  ;;  %v3136_v56 = vld [vmem:[#allocation5 + $0x48] sm:$0xff] }
  0xe5   :  { %822 = vmatpush.msra.mxu1 %v2961_v53  ;;  %3769 = vst [vmem:[#allocation32_spill] sm:$0xff] %v3136_v56 }
  0xe7   :  { %823 = vmatpush.msra.mxu1 %v2964_v54 }
  0xe9   :  { %824 = vmatpush.msra.mxu1 %v2967_v59 }
  0xeb   :  { %825 = vmatpush.msra.mxu1 %v2970_v60 }
  0xed   :  { %826 = vmatpush.msra.mxu1 %v2973_v16 }
  0xef   :  { %827 = vmatpush.msra.mxu1 %v2976_v61 }
  0xf7   :  { %v434_v31 = vpop.f32.mrf.mxu3  ;;  %v414_v6 = vpop.f32.mrf.mxu2 }
  0xf8   :  { %v440_v2 = vadd.f32 %v434_v31, %v2946_v0  ;;  %v439_v10 = vadd.f32 %v414_v6, %v2949_v9  ;;  %v2979_v31 = vld [vmem:[#allocation5 + $0xe8] sm:$0xff] }
  0xf9   :  { %828 = vmatpush.msra.mxu1 %v2979_v31  ;;  %v2984_v6 = vld [vmem:[#allocation5 + $0xc8] sm:$0xff] }
  0xfa   :  { %v2256_v36 = vmul.f32 -1.442695, %v440_v2 }
  0xfb   :  { %829 = vmatpush.msra.mxu1 %v2984_v6 }
  0xfc   :  { %2297 = vpow2.f32 %v2256_v36 }
  0xfd   :  { %2299 = vtanh.f32 %v439_v10  ;;  %v2987_v10 = vld [vmem:[#allocation5 + $0xa8] sm:$0xff] }
  0xfe   :  { %830 = vmatpush.msra.mxu1 %v2987_v10 }
 0x100   :  { %831 = vmatpush.msra.mxu1 %v2990_v39 }
 0x102   :  { %v2298_v57 = vpop.eup %2297  ;;  %832 = vmatpush.msra.mxu1 %v2658_v62 }
 0x103   :  { %v483_v30 = vadd.f32 1.0, %v2298_v57  ;;  %v2300_v42 = vpop.eup %2299 }
 0x104   :  { %v500_v46 = vmul.f32 %v2300_v42, %v458_v43  ;;  %833 = vmatpush.msra.mxu1 %v2664_v3 }
 0x105   :  { %2301 = vrcp.f32 %v483_v30  ;;  %v495_v40 = vand.u32 2147483648, %v483_v30  ;;  %v493_v8 = vand.u32 2147483647, %v483_v30  ;;  %vm489_vm9 = vweird.f32 %v483_v30 }
 0x106   :  { %v2952_v28 = vadd.f32 %v500_v46, %v499_v22  ;;  %834 = vmatpush.msra.mxu1 %v2670_v7 }
 0x107   :  { %v496_v33 = vor.u32 1.1754944e-38, %v495_v40  ;;  %vm494_vm11 = vcmp.eq.f32.partialorder %v493_v8, 8.507059e+37 }
 0x108   :  { %2303 = vtanh.f32 %v2952_v28  ;;  %835 = vmatpush.msra.mxu1 %v2688_v15 }
 0x10b   :  { %v2302_v24 = vpop.eup %2301 }
 0x10c   :  { %v485_v32 = vmul.f32 %v2302_v24, %v483_v30  ;;  %vm490_vm8 = vweird.f32 %v2302_v24 }
 0x10d   :  { %vm491_vm10 = vmor %vm489_vm9, %vm490_vm8 }
 0x10e   :  { %v486_v37 = vsub.f32 1.0, %v485_v32  ;;  %v2304_v41 = vpop.eup %2303 }
 0x110   :  { %v487_v52 = vmul.f32 %v2302_v24, %v486_v37 }
 0x112   :  { %v488_v26 = vadd.f32 %v2302_v24, %v487_v52 }
 0x114   :  { %v492_v34 = vsel %vm491_vm10, %v2302_v24, %v488_v26 }
 0x115   :  { %v497_v45 = vsel %vm494_vm11, %v496_v33, %v492_v34  ;;  %v724_v34 = vrot.slane %v2952_v28, 6 }
 0x116   :  { %v503_v49 = vmul.f32 %v2304_v41, %v497_v45 }
 0x118   :  { %504 = vst [vmem:[#allocation2] sm:$0x3] %v503_v49  ;;  %585 = vmatmul.f32.vlgmr.msrb.gmra.mxu0 %v503_v49  ;;  %605 = vmatmul.f32.vlgmr.msrb.gmra.mxu1 %v503_v49 }
 0x119   :  { %625 = vmatmul.f32.vlgmr.msrb.gmra.mxu2 %v503_v49  ;;  %645 = vmatmul.f32.vlgmr.msrb.gmra.mxu3 %v503_v49 }
 0x11a   :  { %1051 = vmatpush.msrb.mxu1 %v2955_v50 }
 0x11c   :  { %1052 = vmatpush.msrb.mxu1 %v2958_v13 }
 0x11e   :  { %1053 = vmatpush.msrb.mxu1 %v2961_v53 }
 0x11f   :  { %v2104_v12 = vld [vmem:[#allocation2] sm:$0x3] }
 0x120   :  { %2140 = vst [vmem:[#allocation1] ss:$4 sm:$0xff] %v2104_v12  ;;  %1054 = vmatpush.msrb.mxu1 %v2964_v54 }
 0x122   :  { %1055 = vmatpush.msrb.mxu1 %v2967_v59 }
 0x124   :  { %1056 = vmatpush.msrb.mxu1 %v2970_v60 }
 0x126   :  { %1057 = vmatpush.msrb.mxu1 %v2973_v16 }
 0x128   :  { %1058 = vmatpush.msrb.mxu1 %v2976_v61 }
 0x12a   :  { %1059 = vmatpush.msrb.mxu1 %v2979_v31 }
 0x12c   :  { %1060 = vmatpush.msrb.mxu1 %v2984_v6 }
 0x12e   :  { %1061 = vmatpush.msrb.mxu1 %v2987_v10 }
 0x130   :  { %1062 = vmatpush.msrb.mxu1 %v2990_v39 }
 0x195   :  { %v586_v19 = vpop.f32.mrf.mxu0  ;;  %v606_v23 = vpop.f32.mrf.mxu1 }
 0x196   :  { %v653_v63 = vrot.slane %v586_v19, 6  ;;  %v654_v27 = vrot.slane %v606_v23, 6 }
 0x198   :  { %v661_v1 = vadd.f32 %v653_v63, %v2938_v17  ;;  %v662_v5 = vadd.f32 %v654_v27, %v2936_v4 }
 0x19a   :  { %v2257_v2 = vmul.f32 -1.442695, %v661_v1  ;;  %v2258_v36 = vmul.f32 -1.442695, %v662_v5 }
 0x19c   :  { %2305 = vpow2.f32 %v2257_v2  ;;  %v646_v11 = vpop.f32.mrf.mxu3  ;;  %v626_v25 = vpop.f32.mrf.mxu2 }
 0x19d   :  { %2307 = vpow2.f32 %v2258_v36  ;;  %v656_v47 = vrot.slane %v646_v11, 6  ;;  %v655_v29 = vrot.slane %v626_v25, 6  ;;  %v3015_v25 = vld [vmem:[#allocation5 + $0x1e0] sm:$0xff] }
 0x19e   :  { %1031 = vmatpush.msrb.mxu0 %v3015_v25 }
 0x19f   :  { %v664_v14 = vadd.f32 %v656_v47, %v2946_v0  ;;  %v663_v35 = vadd.f32 %v655_v29, %v2949_v9  ;;  %v3017_v29 = vld [vmem:[#allocation5 + $0x1f0] sm:$0xff] }
 0x1a0   :  { %1071 = vmatpush.msrb.mxu2 %v3017_v29 }
 0x1a1   :  { %v2259_v18 = vmul.f32 -1.442695, %v664_v14 }
 0x1a2   :  { %v2306_v20 = vpop.eup %2305 }
 0x1a3   :  { %v2308_v51 = vpop.eup %2307  ;;  %v668_v21 = vadd.f32 1.0, %v2306_v20  ;;  %2309 = vpow2.f32 %v2259_v18 }
 0x1a4   :  { %v687_v57 = vadd.f32 1.0, %v2308_v51 }
 0x1a5   :  { %2311 = vrcp.f32 %v668_v21  ;;  %v680_v44 = vand.u32 2147483648, %v668_v21  ;;  %v678_v24 = vand.u32 2147483647, %v668_v21  ;;  %vm674_vm14 = vweird.f32 %v668_v21 }
 0x1a6   :  { %2313 = vrcp.f32 %v687_v57  ;;  %v699_v46 = vand.u32 2147483648, %v687_v57  ;;  %v697_v37 = vand.u32 2147483647, %v687_v57  ;;  %vm693_vm15 = vweird.f32 %v687_v57 }
 0x1a7   :  { %v681_v8 = vor.u32 1.1754944e-38, %v680_v44  ;;  %vm679_vm2 = vcmp.eq.f32.partialorder %v678_v24, 8.507059e+37  ;;  %v3046_v44 = vld [vmem:[#allocation5 + $0x198] sm:$0xff] }
 0x1a8   :  { %v700_v41 = vor.u32 1.1754944e-38, %v699_v46  ;;  %vm698_vm3 = vcmp.eq.f32.partialorder %v697_v37, 8.507059e+37  ;;  %v3051_v46 = vld [vmem:[#allocation5 + $0x160] sm:$0xff]  ;;  %v3055_v24 = vld [vmem:[#allocation5 + $0x178] sm:$0xff]  ;;  %v3062_v37 = vld [vmem:[#allocation5 + $0x150] sm:$0xff] }
 0x1a9   :  { %v2310_v62 = vpop.eup %2309 }
 0x1aa   :  { %v707_v30 = vadd.f32 1.0, %v2310_v62  ;;  %v3019_v62 = vld [vmem:[#allocation5 + $0x1f8] sm:$0xff] }
 0x1ab   :  { %v2312_v3 = vpop.eup %2311  ;;  %3758 = vst [vmem:[#allocation21_spill] sm:$0xff] %v3019_v62  ;;  %1091 = vmatpush.msrb.mxu3 %v3019_v62 }
 0x1ac   :  { %v2314_v38 = vpop.eup %2313  ;;  %v670_v7 = vmul.f32 %v2312_v3, %v668_v21  ;;  %2315 = vrcp.f32 %v707_v30  ;;  %vm675_vm12 = vweird.f32 %v2312_v3  ;;  %v719_v36 = vand.u32 2147483648, %v707_v30 }
 0x1ad   :  { %v689_v42 = vmul.f32 %v2314_v38, %v687_v57  ;;  %2317 = vtanh.f32 %v663_v35  ;;  %vm694_vm13 = vweird.f32 %v2314_v38  ;;  %vm676_vm0 = vmor %vm674_vm14, %vm675_vm12  ;;  %vm713_vm5 = vweird.f32 %v707_v30  ;;  %v3028_v35 = vld [vmem:[#allocation5 + $0x1d8] sm:$0xff] }
 0x1ae   :  { %v671_v15 = vsub.f32 1.0, %v670_v7  ;;  %vm695_vm1 = vmor %vm693_vm15, %vm694_vm13  ;;  %v717_v11 = vand.u32 2147483647, %v707_v30  ;;  %v720_v14 = vor.u32 1.1754944e-38, %v719_v36  ;;  %1092 = vmatpush.msrb.mxu3 %v3028_v35  ;;  %v3035_v7 = vld [vmem:[#allocation5 + $0x1b0] sm:$0xff] }
 0x1af   :  { %v690_v43 = vsub.f32 1.0, %v689_v42  ;;  %v3037_v42 = vld [vmem:[#allocation5 + $0x1b8] sm:$0xff]  ;;  %v3100_v36 = vld [vmem:[#allocation5 + $0xd0] sm:$0xff] }
 0x1b0   :  { %v672_v22 = vmul.f32 %v2312_v3, %v671_v15  ;;  %vm718_vm7 = vcmp.eq.f32.partialorder %v717_v11, 8.507059e+37  ;;  %1093 = vmatpush.msrb.mxu3 %v3037_v42  ;;  %v3042_v15 = vld [vmem:[#allocation5 + $0x180] sm:$0xff]  ;;  %v3102_v11 = vld [vmem:[#allocation5 + $0xd8] sm:$0xff] }
 0x1b1   :  { %v691_v32 = vmul.f32 %v2314_v38, %v690_v43  ;;  %3760 = vst [vmem:[#allocation23_spill] sm:$0xff] %v3042_v15  ;;  %v3044_v43 = vld [vmem:[#allocation5 + $0x190] sm:$0xff] }
 0x1b2   :  { %v2316_v40 = vpop.eup %2315  ;;  %v673_v52 = vadd.f32 %v2312_v3, %v672_v22  ;;  %1094 = vmatpush.msrb.mxu3 %v3046_v44  ;;  %v3053_v22 = vld [vmem:[#allocation5 + $0x170] sm:$0xff] }
 0x1b3   :  { %v692_v26 = vadd.f32 %v2314_v38, %v691_v32  ;;  %v709_v33 = vmul.f32 %v2316_v40, %v707_v30  ;;  %v2318_v49 = vpop.eup %2317  ;;  %vm714_vm4 = vweird.f32 %v2316_v40  ;;  %v3024_v30 = vld [vmem:[#allocation5 + $0x1c0] sm:$0xff] }
 0x1b4   :  { %v677_v45 = vsel %vm676_vm0, %v2312_v3, %v673_v52  ;;  %vm715_vm6 = vmor %vm713_vm5, %vm714_vm4  ;;  %3759 = vst [vmem:[#allocation22_spill] sm:$0xff] %v3024_v30  ;;  %v3026_v3 = vld [vmem:[#allocation5 + $0x1d0] sm:$0xff]  ;;  %1032 = vmatpush.msrb.mxu0 %v3024_v30  ;;  %1095 = vmatpush.msrb.mxu3 %v3055_v24  ;;  %v3060_v32 = vld [vmem:[#allocation5 + $0x140] sm:$0xff] }
 0x1b5   :  { %v682_v12 = vsel %vm679_vm2, %v681_v8, %v677_v45  ;;  %v696_v19 = vsel %vm695_vm1, %v2314_v38, %v692_v26  ;;  %v710_v23 = vsub.f32 1.0, %v709_v33  ;;  %1072 = vmatpush.msrb.mxu2 %v3026_v3  ;;  %v3033_v38 = vld [vmem:[#allocation5 + $0x1a0] sm:$0xff]  ;;  %v3071_v8 = vld [vmem:[#allocation5 + $0x130] sm:$0xff]  ;;  %v3073_v26 = vld [vmem:[#allocation5 + $0x138] sm:$0xff] }
 0x1b6   :  { %v701_v63 = vsel %vm698_vm3, %v700_v41, %v696_v19  ;;  %v727_v27 = vmul.f32 %v2318_v49, %v682_v12  ;;  %1033 = vmatpush.msrb.mxu0 %v3033_v38  ;;  %v3069_v52 = vld [vmem:[#allocation5 + $0x120] sm:$0xff]  ;;  %v3082_v41 = vld [vmem:[#allocation5 + $0x118] sm:$0xff] }
 0x1b7   :  { %v726_v1 = vmul.f32 %v724_v34, %v701_v63  ;;  %v711_v5 = vmul.f32 %v2316_v40, %v710_v23  ;;  %1073 = vmatpush.msrb.mxu2 %v3035_v7  ;;  %3762 = vst [vmem:[#allocation25_spill] sm:$0xff] %v3069_v52  ;;  %v3078_v33 = vld [vmem:[#allocation5 + $0x100] sm:$0xff]  ;;  %v3080_v34 = vld [vmem:[#allocation5 + $0x110] sm:$0xff] }
 0x1b8   :  { %1034 = vmatpush.msrb.mxu0 %v3042_v15  ;;  %v3087_v23 = vld [vmem:[#allocation5 + $0xe0] sm:$0xff]  ;;  %v3089_v63 = vld [vmem:[#allocation5 + $0xf0] sm:$0xff] }
 0x1b9   :  { %v3010_v28 = vadd.f32 %v727_v27, %v726_v1  ;;  %v712_v2 = vadd.f32 %v2316_v40, %v711_v5  ;;  %1074 = vmatpush.msrb.mxu2 %v3044_v43  ;;  %v3091_v27 = vld [vmem:[#allocation5 + $0xf8] sm:$0xff] }
 0x1ba   :  { %1035 = vmatpush.msrb.mxu0 %v3051_v46 }
 0x1bb   :  { %2319 = vtanh.f32 %v3010_v28  ;;  %v716_v47 = vsel %vm715_vm6, %v2316_v40, %v712_v2  ;;  %1075 = vmatpush.msrb.mxu2 %v3053_v22  ;;  %v3064_v40 = vld [vmem:[#allocation5 + $0x158] sm:$0xff]  ;;  %v3098_v2 = vld [vmem:[#allocation5 + $0xc0] sm:$0xff] }
 0x1bc   :  { %v721_v20 = vsel %vm718_vm7, %v720_v14, %v716_v47  ;;  %3761 = vst [vmem:[#allocation24_spill] sm:$0xff] %v3064_v40  ;;  %1036 = vmatpush.msrb.mxu0 %v3060_v32  ;;  %1096 = vmatpush.msrb.mxu3 %v3064_v40 }
 0x1bd   :  { %1076 = vmatpush.msrb.mxu2 %v3062_v37 }
 0x1be   :  { %1037 = vmatpush.msrb.mxu0 %v3069_v52  ;;  %1097 = vmatpush.msrb.mxu3 %v3073_v26 }
 0x1bf   :  { %1077 = vmatpush.msrb.mxu2 %v3071_v8 }
 0x1c0   :  { %1038 = vmatpush.msrb.mxu0 %v3078_v33  ;;  %1098 = vmatpush.msrb.mxu3 %v3082_v41 }
 0x1c1   :  { %v2320_v18 = vpop.eup %2319  ;;  %1078 = vmatpush.msrb.mxu2 %v3080_v34 }
 0x1c2   :  { %v730_v51 = vmul.f32 %v2320_v18, %v721_v20  ;;  %1039 = vmatpush.msrb.mxu0 %v3087_v23  ;;  %1099 = vmatpush.msrb.mxu3 %v3091_v27  ;;  %v3107_v18 = vld [vmem:[#allocation5 + $0xa0] sm:$0xff]  ;;  %v3109_v20 = vld [vmem:[#allocation5 + $0xb0] sm:$0xff] }
 0x1c3   :  { %1079 = vmatpush.msrb.mxu2 %v3089_v63 }
 0x1c4   :  { %732 = vst [vmem:[#allocation2] sm:$0xc] %v730_v51  ;;  %v798_v21 = vrot.slane %v730_v51, 2  ;;  %1040 = vmatpush.msrb.mxu0 %v3098_v2  ;;  %1100 = vmatpush.msrb.mxu3 %v3102_v11  ;;  %v3113_v51 = vld [vmem:[#allocation5 + $0xb8] sm:$0xff] }
 0x1c5   :  { %1080 = vmatpush.msrb.mxu2 %v3100_v36 }
 0x1c6   :  { %816 = vmatmul.f32.vlgmr.msra.gmra.mxu0 %v798_v21  ;;  %836 = vmatmul.f32.vlgmr.msra.gmra.mxu1 %v798_v21 }
 0x1c7   :  { %856 = vmatmul.f32.vlgmr.msra.gmra.mxu2 %v798_v21  ;;  %876 = vmatmul.f32.vlgmr.msra.gmra.mxu3 %v798_v21  ;;  %v3115_v21 = vld [vmem:[#allocation5 + $0x80] sm:$0xff] }
 0x1c8   :  { %1041 = vmatpush.msrb.mxu0 %v3107_v18  ;;  %1081 = vmatpush.msrb.mxu2 %v3109_v20 }
 0x1c9   :  { %1101 = vmatpush.msrb.mxu3 %v3113_v51 }
 0x1ca   :  { %1042 = vmatpush.msrb.mxu0 %v3115_v21 }
 0x1cb   :  { %v2105_v57 = vld [vmem:[#allocation2 + $0x2] sm:$0x3] }
 0x1cc   :  { %2142 = vst [vmem:[#allocation1 + $0x1] ss:$4 sm:$0xff] %v2105_v57  ;;  %v3117_v57 = vld [vmem:[#allocation5 + $0x90] sm:$0xff] }
 0x1cd   :  { %1082 = vmatpush.msrb.mxu2 %v3117_v57 }
 0x243   :  { %v817_v45 = vpop.f32.mrf.mxu0  ;;  %v837_v49 = vpop.f32.mrf.mxu1 }
 0x244   :  { %v884_v12 = vrot.slane %v817_v45, 4  ;;  %v885_v19 = vrot.slane %v837_v49, 4  ;;  %v3120_v49 = vld [vmem:[#allocation5 + $0x98] sm:$0xff] }
 0x245   :  { %3763 = vst [vmem:[#allocation26_spill] sm:$0xff] %v3120_v49  ;;  %1102 = vmatpush.msrb.mxu3 %v3120_v49 }
 0x246   :  { %v892_v1 = vadd.f32 %v884_v12, %v2938_v17  ;;  %v893_v5 = vadd.f32 %v885_v19, %v2936_v4  ;;  %v3122_v12 = vld [vmem:[#allocation5 + $0x60] sm:$0xff]  ;;  %v3124_v19 = vld [vmem:[#allocation5 + $0x68] sm:$0xff]  ;;  %v3151_v17 = vld [vmem:[#allocation5 + $0x30] sm:$0xff] }
 0x247   :  { %3764 = vst [vmem:[#allocation27_spill] sm:$0xff] %v3122_v12  ;;  %1063 = vmatpush.msrb.mxu1 %v3124_v19  ;;  %1043 = vmatpush.msrb.mxu0 %v3122_v12  ;;  %v3149_v4 = vld [vmem:[#allocation5 + $0x20] sm:$0xff] }
 0x248   :  { %v2260_v47 = vmul.f32 -1.442695, %v892_v1  ;;  %v2261_v14 = vmul.f32 -1.442695, %v893_v5  ;;  %3765 = vst [vmem:[#allocation28_spill] sm:$0xff] %v3124_v19  ;;  %v3128_v5 = vld [vmem:[#allocation5 + $0x70] sm:$0xff]  ;;  %1103 = vmatpush.msrb.mxu3 %v3130_v55 }
 0x249   :  { %3766 = vst [vmem:[#allocation29_spill] sm:$0xff] %v3128_v5  ;;  %1083 = vmatpush.msrb.mxu2 %v3128_v5  ;;  %1064 = vmatpush.msrb.mxu1 %v3136_v56  ;;  %v3161_v55 = vld [vmem:[#allocation5] sm:$0xff]  ;;  %v3163_v56 = vld [vmem:[#allocation5 + $0x10] sm:$0xff] }
 0x24a   :  { %2321 = vpow2.f32 %v2260_v47  ;;  %v877_v45 = vpop.f32.mrf.mxu3  ;;  %v3134_v47 = vld [vmem:[#allocation5 + $0x40] sm:$0xff] }
 0x24b   :  { %2323 = vpow2.f32 %v2261_v14  ;;  %v887_v1 = vrot.slane %v877_v45, 4  ;;  %3768 = vst [vmem:[#allocation31_spill] sm:$0xff] %v3134_v47  ;;  %v3143_v45 = vld [vmem:[#allocation5 + $0x58] sm:$0xff]  ;;  %1044 = vmatpush.msrb.mxu0 %v3134_v47  ;;  %1084 = vmatpush.msrb.mxu2 %v3138_v48  ;;  %v857_v47 = vpop.f32.mrf.mxu2 }
 0x24c   :  { %1104 = vmatpush.msrb.mxu3 %v3143_v45  ;;  %1065 = vmatpush.msrb.mxu1 %v3145_v58 }
 0x24d   :  { %v895_v14 = vadd.f32 %v887_v1, %v2946_v0  ;;  %v3155_v1 = vld [vmem:[#allocation5 + $0x38] sm:$0xff]  ;;  %v3157_v0 = vld [vmem:[#allocation5 + $0x8] sm:$0xff]  ;;  %1045 = vmatpush.msrb.mxu0 %v3149_v4  ;;  %1085 = vmatpush.msrb.mxu2 %v3151_v17 }
 0x24e   :  { %1105 = vmatpush.msrb.mxu3 %v3155_v1  ;;  %1066 = vmatpush.msrb.mxu1 %v3157_v0 }
 0x24f   :  { %v2262_v19 = vmul.f32 -1.442695, %v895_v14  ;;  %v3169_v14 = vld [vmem:[#allocation5 + $0x18] sm:$0xff]  ;;  %1046 = vmatpush.msrb.mxu0 %v3161_v55  ;;  %1086 = vmatpush.msrb.mxu2 %v3163_v56 }
 0x250   :  { %v2322_v5 = vpop.eup %2321  ;;  %1106 = vmatpush.msrb.mxu3 %v3169_v14  ;;  %1282 = vmatpush.msra.mxu1 %v2955_v50 }
 0x251   :  { %v2324_v12 = vpop.eup %2323  ;;  %v3165_v49 = vadd.f32 1.0, %v2322_v5  ;;  %2325 = vpow2.f32 %v2262_v19  ;;  %1262 = vmatpush.msra.mxu0 %v3015_v25  ;;  %v886_v19 = vrot.slane %v857_v47, 4  ;;  %1302 = vmatpush.msra.mxu2 %v3017_v29 }
 0x252   :  { %v3171_v48 = vadd.f32 1.0, %v2324_v12  ;;  %1322 = vmatpush.msra.mxu3 %v3019_v62  ;;  %1283 = vmatpush.msra.mxu1 %v2958_v13 }
 0x253   :  { %2327 = vrcp.f32 %v3165_v49  ;;  %1263 = vmatpush.msra.mxu0 %v3024_v30  ;;  %1303 = vmatpush.msra.mxu2 %v3026_v3  ;;  %v894_v50 = vadd.f32 %v886_v19, %v2949_v9  ;;  %vm905_vm10 = vweird.f32 %v3165_v49 }
 0x254   :  { %2329 = vrcp.f32 %v3171_v48  ;;  %1323 = vmatpush.msra.mxu3 %v3028_v35  ;;  %1284 = vmatpush.msra.mxu1 %v2961_v53  ;;  %v930_v9 = vand.u32 2147483648, %v3171_v48  ;;  %vm924_vm11 = vweird.f32 %v3171_v48 }
 0x255   :  { %1264 = vmatpush.msra.mxu0 %v3033_v38  ;;  %1304 = vmatpush.msra.mxu2 %v3035_v7 }
 0x256   :  { %1324 = vmatpush.msra.mxu3 %v3037_v42  ;;  %1285 = vmatpush.msra.mxu1 %v2964_v54  ;;  %v909_v54 = vand.u32 2147483647, %v3165_v49 }
 0x257   :  { %v2326_v12 = vpop.eup %2325  ;;  %1265 = vmatpush.msra.mxu0 %v3042_v15  ;;  %1305 = vmatpush.msra.mxu2 %v3044_v43 }
 0x258   :  { %v3187_v5 = vadd.f32 1.0, %v2326_v12  ;;  %1325 = vmatpush.msra.mxu3 %v3046_v44  ;;  %v911_v12 = vand.u32 2147483648, %v3165_v49  ;;  %1286 = vmatpush.msra.mxu1 %v2967_v59  ;;  %vm910_vm14 = vcmp.eq.f32.partialorder %v909_v54, 8.507059e+37 }
 0x259   :  { %v2328_v47 = vpop.eup %2327  ;;  %1266 = vmatpush.msra.mxu0 %v3051_v46  ;;  %1306 = vmatpush.msra.mxu2 %v3053_v22 }
 0x25a   :  { %v2330_v62 = vpop.eup %2329  ;;  %v901_v30 = vmul.f32 %v2328_v47, %v3165_v49  ;;  %2331 = vrcp.f32 %v3187_v5  ;;  %vm906_vm8 = vweird.f32 %v2328_v47  ;;  %1326 = vmatpush.msra.mxu3 %v3055_v24  ;;  %1287 = vmatpush.msra.mxu1 %v2970_v60  ;;  %v931_v49 = vor.u32 1.1754944e-38, %v930_v9 }
 0x25b   :  { %v920_v13 = vmul.f32 %v2330_v62, %v3171_v48  ;;  %2333 = vtanh.f32 %v894_v50  ;;  %1267 = vmatpush.msra.mxu0 %v3060_v32  ;;  %vm925_vm9 = vweird.f32 %v2330_v62  ;;  %1307 = vmatpush.msra.mxu2 %v3062_v37  ;;  %vm907_vm12 = vmor %vm905_vm10, %vm906_vm8  ;;  %vm944_vm1 = vweird.f32 %v3187_v5 }
 0x25c   :  { %v902_v19 = vsub.f32 1.0, %v901_v30  ;;  %1327 = vmatpush.msra.mxu3 %v3064_v40  ;;  %1288 = vmatpush.msra.mxu1 %v2973_v16  ;;  %vm926_vm13 = vmor %vm924_vm11, %vm925_vm9 }
 0x25d   :  { %v921_v53 = vsub.f32 1.0, %v920_v13  ;;  %v928_v13 = vand.u32 2147483647, %v3171_v48  ;;  %1268 = vmatpush.msra.mxu0 %v3069_v52  ;;  %1308 = vmatpush.msra.mxu2 %v3071_v8 }
 0x25e   :  { %v903_v15 = vmul.f32 %v2328_v47, %v902_v19  ;;  %v912_v19 = vor.u32 1.1754944e-38, %v911_v12  ;;  %1328 = vmatpush.msra.mxu3 %v3073_v26  ;;  %1289 = vmatpush.msra.mxu1 %v2976_v61 }
 0x25f   :  { %v922_v30 = vmul.f32 %v2330_v62, %v921_v53  ;;  %1269 = vmatpush.msra.mxu0 %v3078_v33  ;;  %vm929_vm15 = vcmp.eq.f32.partialorder %v928_v13, 8.507059e+37  ;;  %1309 = vmatpush.msra.mxu2 %v3080_v34  ;;  %v3773_v13 = vld [vmem:[#allocation28_spill] sm:$0xff] }
 0x260   :  { %v3213_v59 = vpop.eup %2331  ;;  %v904_v50 = vadd.f32 %v2328_v47, %v903_v15  ;;  %v955_v15 = vrot.slane %v3010_v28, 6  ;;  %1329 = vmatpush.msra.mxu3 %v3082_v41  ;;  %1290 = vmatpush.msra.mxu1 %v2979_v31  ;;  %v950_v31 = vand.u32 2147483648, %v3187_v5 }
 0x261   :  { %v923_v53 = vadd.f32 %v2330_v62, %v922_v30  ;;  %v940_v60 = vmul.f32 %v3213_v59, %v3187_v5  ;;  %v2334_v48 = vpop.eup %2333  ;;  %1270 = vmatpush.msra.mxu0 %v3087_v23  ;;  %1310 = vmatpush.msra.mxu2 %v3089_v63  ;;  %vm945_vm0 = vweird.f32 %v3213_v59 }
 0x262   :  { %v908_v40 = vsel %vm907_vm12, %v2328_v47, %v904_v50  ;;  %1330 = vmatpush.msra.mxu3 %v3091_v27  ;;  %1291 = vmatpush.msra.mxu1 %v2984_v6  ;;  %v948_v6 = vand.u32 2147483647, %v3187_v5  ;;  %vm946_vm2 = vmor %vm944_vm1, %vm945_vm0  ;;  %v951_v54 = vor.u32 1.1754944e-38, %v950_v31  ;;  %v3774_v50 = vld [vmem:[#allocation29_spill] sm:$0xff]  ;;  %v3775_v5 = vld [vmem:[#allocation30_spill] sm:$0xff] }
 0x263   :  { %v913_v12 = vsel %vm910_vm14, %v912_v19, %v908_v40  ;;  %v927_v30 = vsel %vm926_vm13, %v2330_v62, %v923_v53  ;;  %v941_v52 = vsub.f32 1.0, %v940_v60  ;;  %1271 = vmatpush.msra.mxu0 %v3098_v2  ;;  %1311 = vmatpush.msra.mxu2 %v3100_v36  ;;  %v3776_v19 = vld [vmem:[#allocation31_spill] sm:$0xff]  ;;  %v3777_v60 = vld [vmem:[#allocation32_spill] sm:$0xff] }
 0x264   :  { %v932_v16 = vsel %vm929_vm15, %v931_v49, %v927_v30  ;;  %v958_v28 = vmul.f32 %v2334_v48, %v913_v12  ;;  %1331 = vmatpush.msra.mxu3 %v3102_v11  ;;  %1292 = vmatpush.msra.mxu1 %v2987_v10  ;;  %v3772_v10 = vld [vmem:[#allocation27_spill] sm:$0xff]  ;;  %vm949_vm3 = vcmp.eq.f32.partialorder %v948_v6, 8.507059e+37  ;;  %v3779_v48 = vld [vmem:[#allocation21_spill] sm:$0xff]  ;;  %v3780_v12 = vld [vmem:[#allocation22_spill] sm:$0xff] }
 0x265   :  { %v957_v9 = vmul.f32 %v955_v15, %v932_v16  ;;  %v942_v47 = vmul.f32 %v3213_v59, %v941_v52  ;;  %1272 = vmatpush.msra.mxu0 %v3107_v18  ;;  %1312 = vmatpush.msra.mxu2 %v3109_v20  ;;  %v3771_v52 = vld [vmem:[#allocation26_spill] sm:$0xff]  ;;  %v3778_v15 = vld [vmem:[#allocation33_spill] sm:$0xff]  ;;  %v3781_v16 = vld [vmem:[#allocation23_spill] sm:$0xff] }
 0x266   :  { %1332 = vmatpush.msra.mxu3 %v3113_v51  ;;  %1293 = vmatpush.msra.mxu1 %v2990_v39 }
 0x267   :  { %v3237_v61 = vadd.f32 %v958_v28, %v957_v9  ;;  %v943_v62 = vadd.f32 %v3213_v59, %v942_v47  ;;  %1273 = vmatpush.msra.mxu0 %v3115_v21  ;;  %1313 = vmatpush.msra.mxu2 %v3117_v57 }
 0x268   :  { %1333 = vmatpush.msra.mxu3 %v3771_v52  ;;  %1294 = vmatpush.msra.mxu1 %v3773_v13 }
 0x269   :  { %2335 = vtanh.f32 %v3237_v61  ;;  %v947_v40 = vsel %vm946_vm2, %v3213_v59, %v943_v62  ;;  %1274 = vmatpush.msra.mxu0 %v3772_v10  ;;  %1314 = vmatpush.msra.mxu2 %v3774_v50 }
 0x26a   :  { %1334 = vmatpush.msra.mxu3 %v3775_v5  ;;  %v952_v39 = vsel %vm949_vm3, %v951_v54, %v947_v40  ;;  %1295 = vmatpush.msra.mxu1 %v3777_v60 }
 0x26b   :  { %1275 = vmatpush.msra.mxu0 %v3776_v19  ;;  %1315 = vmatpush.msra.mxu2 %v3778_v15 }
 0x26c   :  { %1335 = vmatpush.msra.mxu3 %v3143_v45  ;;  %1296 = vmatpush.msra.mxu1 %v3145_v58 }
 0x26d   :  { %1276 = vmatpush.msra.mxu0 %v3149_v4  ;;  %1316 = vmatpush.msra.mxu2 %v3151_v17 }
 0x26e   :  { %1336 = vmatpush.msra.mxu3 %v3155_v1  ;;  %1297 = vmatpush.msra.mxu1 %v3157_v0 }
 0x26f   :  { %v2336_v53 = vpop.eup %2335  ;;  %1277 = vmatpush.msra.mxu0 %v3161_v55  ;;  %1317 = vmatpush.msra.mxu2 %v3163_v56 }
 0x270   :  { %v961_v59 = vmul.f32 %v2336_v53, %v952_v39  ;;  %1337 = vmatpush.msra.mxu3 %v3169_v14 }
 0x272   :  { %963 = vst [vmem:[#allocation2] sm:$0x30] %v961_v59  ;;  %v1029_v49 = vrot.slane %v961_v59, 4 }
 0x274   :  { %1047 = vmatmul.f32.vlgmr.msrb.gmra.mxu0 %v1029_v49  ;;  %1067 = vmatmul.f32.vlgmr.msrb.gmra.mxu1 %v1029_v49 }
 0x275   :  { %1087 = vmatmul.f32.vlgmr.msrb.gmra.mxu2 %v1029_v49  ;;  %1107 = vmatmul.f32.vlgmr.msrb.gmra.mxu3 %v1029_v49 }
 0x276   :  { %1478 = vmatpush.msrb.mxu0 %v3015_v25  ;;  %1518 = vmatpush.msrb.mxu2 %v3017_v29  ;;  %v3782_v25 = vld [vmem:[#allocation24_spill] sm:$0xff]  ;;  %v3783_v29 = vld [vmem:[#allocation25_spill] sm:$0xff] }
 0x277   :  { %1538 = vmatpush.msrb.mxu3 %v3779_v48 }
 0x278   :  { %1479 = vmatpush.msrb.mxu0 %v3780_v12  ;;  %1519 = vmatpush.msrb.mxu2 %v3026_v3 }
 0x279   :  { %1539 = vmatpush.msrb.mxu3 %v3028_v35  ;;  %v2106_v30 = vld [vmem:[#allocation2 + $0x4] sm:$0x3] }
 0x27a   :  { %1480 = vmatpush.msrb.mxu0 %v3033_v38  ;;  %2144 = vst [vmem:[#allocation1 + $0x2] ss:$4 sm:$0xff] %v2106_v30  ;;  %1520 = vmatpush.msrb.mxu2 %v3035_v7 }
 0x27b   :  { %1540 = vmatpush.msrb.mxu3 %v3037_v42  ;;  %v3784_v42 = vld [vmem:[#allocation16_spill] sm:$0xff] }
 0x27c   :  { %1481 = vmatpush.msrb.mxu0 %v3781_v16  ;;  %1521 = vmatpush.msrb.mxu2 %v3044_v43 }
 0x27d   :  { %1541 = vmatpush.msrb.mxu3 %v3046_v44  ;;  %v3785_v44 = vld [vmem:[#allocation15_spill] sm:$0xff] }
 0x27e   :  { %1482 = vmatpush.msrb.mxu0 %v3051_v46  ;;  %1522 = vmatpush.msrb.mxu2 %v3053_v22 }
 0x27f   :  { %1542 = vmatpush.msrb.mxu3 %v3055_v24 }
 0x280   :  { %1483 = vmatpush.msrb.mxu0 %v3060_v32  ;;  %1523 = vmatpush.msrb.mxu2 %v3062_v37  ;;  %v3786_v32 = vld [vmem:[#allocation19_spill] sm:$0xff] }
 0x281   :  { %1543 = vmatpush.msrb.mxu3 %v3782_v25 }
 0x282   :  { %1484 = vmatpush.msrb.mxu0 %v3783_v29  ;;  %1524 = vmatpush.msrb.mxu2 %v3071_v8 }
 0x283   :  { %1544 = vmatpush.msrb.mxu3 %v3073_v26 }
 0x284   :  { %1485 = vmatpush.msrb.mxu0 %v3078_v33  ;;  %1525 = vmatpush.msrb.mxu2 %v3080_v34 }
 0x285   :  { %1545 = vmatpush.msrb.mxu3 %v3082_v41 }
 0x286   :  { %1486 = vmatpush.msrb.mxu0 %v3087_v23  ;;  %1526 = vmatpush.msrb.mxu2 %v3089_v63 }
 0x287   :  { %1546 = vmatpush.msrb.mxu3 %v3091_v27 }
 0x288   :  { %1487 = vmatpush.msrb.mxu0 %v3098_v2  ;;  %1527 = vmatpush.msrb.mxu2 %v3100_v36  ;;  %v3787_v2 = vld [vmem:[#allocation20_spill] sm:$0xff] }
 0x289   :  { %1547 = vmatpush.msrb.mxu3 %v3102_v11 }
 0x28a   :  { %1488 = vmatpush.msrb.mxu0 %v3107_v18  ;;  %1528 = vmatpush.msrb.mxu2 %v3109_v20 }
 0x28b   :  { %1548 = vmatpush.msrb.mxu3 %v3113_v51 }
 0x28c   :  { %1489 = vmatpush.msrb.mxu0 %v3115_v21  ;;  %1529 = vmatpush.msrb.mxu2 %v3117_v57 }
 0x28d   :  { %1549 = vmatpush.msrb.mxu3 %v3771_v52  ;;  %v1186_v52 = vrot.slane %v3237_v61, 6 }
 0x28e   :  { %1490 = vmatpush.msrb.mxu0 %v3772_v10  ;;  %1530 = vmatpush.msrb.mxu2 %v3774_v50 }
 0x28f   :  { %1550 = vmatpush.msrb.mxu3 %v3775_v5 }
 0x290   :  { %1491 = vmatpush.msrb.mxu0 %v3776_v19  ;;  %1531 = vmatpush.msrb.mxu2 %v3778_v15 }
 0x291   :  { %1551 = vmatpush.msrb.mxu3 %v3143_v45 }
 0x292   :  { %1492 = vmatpush.msrb.mxu0 %v3149_v4  ;;  %1532 = vmatpush.msrb.mxu2 %v3151_v17 }
 0x293   :  { %1552 = vmatpush.msrb.mxu3 %v3155_v1 }
 0x294   :  { %1493 = vmatpush.msrb.mxu0 %v3161_v55  ;;  %1533 = vmatpush.msrb.mxu2 %v3163_v56 }
 0x295   :  { %1553 = vmatpush.msrb.mxu3 %v3169_v14 }
 0x2f1   :  { %v1048_v3 = vpop.f32.mrf.mxu0  ;;  %v1068_v35 = vpop.f32.mrf.mxu1 }
 0x2f2   :  { %v1115_v38 = vrot.slane %v1048_v3, 2  ;;  %v1116_v7 = vrot.slane %v1068_v35, 2 }
 0x2f4   :  { %v1123_v43 = vadd.f32 %v1115_v38, %v3784_v42  ;;  %v1124_v46 = vadd.f32 %v1116_v7, %v3785_v44  ;;  %v3329_v42 = vld [vmem:[#allocation5 + $0x1e8] sm:$0xff] }
 0x2f5   :  { %1498 = vmatpush.msrb.mxu1 %v3329_v42  ;;  %v3335_v44 = vld [vmem:[#allocation5 + $0x1a8] sm:$0xff] }
 0x2f6   :  { %v2263_v22 = vmul.f32 -1.442695, %v1123_v43  ;;  %v2264_v4 = vmul.f32 -1.442695, %v1124_v46  ;;  %v3332_v43 = vld [vmem:[#allocation5 + $0x1c8] sm:$0xff] }
 0x2f7   :  { %1499 = vmatpush.msrb.mxu1 %v3332_v43  ;;  %v3338_v46 = vld [vmem:[#allocation5 + $0x188] sm:$0xff] }
 0x2f8   :  { %2337 = vpow2.f32 %v2263_v22  ;;  %v1108_v17 = vpop.f32.mrf.mxu3  ;;  %v1088_v34 = vpop.f32.mrf.mxu2  ;;  %v3341_v22 = vld [vmem:[#allocation5 + $0x168] sm:$0xff] }
 0x2f9   :  { %2339 = vpow2.f32 %v2264_v4  ;;  %v1118_v24 = vrot.slane %v1108_v17, 2  ;;  %v1117_v41 = vrot.slane %v1088_v34, 2  ;;  %1500 = vmatpush.msrb.mxu1 %v3335_v44  ;;  %v3344_v4 = vld [vmem:[#allocation5 + $0x148] sm:$0xff] }
 0x2fa   :  { %v3347_v17 = vld [vmem:[#allocation5 + $0x128] sm:$0xff] }
 0x2fb   :  { %v1126_v55 = vadd.f32 %v1118_v24, %v3786_v32  ;;  %v1125_v36 = vadd.f32 %v1117_v41, %v3787_v2  ;;  %1501 = vmatpush.msrb.mxu1 %v3338_v46  ;;  %v3350_v24 = vld [vmem:[#allocation5 + $0x108] sm:$0xff] }
 0x2fc   :  { %v3353_v32 = vld [vmem:[#allocation5 + $0xe8] sm:$0xff] }
 0x2fd   :  { %v2265_v37 = vmul.f32 -1.442695, %v1126_v55  ;;  %1502 = vmatpush.msrb.mxu1 %v3341_v22  ;;  %v3361_v41 = vld [vmem:[#allocation5 + $0xa8] sm:$0xff] }
 0x2fe   :  { %v2338_v56 = vpop.eup %2337 }
 0x2ff   :  { %v2340_v8 = vpop.eup %2339  ;;  %v1130_v26 = vadd.f32 1.0, %v2338_v56  ;;  %2341 = vpow2.f32 %v2265_v37  ;;  %1503 = vmatpush.msrb.mxu1 %v3344_v4  ;;  %v3356_v56 = vld [vmem:[#allocation5 + $0xc8] sm:$0xff] }
 0x300   :  { %v1149_v33 = vadd.f32 1.0, %v2340_v8  ;;  %v3788_v8 = vld [vmem:[#allocation14_spill] sm:$0xff] }
 0x301   :  { %2343 = vrcp.f32 %v1130_v26  ;;  %v1142_v57 = vand.u32 2147483648, %v1130_v26  ;;  %v1140_v14 = vand.u32 2147483647, %v1130_v26  ;;  %vm1136_vm6 = vweird.f32 %v1130_v26  ;;  %1504 = vmatpush.msrb.mxu1 %v3347_v17 }
 0x302   :  { %2345 = vrcp.f32 %v1149_v33  ;;  %v1161_v45 = vand.u32 2147483648, %v1149_v33  ;;  %v1159_v9 = vand.u32 2147483647, %v1149_v33  ;;  %vm1155_vm7 = vweird.f32 %v1149_v33 }
 0x303   :  { %v1143_v31 = vor.u32 1.1754944e-38, %v1142_v57  ;;  %vm1141_vm10 = vcmp.eq.f32.partialorder %v1140_v14, 8.507059e+37  ;;  %1505 = vmatpush.msrb.mxu1 %v3350_v24  ;;  %v3791_v14 = vld [vmem:[#allocation17_spill] sm:$0xff] }
 0x304   :  { %v1162_v10 = vor.u32 1.1754944e-38, %v1161_v45  ;;  %vm1160_vm11 = vcmp.eq.f32.partialorder %v1159_v9, 8.507059e+37 }
 0x305   :  { %v2342_v23 = vpop.eup %2341  ;;  %1506 = vmatpush.msrb.mxu1 %v3353_v32 }
 0x306   :  { %v1169_v63 = vadd.f32 1.0, %v2342_v23 }
 0x307   :  { %v2344_v27 = vpop.eup %2343  ;;  %1507 = vmatpush.msrb.mxu1 %v3356_v56 }
 0x308   :  { %v2346_v11 = vpop.eup %2345  ;;  %v1132_v18 = vmul.f32 %v2344_v27, %v1130_v26  ;;  %2347 = vrcp.f32 %v1169_v63  ;;  %vm1137_vm4 = vweird.f32 %v2344_v27  ;;  %v1181_v61 = vand.u32 2147483648, %v1169_v63 }
 0x309   :  { %v1151_v20 = vmul.f32 %v2346_v11, %v1149_v33  ;;  %2349 = vtanh.f32 %v1125_v36  ;;  %vm1156_vm5 = vweird.f32 %v2346_v11  ;;  %vm1138_vm8 = vmor %vm1136_vm6, %vm1137_vm4  ;;  %vm1175_vm13 = vweird.f32 %v1169_v63  ;;  %v3789_v33 = vld [vmem:[#allocation13_spill] sm:$0xff]  ;;  %1508 = vmatpush.msrb.mxu1 %v3361_v41  ;;  %v3790_v36 = vld [vmem:[#allocation18_spill] sm:$0xff] }
 0x30a   :  { %v1133_v51 = vsub.f32 1.0, %v1132_v18  ;;  %vm1157_vm9 = vmor %vm1155_vm7, %vm1156_vm5  ;;  %v1179_v30 = vand.u32 2147483647, %v1169_v63  ;;  %v1182_v25 = vor.u32 1.1754944e-38, %v1181_v61 }
 0x30b   :  { %v1152_v21 = vsub.f32 1.0, %v1151_v20 }
 0x30c   :  { %v1134_v1 = vmul.f32 %v2344_v27, %v1133_v51  ;;  %vm1180_vm15 = vcmp.eq.f32.partialorder %v1179_v30, 8.507059e+37 }
 0x30d   :  { %v1153_v28 = vmul.f32 %v2346_v11, %v1152_v21 }
 0x30e   :  { %v2348_v47 = vpop.eup %2347  ;;  %v1135_v62 = vadd.f32 %v2344_v27, %v1134_v1 }
 0x30f   :  { %v1154_v6 = vadd.f32 %v2346_v11, %v1153_v28  ;;  %v1171_v40 = vmul.f32 %v2348_v47, %v1169_v63  ;;  %v2350_v50 = vpop.eup %2349  ;;  %vm1176_vm12 = vweird.f32 %v2348_v47 }
 0x310   :  { %v1139_v54 = vsel %vm1138_vm8, %v2344_v27, %v1135_v62  ;;  %vm1177_vm14 = vmor %vm1175_vm13, %vm1176_vm12  ;;  %v3364_v27 = vld [vmem:[#allocation5 + $0x88] sm:$0xff] }
 0x311   :  { %v1144_v5 = vsel %vm1141_vm10, %v1143_v31, %v1139_v54  ;;  %v1158_v19 = vsel %vm1157_vm9, %v2346_v11, %v1154_v6  ;;  %v1172_v53 = vsub.f32 1.0, %v1171_v40  ;;  %1509 = vmatpush.msrb.mxu1 %v3364_v27 }
 0x312   :  { %v1163_v39 = vsel %vm1160_vm11, %v1162_v10, %v1158_v19  ;;  %v1189_v15 = vmul.f32 %v2350_v50, %v1144_v5 }
 0x313   :  { %v1188_v59 = vmul.f32 %v1186_v52, %v1163_v39  ;;  %v1173_v49 = vmul.f32 %v2348_v47, %v1172_v53  ;;  %1510 = vmatpush.msrb.mxu1 %v3773_v13 }
 0x315   :  { %v3326_v48 = vadd.f32 %v1189_v15, %v1188_v59  ;;  %v1174_v12 = vadd.f32 %v2348_v47, %v1173_v49  ;;  %1511 = vmatpush.msrb.mxu1 %v3777_v60 }
 0x317   :  { %2351 = vtanh.f32 %v3326_v48  ;;  %v1178_v16 = vsel %vm1177_vm14, %v2348_v47, %v1174_v12  ;;  %1512 = vmatpush.msrb.mxu1 %v3145_v58  ;;  %v1405_v49 = vrot.slane %v3326_v48, 6 }
 0x318   :  { %v1183_v3 = vsel %vm1180_vm15, %v1182_v25, %v1178_v16 }
 0x319   :  { %1513 = vmatpush.msrb.mxu1 %v3157_v0 }
 0x31d   :  { %v2352_v29 = vpop.eup %2351 }
 0x31e   :  { %v1192_v35 = vmul.f32 %v2352_v29, %v1183_v3 }
 0x320   :  { %1194 = vst [vmem:[#allocation2] sm:$0xc0] %v1192_v35  ;;  %v1260_v38 = vrot.slane %v1192_v35, 6 }
 0x322   :  { %1278 = vmatmul.f32.vlgmr.msra.gmra.mxu0 %v1260_v38  ;;  %1298 = vmatmul.f32.vlgmr.msra.gmra.mxu1 %v1260_v38 }
 0x323   :  { %1318 = vmatmul.f32.vlgmr.msra.gmra.mxu2 %v1260_v38  ;;  %1338 = vmatmul.f32.vlgmr.msra.gmra.mxu3 %v1260_v38 }
 0x324   :  { %1729 = vmatpush.msra.mxu1 %v3329_v42 }
 0x326   :  { %1730 = vmatpush.msra.mxu1 %v3332_v43 }
 0x327   :  { %v2107_v7 = vld [vmem:[#allocation2 + $0x6] sm:$0x3] }
 0x328   :  { %2146 = vst [vmem:[#allocation1 + $0x3] ss:$4 sm:$0xff] %v2107_v7  ;;  %1731 = vmatpush.msra.mxu1 %v3335_v44 }
 0x32a   :  { %1732 = vmatpush.msra.mxu1 %v3338_v46 }
 0x32c   :  { %1733 = vmatpush.msra.mxu1 %v3341_v22 }
 0x32e   :  { %1734 = vmatpush.msra.mxu1 %v3344_v4 }
 0x330   :  { %1735 = vmatpush.msra.mxu1 %v3347_v17 }
 0x332   :  { %1736 = vmatpush.msra.mxu1 %v3350_v24 }
 0x334   :  { %1737 = vmatpush.msra.mxu1 %v3353_v32 }
 0x336   :  { %1738 = vmatpush.msra.mxu1 %v3356_v56 }
 0x338   :  { %1739 = vmatpush.msra.mxu1 %v3361_v41 }
 0x33a   :  { %1740 = vmatpush.msra.mxu1 %v3364_v27 }
 0x39f   :  { %v1279_v55 = vpop.f32.mrf.mxu0  ;;  %v1299_v37 = vpop.f32.mrf.mxu1 }
 0x3a0   :  { %v1342_v26 = vadd.f32 %v1279_v55, %v3788_v8  ;;  %v1343_v34 = vadd.f32 %v1299_v37, %v3789_v33 }
 0x3a2   :  { %v2266_v23 = vmul.f32 -1.442695, %v1342_v26  ;;  %v2267_v63 = vmul.f32 -1.442695, %v1343_v34 }
 0x3a4   :  { %2353 = vpow2.f32 %v2266_v23 }
 0x3a5   :  { %2355 = vpow2.f32 %v2267_v63 }
 0x3a6   :  { %v1339_v2 = vpop.f32.mrf.mxu3  ;;  %v1319_v13 = vpop.f32.mrf.mxu2 }
 0x3a7   :  { %v1345_v11 = vadd.f32 %v1339_v2, %v3790_v36  ;;  %v1344_v58 = vadd.f32 %v1319_v13, %v3791_v14  ;;  %v3407_v13 = vld [vmem:[#allocation5 + $0x1a0] sm:$0xff] }
 0x3a9   :  { %v2268_v18 = vmul.f32 -1.442695, %v1345_v11  ;;  %v3389_v11 = vld [vmem:[#allocation5 + $0x1e0] sm:$0xff] }
 0x3aa   :  { %v2354_v20 = vpop.eup %2353  ;;  %1709 = vmatpush.msra.mxu0 %v3389_v11 }
 0x3ab   :  { %v2356_v51 = vpop.eup %2355  ;;  %v1349_v21 = vadd.f32 1.0, %v2354_v20  ;;  %2357 = vpow2.f32 %v2268_v18  ;;  %v3391_v18 = vld [vmem:[#allocation5 + $0x1f0] sm:$0xff]  ;;  %v3393_v20 = vld [vmem:[#allocation5 + $0x1f8] sm:$0xff] }
 0x3ac   :  { %v1368_v57 = vadd.f32 1.0, %v2356_v51  ;;  %1749 = vmatpush.msra.mxu2 %v3391_v18  ;;  %1769 = vmatpush.msra.mxu3 %v3393_v20  ;;  %v3398_v51 = vld [vmem:[#allocation5 + $0x1c0] sm:$0xff] }
 0x3ad   :  { %2359 = vrcp.f32 %v1349_v21  ;;  %v1361_v31 = vand.u32 2147483648, %v1349_v21  ;;  %v1359_v52 = vand.u32 2147483647, %v1349_v21  ;;  %vm1355_vm2 = vweird.f32 %v1349_v21  ;;  %1710 = vmatpush.msra.mxu0 %v3398_v51 }
 0x3ae   :  { %2361 = vrcp.f32 %v1368_v57  ;;  %v1380_v6 = vand.u32 2147483648, %v1368_v57  ;;  %v1378_v54 = vand.u32 2147483647, %v1368_v57  ;;  %vm1374_vm3 = vweird.f32 %v1368_v57 }
 0x3af   :  { %v1362_v19 = vor.u32 1.1754944e-38, %v1361_v31  ;;  %vm1360_vm6 = vcmp.eq.f32.partialorder %v1359_v52, 8.507059e+37  ;;  %1711 = vmatpush.msra.mxu0 %v3407_v13  ;;  %v3436_v31 = vld [vmem:[#allocation5 + $0x150] sm:$0xff] }
 0x3b0   :  { %v1381_v15 = vor.u32 1.1754944e-38, %v1380_v6  ;;  %vm1379_vm7 = vcmp.eq.f32.partialorder %v1378_v54, 8.507059e+37  ;;  %v3438_v6 = vld [vmem:[#allocation5 + $0x158] sm:$0xff]  ;;  %v3445_v52 = vld [vmem:[#allocation5 + $0x130] sm:$0xff]  ;;  %v3452_v54 = vld [vmem:[#allocation5 + $0x100] sm:$0xff] }
 0x3b1   :  { %v2358_v45 = vpop.eup %2357 }
 0x3b2   :  { %v1388_v60 = vadd.f32 1.0, %v2358_v45  ;;  %v3409_v45 = vld [vmem:[#allocation5 + $0x1b0] sm:$0xff] }
 0x3b3   :  { %v2360_v1 = vpop.eup %2359 }
 0x3b4   :  { %v2362_v28 = vpop.eup %2361  ;;  %v1351_v9 = vmul.f32 %v2360_v1, %v1349_v21  ;;  %2363 = vrcp.f32 %v1388_v60  ;;  %vm1356_vm0 = vweird.f32 %v2360_v1  ;;  %v1400_v48 = vand.u32 2147483648, %v1388_v60  ;;  %v3400_v21 = vld [vmem:[#allocation5 + $0x1d0] sm:$0xff] }
 0x3b5   :  { %v1370_v0 = vmul.f32 %v2362_v28, %v1368_v57  ;;  %2365 = vtanh.f32 %v1344_v58  ;;  %vm1375_vm1 = vweird.f32 %v2362_v28  ;;  %vm1357_vm4 = vmor %vm1355_vm2, %vm1356_vm0  ;;  %vm1394_vm9 = vweird.f32 %v1388_v60  ;;  %v3402_v57 = vld [vmem:[#allocation5 + $0x1d8] sm:$0xff]  ;;  %1750 = vmatpush.msra.mxu2 %v3400_v21  ;;  %v3418_v58 = vld [vmem:[#allocation5 + $0x190] sm:$0xff] }
 0x3b6   :  { %v1352_v47 = vsub.f32 1.0, %v1351_v9  ;;  %vm1376_vm5 = vmor %vm1374_vm3, %vm1375_vm1  ;;  %v1398_v55 = vand.u32 2147483647, %v1388_v60  ;;  %v1401_v26 = vor.u32 1.1754944e-38, %v1400_v48  ;;  %1770 = vmatpush.msra.mxu3 %v3402_v57  ;;  %v3425_v9 = vld [vmem:[#allocation5 + $0x160] sm:$0xff]  ;;  %v3483_v48 = vld [vmem:[#allocation5 + $0xb0] sm:$0xff] }
 0x3b7   :  { %v1371_v62 = vsub.f32 1.0, %v1370_v0  ;;  %1751 = vmatpush.msra.mxu2 %v3409_v45  ;;  %v3427_v0 = vld [vmem:[#allocation5 + $0x170] sm:$0xff] }
 0x3b8   :  { %v1353_v40 = vmul.f32 %v2360_v1, %v1352_v47  ;;  %vm1399_vm11 = vcmp.eq.f32.partialorder %v1398_v55, 8.507059e+37  ;;  %v3429_v47 = vld [vmem:[#allocation5 + $0x178] sm:$0xff] }
 0x3b9   :  { %v1372_v10 = vmul.f32 %v2362_v28, %v1371_v62  ;;  %1752 = vmatpush.msra.mxu2 %v3418_v58  ;;  %v3434_v62 = vld [vmem:[#allocation5 + $0x140] sm:$0xff]  ;;  %v3487_v55 = vld [vmem:[#allocation5 + $0xb8] sm:$0xff] }
 0x3ba   :  { %v2364_v50 = vpop.eup %2363  ;;  %v1354_v5 = vadd.f32 %v2360_v1, %v1353_v40  ;;  %v3443_v40 = vld [vmem:[#allocation5 + $0x120] sm:$0xff] }
 0x3bb   :  { %v1373_v53 = vadd.f32 %v2362_v28, %v1372_v10  ;;  %v1390_v39 = vmul.f32 %v2364_v50, %v1388_v60  ;;  %v2366_v12 = vpop.eup %2365  ;;  %vm1395_vm8 = vweird.f32 %v2364_v50  ;;  %v3411_v60 = vld [vmem:[#allocation5 + $0x1b8] sm:$0xff]  ;;  %1753 = vmatpush.msra.mxu2 %v3427_v0 }
 0x3bc   :  { %v1358_v59 = vsel %vm1357_vm4, %v2360_v1, %v1354_v5  ;;  %vm1396_vm10 = vmor %vm1394_vm9, %vm1395_vm8  ;;  %1771 = vmatpush.msra.mxu3 %v3411_v60  ;;  %v3416_v1 = vld [vmem:[#allocation5 + $0x180] sm:$0xff]  ;;  %v3447_v10 = vld [vmem:[#allocation5 + $0x138] sm:$0xff] }
 0x3bd   :  { %v1363_v61 = vsel %vm1360_vm6, %v1362_v19, %v1358_v59  ;;  %v1377_v30 = vsel %vm1376_vm5, %v2362_v28, %v1373_v53  ;;  %v1391_v16 = vsub.f32 1.0, %v1390_v39  ;;  %v3420_v28 = vld [vmem:[#allocation5 + $0x198] sm:$0xff]  ;;  %1712 = vmatpush.msra.mxu0 %v3416_v1  ;;  %1754 = vmatpush.msra.mxu2 %v3436_v31  ;;  %v3461_v59 = vld [vmem:[#allocation5 + $0xe0] sm:$0xff] }
 0x3be   :  { %v1382_v25 = vsel %vm1379_vm7, %v1381_v15, %v1377_v30  ;;  %v1408_v29 = vmul.f32 %v2366_v12, %v1363_v61  ;;  %1772 = vmatpush.msra.mxu3 %v3420_v28  ;;  %v3456_v5 = vld [vmem:[#allocation5 + $0x118] sm:$0xff] }
 0x3bf   :  { %v1407_v3 = vmul.f32 %v1405_v49, %v1382_v25  ;;  %v1392_v35 = vmul.f32 %v2364_v50, %v1391_v16  ;;  %1713 = vmatpush.msra.mxu0 %v3425_v9  ;;  %1755 = vmatpush.msra.mxu2 %v3445_v52  ;;  %v3463_v49 = vld [vmem:[#allocation5 + $0xf0] sm:$0xff]  ;;  %v3465_v12 = vld [vmem:[#allocation5 + $0xf8] sm:$0xff]  ;;  %v3472_v16 = vld [vmem:[#allocation5 + $0xc0] sm:$0xff] }
 0x3c0   :  { %1773 = vmatpush.msra.mxu3 %v3429_v47  ;;  %v3474_v25 = vld [vmem:[#allocation5 + $0xd0] sm:$0xff] }
 0x3c1   :  { %v3384_v38 = vadd.f32 %v1408_v29, %v1407_v3  ;;  %v1393_v7 = vadd.f32 %v2364_v50, %v1392_v35  ;;  %1714 = vmatpush.msra.mxu0 %v3434_v62  ;;  %v3476_v29 = vld [vmem:[#allocation5 + $0xd8] sm:$0xff] }
 0x3c2   :  { %1774 = vmatpush.msra.mxu3 %v3438_v6 }
 0x3c3   :  { %2367 = vtanh.f32 %v3384_v38  ;;  %v1397_v37 = vsel %vm1396_vm10, %v2364_v50, %v1393_v7  ;;  %1715 = vmatpush.msra.mxu0 %v3443_v40  ;;  %v3454_v50 = vld [vmem:[#allocation5 + $0x110] sm:$0xff]  ;;  %v3481_v7 = vld [vmem:[#allocation5 + $0xa0] sm:$0xff] }
 0x3c4   :  { %v1402_v23 = vsel %vm1399_vm11, %v1401_v26, %v1397_v37  ;;  %1775 = vmatpush.msra.mxu3 %v3447_v10  ;;  %1756 = vmatpush.msra.mxu2 %v3454_v50  ;;  %v3489_v37 = vld [vmem:[#allocation5 + $0x80] sm:$0xff]  ;;  %v3491_v26 = vld [vmem:[#allocation5 + $0x90] sm:$0xff] }
 0x3c5   :  { %1716 = vmatpush.msra.mxu0 %v3452_v54 }
 0x3c6   :  { %1776 = vmatpush.msra.mxu3 %v3456_v5  ;;  %1757 = vmatpush.msra.mxu2 %v3463_v49 }
 0x3c7   :  { %1717 = vmatpush.msra.mxu0 %v3461_v59 }
 0x3c8   :  { %1777 = vmatpush.msra.mxu3 %v3465_v12  ;;  %1758 = vmatpush.msra.mxu2 %v3474_v25 }
 0x3c9   :  { %v2368_v34 = vpop.eup %2367  ;;  %1718 = vmatpush.msra.mxu0 %v3472_v16 }
 0x3ca   :  { %v1411_v63 = vmul.f32 %v2368_v34, %v1402_v23  ;;  %1778 = vmatpush.msra.mxu3 %v3476_v29  ;;  %1759 = vmatpush.msra.mxu2 %v3483_v48  ;;  %v3494_v23 = vld [vmem:[#allocation5 + $0x98] sm:$0xff] }
 0x3cb   :  { %1719 = vmatpush.msra.mxu0 %v3481_v7  ;;  %3792 = vst [vmem:[#allocation26_spill] sm:$0xff] %v3494_v23 }
 0x3cc   :  { %1413 = vst [vmem:[#allocation2 + $0x8] sm:$0x3] %v1411_v63  ;;  %1494 = vmatmul.f32.vlgmr.msrb.gmra.mxu0 %v1411_v63  ;;  %1514 = vmatmul.f32.vlgmr.msrb.gmra.mxu1 %v1411_v63 }
 0x3cd   :  { %1534 = vmatmul.f32.vlgmr.msrb.gmra.mxu2 %v1411_v63  ;;  %1554 = vmatmul.f32.vlgmr.msrb.gmra.mxu3 %v1411_v63  ;;  %v3496_v63 = vld [vmem:[#allocation5 + $0x60] sm:$0xff] }
 0x3ce   :  { %1779 = vmatpush.msra.mxu3 %v3487_v55  ;;  %3793 = vst [vmem:[#allocation27_spill] sm:$0xff] %v3496_v63  ;;  %1720 = vmatpush.msra.mxu0 %v3489_v37 }
 0x3cf   :  { %1760 = vmatpush.msra.mxu2 %v3491_v26 }
 0x3d0   :  { %1780 = vmatpush.msra.mxu3 %v3494_v23  ;;  %1721 = vmatpush.msra.mxu0 %v3496_v63 }
 0x3d3   :  { %v2108_v2 = vld [vmem:[#allocation2 + $0x8] sm:$0x3] }
 0x3d4   :  { %2148 = vst [vmem:[#allocation1 + $0x20] ss:$4 sm:$0xff] %v2108_v2  ;;  %v3498_v2 = vld [vmem:[#allocation5 + $0x68] sm:$0xff] }
 0x3d5   :  { %3794 = vst [vmem:[#allocation28_spill] sm:$0xff] %v3498_v2  ;;  %1741 = vmatpush.msra.mxu1 %v3498_v2 }
 0x449   :  { %v1495_v19 = vpop.f32.mrf.mxu0  ;;  %v1515_v53 = vpop.f32.mrf.mxu1 }
 0x44a   :  { %v1562_v39 = vrot.slane %v1495_v19, 6  ;;  %v1563_v15 = vrot.slane %v1515_v53, 6  ;;  %v3502_v53 = vld [vmem:[#allocation5 + $0x70] sm:$0xff] }
 0x44b   :  { %3795 = vst [vmem:[#allocation29_spill] sm:$0xff] %v3502_v53  ;;  %1761 = vmatpush.msra.mxu2 %v3502_v53 }
 0x44c   :  { %v1570_v61 = vadd.f32 %v1562_v39, %v3788_v8  ;;  %v1571_v30 = vadd.f32 %v1563_v15, %v3789_v33  ;;  %v3504_v39 = vld [vmem:[#allocation5 + $0x78] sm:$0xff]  ;;  %v3508_v15 = vld [vmem:[#allocation5 + $0x40] sm:$0xff]  ;;  %v3525_v8 = vld [vmem:[#allocation5 + $0x30] sm:$0xff] }
 0x44d   :  { %3796 = vst [vmem:[#allocation30_spill] sm:$0xff] %v3504_v39  ;;  %1781 = vmatpush.msra.mxu3 %v3504_v39  ;;  %v3523_v33 = vld [vmem:[#allocation5 + $0x20] sm:$0xff]  ;;  %1722 = vmatpush.msra.mxu0 %v3508_v15 }
 0x44e   :  { %v2269_v3 = vmul.f32 -1.442695, %v1570_v61  ;;  %v2270_v35 = vmul.f32 -1.442695, %v1571_v30  ;;  %3797 = vst [vmem:[#allocation31_spill] sm:$0xff] %v3508_v15  ;;  %v3510_v61 = vld [vmem:[#allocation5 + $0x48] sm:$0xff] }
 0x44f   :  { %3798 = vst [vmem:[#allocation32_spill] sm:$0xff] %v3510_v61  ;;  %v3512_v30 = vld [vmem:[#allocation5 + $0x50] sm:$0xff]  ;;  %1742 = vmatpush.msra.mxu1 %v3510_v61  ;;  %v3535_v39 = vld [vmem:[#allocation5] sm:$0xff]  ;;  %1723 = vmatpush.msra.mxu0 %v3523_v33 }
 0x450   :  { %2369 = vpow2.f32 %v2269_v3  ;;  %v1555_v34 = vpop.f32.mrf.mxu3  ;;  %3799 = vst [vmem:[#allocation33_spill] sm:$0xff] %v3512_v30  ;;  %1762 = vmatpush.msra.mxu2 %v3512_v30  ;;  %v3537_v61 = vld [vmem:[#allocation5 + $0x10] sm:$0xff]  ;;  %v1535_v15 = vpop.f32.mrf.mxu2 }
 0x451   :  { %2371 = vpow2.f32 %v2270_v35  ;;  %v1565_v19 = vrot.slane %v1555_v34, 6  ;;  %v3517_v35 = vld [vmem:[#allocation5 + $0x58] sm:$0xff]  ;;  %v3519_v34 = vld [vmem:[#allocation5 + $0x28] sm:$0xff]  ;;  %1724 = vmatpush.msra.mxu0 %v3535_v39 }
 0x452   :  { %1782 = vmatpush.msra.mxu3 %v3517_v35  ;;  %1743 = vmatpush.msra.mxu1 %v3519_v34 }
 0x453   :  { %v1573_v3 = vadd.f32 %v1565_v19, %v3790_v36  ;;  %v3529_v19 = vld [vmem:[#allocation5 + $0x38] sm:$0xff]  ;;  %v3531_v36 = vld [vmem:[#allocation5 + $0x8] sm:$0xff]  ;;  %1763 = vmatpush.msra.mxu2 %v3525_v8  ;;  %1940 = vmatpush.msrb.mxu0 %v3389_v11 }
 0x454   :  { %1783 = vmatpush.msra.mxu3 %v3529_v19  ;;  %1744 = vmatpush.msra.mxu1 %v3531_v36 }
 0x455   :  { %v2271_v2 = vmul.f32 -1.442695, %v1573_v3  ;;  %v3543_v3 = vld [vmem:[#allocation5 + $0x18] sm:$0xff]  ;;  %1764 = vmatpush.msra.mxu2 %v3537_v61  ;;  %1941 = vmatpush.msrb.mxu0 %v3398_v51 }
 0x456   :  { %v2370_v53 = vpop.eup %2369  ;;  %1784 = vmatpush.msra.mxu3 %v3543_v3  ;;  %1960 = vmatpush.msrb.mxu1 %v3329_v42 }
 0x457   :  { %v2372_v23 = vpop.eup %2371  ;;  %v3539_v63 = vadd.f32 1.0, %v2370_v53  ;;  %2373 = vpow2.f32 %v2271_v2  ;;  %v1564_v2 = vrot.slane %v1535_v15, 6  ;;  %1980 = vmatpush.msrb.mxu2 %v3391_v18  ;;  %1942 = vmatpush.msrb.mxu0 %v3407_v13 }
 0x458   :  { %v3545_v30 = vadd.f32 1.0, %v2372_v23  ;;  %2000 = vmatpush.msrb.mxu3 %v3393_v20  ;;  %1961 = vmatpush.msrb.mxu1 %v3332_v43 }
 0x459   :  { %2375 = vrcp.f32 %v3539_v63  ;;  %1981 = vmatpush.msrb.mxu2 %v3400_v21  ;;  %v1572_v42 = vadd.f32 %v1564_v2, %v3791_v14  ;;  %1943 = vmatpush.msrb.mxu0 %v3416_v1  ;;  %v1589_v21 = vand.u32 2147483648, %v3539_v63  ;;  %vm1583_vm14 = vweird.f32 %v3539_v63  ;;  %v3809_v2 = vld [vmem:[#allocation13_spill] sm:$0xff] }
 0x45a   :  { %2377 = vrcp.f32 %v3545_v30  ;;  %2001 = vmatpush.msrb.mxu3 %v3402_v57  ;;  %1962 = vmatpush.msrb.mxu1 %v3335_v44  ;;  %v1608_v57 = vand.u32 2147483648, %v3545_v30  ;;  %vm1602_vm15 = vweird.f32 %v3545_v30 }
 0x45b   :  { %1982 = vmatpush.msrb.mxu2 %v3409_v45  ;;  %1944 = vmatpush.msrb.mxu0 %v3425_v9  ;;  %v1633_v9 = vrot.slane %v3384_v38, 6 }
 0x45c   :  { %2002 = vmatpush.msrb.mxu3 %v3411_v60  ;;  %1963 = vmatpush.msrb.mxu1 %v3338_v46  ;;  %v1587_v46 = vand.u32 2147483647, %v3539_v63  ;;  %v1606_v60 = vand.u32 2147483647, %v3545_v30 }
 0x45d   :  { %v2374_v23 = vpop.eup %2373  ;;  %1983 = vmatpush.msrb.mxu2 %v3418_v58  ;;  %1945 = vmatpush.msrb.mxu0 %v3434_v62  ;;  %v1590_v58 = vor.u32 1.1754944e-38, %v1589_v21  ;;  %v3810_v21 = vld [vmem:[#allocation18_spill] sm:$0xff] }
 0x45e   :  { %v3561_v53 = vadd.f32 1.0, %v2374_v23  ;;  %2003 = vmatpush.msrb.mxu3 %v3420_v28  ;;  %1964 = vmatpush.msrb.mxu1 %v3341_v22  ;;  %vm1588_vm2 = vcmp.eq.f32.partialorder %v1587_v46, 8.507059e+37  ;;  %vm1607_vm3 = vcmp.eq.f32.partialorder %v1606_v60, 8.507059e+37  ;;  %v2122_v23 = vld [vmem:[#allocation7 + $0x50] sm:$0xff]  ;;  %v2116_v60 = vld [vmem:[#allocation7 + $0x20] sm:$0xff] }
 0x45f   :  { %v2376_v11 = vpop.eup %2375  ;;  %1984 = vmatpush.msrb.mxu2 %v3427_v0  ;;  %1946 = vmatpush.msrb.mxu0 %v3443_v40  ;;  %v1609_v0 = vor.u32 1.1754944e-38, %v1608_v57 }
 0x460   :  { %v2378_v18 = vpop.eup %2377  ;;  %v1579_v20 = vmul.f32 %v2376_v11, %v3539_v63  ;;  %2379 = vrcp.f32 %v3561_v53  ;;  %vm1584_vm12 = vweird.f32 %v2376_v11  ;;  %2004 = vmatpush.msrb.mxu3 %v3429_v47  ;;  %1965 = vmatpush.msrb.mxu1 %v3344_v4  ;;  %vm1622_vm5 = vweird.f32 %v3561_v53  ;;  %v2125_v63 = vld [vmem:[#allocation7 + $0x68] sm:$0xff] }
 0x461   :  { %v1598_v43 = vmul.f32 %v2378_v18, %v3545_v30  ;;  %2381 = vtanh.f32 %v1572_v42  ;;  %vm1603_vm13 = vweird.f32 %v2378_v18  ;;  %1985 = vmatpush.msrb.mxu2 %v3436_v31  ;;  %vm1585_vm0 = vmor %vm1583_vm14, %vm1584_vm12  ;;  %1947 = vmatpush.msrb.mxu0 %v3452_v54  ;;  %v2121_v42 = vld [vmem:[#allocation7 + $0x48] sm:$0xff] }
 0x462   :  { %v1580_v51 = vsub.f32 1.0, %v1579_v20  ;;  %2005 = vmatpush.msrb.mxu3 %v3438_v6  ;;  %1966 = vmatpush.msrb.mxu1 %v3347_v17  ;;  %vm1604_vm1 = vmor %vm1602_vm15, %vm1603_vm13 }
 0x463   :  { %v1599_v44 = vsub.f32 1.0, %v1598_v43  ;;  %1986 = vmatpush.msrb.mxu2 %v3445_v52  ;;  %1948 = vmatpush.msrb.mxu0 %v3461_v59  ;;  %v2119_v43 = vld [vmem:[#allocation7 + $0x38] sm:$0xff] }
 0x464   :  { %v1581_v13 = vmul.f32 %v2376_v11, %v1580_v51  ;;  %2006 = vmatpush.msrb.mxu3 %v3447_v10  ;;  %1967 = vmatpush.msrb.mxu1 %v3350_v24 }
 0x465   :  { %v1600_v45 = vmul.f32 %v2378_v18, %v1599_v44  ;;  %1987 = vmatpush.msrb.mxu2 %v3454_v50  ;;  %1949 = vmatpush.msrb.mxu0 %v3472_v16  ;;  %v3804_v16 = vld [vmem:[#allocation31_spill] sm:$0xff] }
 0x466   :  { %v3587_v22 = vpop.eup %2379  ;;  %v1582_v1 = vadd.f32 %v2376_v11, %v1581_v13  ;;  %2007 = vmatpush.msrb.mxu3 %v3456_v5  ;;  %1968 = vmatpush.msrb.mxu1 %v3353_v32  ;;  %v1628_v32 = vand.u32 2147483648, %v3561_v53  ;;  %v3800_v5 = vld [vmem:[#allocation27_spill] sm:$0xff]  ;;  %v2117_v13 = vld [vmem:[#allocation7 + $0x28] sm:$0xff] }
 0x467   :  { %v1601_v28 = vadd.f32 %v2378_v18, %v1600_v45  ;;  %v1618_v4 = vmul.f32 %v3587_v22, %v3561_v53  ;;  %v2382_v62 = vpop.eup %2381  ;;  %1988 = vmatpush.msrb.mxu2 %v3463_v49  ;;  %vm1623_vm4 = vweird.f32 %v3587_v22  ;;  %1950 = vmatpush.msrb.mxu0 %v3481_v7  ;;  %v3802_v49 = vld [vmem:[#allocation28_spill] sm:$0xff]  ;;  %v2118_v44 = vld [vmem:[#allocation7 + $0x30] sm:$0xff] }
 0x468   :  { %v1586_v47 = vsel %vm1585_vm0, %v2376_v11, %v1582_v1  ;;  %2008 = vmatpush.msrb.mxu3 %v3465_v12  ;;  %1969 = vmatpush.msrb.mxu1 %v3356_v56  ;;  %v1626_v56 = vand.u32 2147483647, %v3561_v53  ;;  %vm1624_vm6 = vmor %vm1622_vm5, %vm1623_vm4  ;;  %v1629_v59 = vor.u32 1.1754944e-38, %v1628_v32  ;;  %v3803_v12 = vld [vmem:[#allocation29_spill] sm:$0xff]  ;;  %v3806_v7 = vld [vmem:[#allocation32_spill] sm:$0xff] }
 0x469   :  { %v1591_v31 = vsel %vm1588_vm2, %v1590_v58, %v1586_v47  ;;  %v1605_v6 = vsel %vm1604_vm1, %v2378_v18, %v1601_v28  ;;  %v1619_v40 = vsub.f32 1.0, %v1618_v4  ;;  %1989 = vmatpush.msrb.mxu2 %v3474_v25  ;;  %1951 = vmatpush.msrb.mxu0 %v3489_v37  ;;  %v3805_v25 = vld [vmem:[#allocation30_spill] sm:$0xff]  ;;  %v2120_v18 = vld [vmem:[#allocation7 + $0x40] sm:$0xff]  ;;  %v2197_v32 = vld [vmem:[#allocation8 + $0x78] sm:$0xff] }
 0x46a   :  { %v1610_v17 = vsel %vm1607_vm3, %v1609_v0, %v1605_v6  ;;  %v1636_v38 = vmul.f32 %v2382_v62, %v1591_v31  ;;  %2009 = vmatpush.msrb.mxu3 %v3476_v29  ;;  %1970 = vmatpush.msrb.mxu1 %v3361_v41  ;;  %v3801_v41 = vld [vmem:[#allocation26_spill] sm:$0xff]  ;;  %vm1627_vm7 = vcmp.eq.f32.partialorder %v1626_v56, 8.507059e+37  ;;  %v2114_v0 = vld [vmem:[#allocation7 + $0x10] sm:$0xff] }
 0x46b   :  { %v1635_v52 = vmul.f32 %v1633_v9, %v1610_v17  ;;  %v1620_v54 = vmul.f32 %v3587_v22, %v1619_v40  ;;  %1990 = vmatpush.msrb.mxu2 %v3483_v48  ;;  %1952 = vmatpush.msrb.mxu0 %v3800_v5  ;;  %v3807_v48 = vld [vmem:[#allocation33_spill] sm:$0xff]  ;;  %v2115_v9 = vld [vmem:[#allocation7 + $0x18] sm:$0xff]  ;;  %v2113_v62 = vld [vmem:[#allocation7 + $0x8] sm:$0xff] }
 0x46c   :  { %2010 = vmatpush.msrb.mxu3 %v3487_v55  ;;  %1971 = vmatpush.msrb.mxu1 %v3364_v27  ;;  %v2112_v17 = vld [vmem:[#allocation7] sm:$0xff]  ;;  %v2196_v56 = vld [vmem:[#allocation8 + $0x70] sm:$0xff] }
 0x46d   :  { %v3611_v24 = vadd.f32 %v1636_v38, %v1635_v52  ;;  %v1621_v10 = vadd.f32 %v3587_v22, %v1620_v54  ;;  %1991 = vmatpush.msrb.mxu2 %v3491_v26  ;;  %1953 = vmatpush.msrb.mxu0 %v3804_v16  ;;  %v2127_v26 = vld [vmem:[#allocation7 + $0x78] sm:$0xff] }
 0x46e   :  { %2011 = vmatpush.msrb.mxu3 %v3801_v41  ;;  %1972 = vmatpush.msrb.mxu1 %v3802_v49 }
 0x46f   :  { %2383 = vtanh.f32 %v3611_v24  ;;  %v1625_v50 = vsel %vm1624_vm6, %v3587_v22, %v1621_v10  ;;  %1992 = vmatpush.msrb.mxu2 %v3803_v12  ;;  %1954 = vmatpush.msrb.mxu0 %v3523_v33  ;;  %v2195_v12 = vld [vmem:[#allocation8 + $0x68] sm:$0xff] }
 0x470   :  { %2012 = vmatpush.msrb.mxu3 %v3805_v25  ;;  %v1630_v27 = vsel %vm1627_vm7, %v1629_v59, %v1625_v50  ;;  %1973 = vmatpush.msrb.mxu1 %v3806_v7  ;;  %v2194_v7 = vld [vmem:[#allocation8 + $0x60] sm:$0xff] }
 0x471   :  { %1993 = vmatpush.msrb.mxu2 %v3807_v48  ;;  %1955 = vmatpush.msrb.mxu0 %v3535_v39  ;;  %v2124_v39 = vld [vmem:[#allocation7 + $0x60] sm:$0xff] }
 0x472   :  { %2013 = vmatpush.msrb.mxu3 %v3517_v35  ;;  %1974 = vmatpush.msrb.mxu1 %v3519_v34  ;;  %v2123_v35 = vld [vmem:[#allocation7 + $0x58] sm:$0xff]  ;;  %v3808_v34 = vld [vmem:[#allocation14_spill] sm:$0xff] }
 0x473   :  { %1994 = vmatpush.msrb.mxu2 %v3525_v8  ;;  %v2126_v8 = vld [vmem:[#allocation7 + $0x70] sm:$0xff] }
 0x474   :  { %2014 = vmatpush.msrb.mxu3 %v3529_v19  ;;  %1975 = vmatpush.msrb.mxu1 %v3531_v36 }
 0x475   :  { %v2384_v29 = vpop.eup %2383  ;;  %1995 = vmatpush.msrb.mxu2 %v3537_v61 }
 0x476   :  { %v1639_v55 = vmul.f32 %v2384_v29, %v1630_v27  ;;  %2015 = vmatpush.msrb.mxu3 %v3543_v3 }
 0x478   :  { %1641 = vst [vmem:[#allocation2 + $0x8] sm:$0xc] %v1639_v55  ;;  %v1707_v37 = vrot.slane %v1639_v55, 2 }
 0x47a   :  { %1725 = vmatmul.f32.vlgmr.msra.gmra.mxu0 %v1707_v37  ;;  %1745 = vmatmul.f32.vlgmr.msra.gmra.mxu1 %v1707_v37 }
 0x47b   :  { %1765 = vmatmul.f32.vlgmr.msra.gmra.mxu2 %v1707_v37  ;;  %1785 = vmatmul.f32.vlgmr.msra.gmra.mxu3 %v1707_v37 }
 0x47c   :  { %2159 = vmatpush.msra.mxu0 %v2127_v26  ;;  %2202 = vmatpush.msra.mxu1 %v2197_v32 }
 0x47e   :  { %2160 = vmatpush.msra.mxu0 %v2126_v8  ;;  %2203 = vmatpush.msra.mxu1 %v2196_v56 }
 0x47f   :  { %v2109_v33 = vld [vmem:[#allocation2 + $0xa] sm:$0x3] }
 0x480   :  { %2150 = vst [vmem:[#allocation1 + $0x21] ss:$4 sm:$0xff] %v2109_v33  ;;  %2161 = vmatpush.msra.mxu0 %v2125_v63  ;;  %2204 = vmatpush.msra.mxu1 %v2195_v12  ;;  %v1864_v33 = vrot.slane %v3611_v24, 6  ;;  %v2193_v63 = vld [vmem:[#allocation8 + $0x58] sm:$0xff] }
 0x482   :  { %2162 = vmatpush.msra.mxu0 %v2124_v39  ;;  %2205 = vmatpush.msra.mxu1 %v2194_v7 }
 0x484   :  { %2163 = vmatpush.msra.mxu0 %v2123_v35  ;;  %2206 = vmatpush.msra.mxu1 %v2193_v63 }
 0x486   :  { %2164 = vmatpush.msra.mxu0 %v2122_v23 }
 0x488   :  { %2165 = vmatpush.msra.mxu0 %v2121_v42  ;;  %v2190_v42 = vld [vmem:[#allocation8 + $0x40] sm:$0xff] }
 0x48a   :  { %2166 = vmatpush.msra.mxu0 %v2120_v18 }
 0x48c   :  { %2167 = vmatpush.msra.mxu0 %v2119_v43  ;;  %v2189_v43 = vld [vmem:[#allocation8 + $0x38] sm:$0xff] }
 0x48e   :  { %2168 = vmatpush.msra.mxu0 %v2118_v44  ;;  %v2188_v44 = vld [vmem:[#allocation8 + $0x30] sm:$0xff] }
 0x490   :  { %2169 = vmatpush.msra.mxu0 %v2117_v13 }
 0x492   :  { %2170 = vmatpush.msra.mxu0 %v2116_v60 }
 0x494   :  { %2171 = vmatpush.msra.mxu0 %v2115_v9  ;;  %v2184_v9 = vld [vmem:[#allocation8 + $0x10] sm:$0xff] }
 0x496   :  { %2172 = vmatpush.msra.mxu0 %v2114_v0  ;;  %v2183_v0 = vld [vmem:[#allocation8 + $0x8] sm:$0xff] }
 0x498   :  { %2173 = vmatpush.msra.mxu0 %v2113_v62 }
 0x49a   :  { %2174 = vmatpush.msra.mxu0 %v2112_v17 }
 0x4f7   :  { %v1726_v15 = vpop.f32.mrf.mxu0  ;;  %v1746_v30 = vpop.f32.mrf.mxu1 }
 0x4f8   :  { %v1793_v36 = vrot.slane %v1726_v15, 4  ;;  %v1794_v61 = vrot.slane %v1746_v30, 4 }
 0x4fa   :  { %v1801_v19 = vadd.f32 %v1793_v36, %v3808_v34  ;;  %v1802_v3 = vadd.f32 %v1794_v61, %v3809_v2 }
 0x4fc   :  { %v2272_v53 = vmul.f32 -1.442695, %v1801_v19  ;;  %v2273_v11 = vmul.f32 -1.442695, %v1802_v3  ;;  %v2192_v19 = vld [vmem:[#allocation8 + $0x50] sm:$0xff] }
 0x4fd   :  { %2207 = vmatpush.msra.mxu1 %v2192_v19 }
 0x4fe   :  { %2385 = vpow2.f32 %v2272_v53  ;;  %v1786_v20 = vpop.f32.mrf.mxu3  ;;  %v1766_v28 = vpop.f32.mrf.mxu2  ;;  %v2191_v53 = vld [vmem:[#allocation8 + $0x48] sm:$0xff] }
 0x4ff   :  { %2387 = vpow2.f32 %v2273_v11  ;;  %v1796_v51 = vrot.slane %v1786_v20, 4  ;;  %v1795_v4 = vrot.slane %v1766_v28, 4  ;;  %2208 = vmatpush.msra.mxu1 %v2191_v53  ;;  %v2186_v28 = vld [vmem:[#allocation8 + $0x20] sm:$0xff] }
 0x501   :  { %v1804_v57 = vadd.f32 %v1796_v51, %v3810_v21  ;;  %v1803_v40 = vadd.f32 %v1795_v4, %v3791_v14  ;;  %2209 = vmatpush.msra.mxu1 %v2190_v42  ;;  %v2185_v4 = vld [vmem:[#allocation8 + $0x18] sm:$0xff] }
 0x503   :  { %v2274_v46 = vmul.f32 -1.442695, %v1804_v57  ;;  %2210 = vmatpush.msra.mxu1 %v2189_v43 }
 0x504   :  { %v2386_v45 = vpop.eup %2385 }
 0x505   :  { %v2388_v22 = vpop.eup %2387  ;;  %v1808_v1 = vadd.f32 1.0, %v2386_v45  ;;  %2389 = vpow2.f32 %v2274_v46  ;;  %2211 = vmatpush.msra.mxu1 %v2188_v44 }
 0x506   :  { %v1827_v58 = vadd.f32 1.0, %v2388_v22 }
 0x507   :  { %2391 = vrcp.f32 %v1808_v1  ;;  %v1820_v5 = vand.u32 2147483648, %v1808_v1  ;;  %v1818_v49 = vand.u32 2147483647, %v1808_v1  ;;  %vm1814_vm10 = vweird.f32 %v1808_v1 }
 0x508   :  { %2393 = vrcp.f32 %v1827_v58  ;;  %v1839_v41 = vand.u32 2147483648, %v1827_v58  ;;  %v1837_v25 = vand.u32 2147483647, %v1827_v58  ;;  %vm1833_vm11 = vweird.f32 %v1827_v58 }
 0x509   :  { %v1821_v48 = vor.u32 1.1754944e-38, %v1820_v5  ;;  %vm1819_vm14 = vcmp.eq.f32.partialorder %v1818_v49, 8.507059e+37 }
 0x50a   :  { %v1840_v26 = vor.u32 1.1754944e-38, %v1839_v41  ;;  %vm1838_vm15 = vcmp.eq.f32.partialorder %v1837_v25, 8.507059e+37 }
 0x50b   :  { %v2390_v47 = vpop.eup %2389 }
 0x50c   :  { %v3650_v31 = vadd.f32 1.0, %v2390_v47  ;;  %v2182_v47 = vld [vmem:[#allocation8] sm:$0xff] }
 0x50d   :  { %v2392_v6 = vpop.eup %2391 }
 0x50e   :  { %v2394_v38 = vpop.eup %2393  ;;  %v1810_v52 = vmul.f32 %v2392_v6, %v1808_v1  ;;  %2395 = vrcp.f32 %v3650_v31  ;;  %vm1815_vm8 = vweird.f32 %v2392_v6  ;;  %v1859_v18 = vand.u32 2147483648, %v3650_v31  ;;  %v2155_v1 = vld.sshfl [vmem:[#allocation1] sm:$0xff pattern:$0x73625140] }
 0x50f   :  { %v1829_v54 = vmul.f32 %v2394_v38, %v1827_v58  ;;  %2397 = vtanh.f32 %v1803_v40  ;;  %vm1834_vm9 = vweird.f32 %v2394_v38  ;;  %vm1816_vm12 = vmor %vm1814_vm10, %vm1815_vm8  ;;  %vm1853_vm1 = vweird.f32 %v3650_v31  ;;  %v2187_v58 = vld [vmem:[#allocation8 + $0x28] sm:$0xff] }
 0x510   :  { %v1811_v10 = vsub.f32 1.0, %v1810_v52  ;;  %vm1835_vm13 = vmor %vm1833_vm11, %vm1834_vm9  ;;  %v1857_v20 = vand.u32 2147483647, %v3650_v31  ;;  %v1860_v57 = vor.u32 1.1754944e-38, %v1859_v18  ;;  %2212 = vmatpush.msra.mxu1 %v2187_v58 }
 0x511   :  { %v1830_v50 = vsub.f32 1.0, %v1829_v54 }
 0x512   :  { %v1812_v59 = vmul.f32 %v2392_v6, %v1811_v10  ;;  %vm1858_vm3 = vcmp.eq.f32.partialorder %v1857_v20, 8.507059e+37  ;;  %2213 = vmatpush.msra.mxu1 %v2186_v28  ;;  %v3667_v10 = vld [vmem:[%s3706_s5] ss:$0 sm:$0xff] }
 0x513   :  { %v1831_v16 = vmul.f32 %v2394_v38, %v1830_v50 }
 0x514   :  { %v2396_v29 = vpop.eup %2395  ;;  %v1813_v27 = vadd.f32 %v2392_v6, %v1812_v59  ;;  %2214 = vmatpush.msra.mxu1 %v2185_v4 }
 0x515   :  { %v1832_v55 = vadd.f32 %v2394_v38, %v1831_v16  ;;  %v1849_v37 = vmul.f32 %v2396_v29, %v3650_v31  ;;  %v2398_v39 = vpop.eup %2397  ;;  %vm1854_vm0 = vweird.f32 %v2396_v29 }
 0x516   :  { %v1817_v8 = vsel %vm1816_vm12, %v2392_v6, %v1813_v27  ;;  %vm1855_vm2 = vmor %vm1853_vm1, %vm1854_vm0  ;;  %2215 = vmatpush.msra.mxu1 %v2184_v9 }
 0x517   :  { %v1822_v15 = vsel %vm1819_vm14, %v1821_v48, %v1817_v8  ;;  %v1836_v30 = vsel %vm1835_vm13, %v2394_v38, %v1832_v55  ;;  %v1850_v36 = vsub.f32 1.0, %v1849_v37 }
 0x518   :  { %v1841_v61 = vsel %vm1838_vm15, %v1840_v26, %v1836_v30  ;;  %v1867_v35 = vmul.f32 %v2398_v39, %v1822_v15  ;;  %2216 = vmatpush.msra.mxu1 %v2183_v0 }
 0x519   :  { %v1866_v3 = vmul.f32 %v1864_v33, %v1841_v61  ;;  %v1851_v23 = vmul.f32 %v2396_v29, %v1850_v36 }
 0x51a   :  { %2217 = vmatpush.msra.mxu1 %v2182_v47  ;;  %v2288_v47 = vld [vmem:[%s3708_s7] ss:$0 sm:$0xff] }
 0x51b   :  { %v3656_v11 = vadd.f32 %v1867_v35, %v1866_v3  ;;  %v1852_v24 = vadd.f32 %v2396_v29, %v1851_v23 }
 0x51d   :  { %2399 = vtanh.f32 %v3656_v11  ;;  %v1856_v51 = vsel %vm1855_vm2, %v2396_v29, %v1852_v24  ;;  %v2095_v23 = vrot.slane %v3656_v11, 6 }
 0x51e   :  { %v1861_v46 = vsel %vm1858_vm3, %v1860_v57, %v1856_v51 }
 0x523   :  { %v2400_v13 = vpop.eup %2399 }
 0x524   :  { %v1870_v45 = vmul.f32 %v2400_v13, %v1861_v46 }
 0x526   :  { %1872 = vst [vmem:[#allocation2 + $0x8] sm:$0x30] %v1870_v45  ;;  %v1938_v60 = vrot.slane %v1870_v45, 4 }
 0x528   :  { %1956 = vmatmul.f32.vlgmr.msrb.gmra.mxu0 %v1938_v60  ;;  %1976 = vmatmul.f32.vlgmr.msrb.gmra.mxu1 %v1938_v60 }
 0x529   :  { %1996 = vmatmul.f32.vlgmr.msrb.gmra.mxu2 %v1938_v60  ;;  %2016 = vmatmul.f32.vlgmr.msrb.gmra.mxu3 %v1938_v60 }
 0x52d   :  { %v2110_v22 = vld [vmem:[#allocation2 + $0xc] sm:$0x3] }
 0x52e   :  { %2152 = vst [vmem:[#allocation1 + $0x22] ss:$4 sm:$0xff] %v2110_v22 }
 0x530   :  { %2175 = vmatmul.f32.vlgmr.msra.gmra.mxu0 %v2155_v1 }
 0x5a5   :  { %v1957_v62 = vpop.f32.mrf.mxu0  ;;  %v1977_v31 = vpop.f32.mrf.mxu1 }
 0x5a6   :  { %v2024_v6 = vrot.slane %v1957_v62, 2  ;;  %v2025_v40 = vrot.slane %v1977_v31, 2 }
 0x5a8   :  { %v2032_v17 = vadd.f32 %v2024_v6, %v3808_v34  ;;  %v2033_v38 = vadd.f32 %v2025_v40, %v3809_v2 }
 0x5aa   :  { %v2275_v52 = vmul.f32 -1.442695, %v2032_v17  ;;  %v2276_v54 = vmul.f32 -1.442695, %v2033_v38 }
 0x5ac   :  { %2401 = vpow2.f32 %v2275_v52  ;;  %v2017_v32 = vpop.f32.mrf.mxu3  ;;  %v1997_v16 = vpop.f32.mrf.mxu2 }
 0x5ad   :  { %2403 = vpow2.f32 %v2276_v54  ;;  %v2027_v56 = vrot.slane %v2017_v32, 2  ;;  %v2176_v50 = vpop.f32.mrf.mxu0  ;;  %v2026_v25 = vrot.slane %v1997_v16, 2 }
 0x5ae   :  { %v2177_v5 = vadd.f32 %v3667_v10, %v2176_v50 }
 0x5af   :  { %v2035_v41 = vadd.f32 %v2027_v56, %v3810_v21  ;;  %v2034_v48 = vadd.f32 %v2026_v25, %v3791_v14 }
 0x5b0   :  { %2218 = vmatmul.f32.vlgmr.msra.gmra.mxu1 %v2177_v5 }
 0x5b1   :  { %v2277_v34 = vmul.f32 -1.442695, %v2035_v41 }
 0x5b2   :  { %v2402_v59 = vpop.eup %2401 }
 0x5b3   :  { %v2404_v2 = vpop.eup %2403  ;;  %v2039_v49 = vadd.f32 1.0, %v2402_v59  ;;  %2405 = vpow2.f32 %v2277_v34 }
 0x5b4   :  { %v2058_v12 = vadd.f32 1.0, %v2404_v2 }
 0x5b5   :  { %2407 = vrcp.f32 %v2039_v49  ;;  %v2051_v8 = vand.u32 2147483648, %v2039_v49  ;;  %v2049_v15 = vand.u32 2147483647, %v2039_v49  ;;  %vm2045_vm6 = vweird.f32 %v2039_v49 }
 0x5b6   :  { %2409 = vrcp.f32 %v2058_v12  ;;  %v2070_v63 = vand.u32 2147483648, %v2058_v12  ;;  %v2068_v36 = vand.u32 2147483647, %v2058_v12  ;;  %vm2064_vm7 = vweird.f32 %v2058_v12 }
 0x5b7   :  { %v2052_v14 = vor.u32 1.1754944e-38, %v2051_v8  ;;  %vm2050_vm9 = vcmp.eq.f32.partialorder %v2049_v15, 8.507059e+37 }
 0x5b8   :  { %v2071_v53 = vor.u32 1.1754944e-38, %v2070_v63  ;;  %vm2069_vm11 = vcmp.eq.f32.partialorder %v2068_v36, 8.507059e+37 }
 0x5b9   :  { %v2406_v29 = vpop.eup %2405 }
 0x5ba   :  { %v2078_v27 = vadd.f32 1.0, %v2406_v29 }
 0x5bb   :  { %v2408_v7 = vpop.eup %2407 }
 0x5bc   :  { %v2410_v55 = vpop.eup %2409  ;;  %v2041_v37 = vmul.f32 %v2408_v7, %v2039_v49  ;;  %2411 = vrcp.f32 %v2078_v27  ;;  %vm2046_vm4 = vweird.f32 %v2408_v7  ;;  %v2090_v60 = vand.u32 2147483648, %v2078_v27 }
 0x5bd   :  { %v2060_v21 = vmul.f32 %v2410_v55, %v2058_v12  ;;  %2413 = vtanh.f32 %v2034_v48  ;;  %vm2065_vm5 = vweird.f32 %v2410_v55  ;;  %vm2047_vm8 = vmor %vm2045_vm6, %vm2046_vm4  ;;  %vm2084_vm13 = vweird.f32 %v2078_v27 }
 0x5be   :  { %v2042_v33 = vsub.f32 1.0, %v2041_v37  ;;  %vm2066_vm10 = vmor %vm2064_vm7, %vm2065_vm5  ;;  %v2088_v11 = vand.u32 2147483647, %v2078_v27  ;;  %v2091_v1 = vor.u32 1.1754944e-38, %v2090_v60 }
 0x5bf   :  { %v2061_v26 = vsub.f32 1.0, %v2060_v21 }
 0x5c0   :  { %v2043_v39 = vmul.f32 %v2408_v7, %v2042_v33  ;;  %vm2089_vm15 = vcmp.eq.f32.partialorder %v2088_v11, 8.507059e+37 }
 0x5c1   :  { %v2062_v30 = vmul.f32 %v2410_v55, %v2061_v26 }
 0x5c2   :  { %v2412_v61 = vpop.eup %2411  ;;  %v2044_v35 = vadd.f32 %v2408_v7, %v2043_v39 }
 0x5c3   :  { %v2063_v19 = vadd.f32 %v2410_v55, %v2062_v30  ;;  %v2080_v3 = vmul.f32 %v2412_v61, %v2078_v27  ;;  %v2414_v42 = vpop.eup %2413  ;;  %vm2085_vm12 = vweird.f32 %v2412_v61 }
 0x5c4   :  { %v2048_v24 = vsel %vm2047_vm8, %v2408_v7, %v2044_v35  ;;  %vm2086_vm14 = vmor %vm2084_vm13, %vm2085_vm12 }
 0x5c5   :  { %v2053_v18 = vsel %vm2050_vm9, %v2052_v14, %v2048_v24  ;;  %v2067_v20 = vsel %vm2066_vm10, %v2410_v55, %v2063_v19  ;;  %v2081_v43 = vsub.f32 1.0, %v2080_v3 }
 0x5c6   :  { %v2072_v51 = vsel %vm2069_vm11, %v2071_v53, %v2067_v20  ;;  %v2098_v44 = vmul.f32 %v2414_v42, %v2053_v18 }
 0x5c7   :  { %v2097_v57 = vmul.f32 %v2095_v23, %v2072_v51  ;;  %v2082_v13 = vmul.f32 %v2412_v61, %v2081_v43 }
 0x5c9   :  { %v2099_v46 = vadd.f32 %v2098_v44, %v2097_v57  ;;  %v2083_v45 = vadd.f32 %v2412_v61, %v2082_v13 }
 0x5cb   :  { %2415 = vtanh.f32 %v2099_v46  ;;  %v2087_v22 = vsel %vm2086_vm14, %v2412_v61, %v2083_v45 }
 0x5cc   :  { %v2092_v28 = vsel %vm2089_vm15, %v2091_v1, %v2087_v22 }
 0x5d1   :  { %v2416_v58 = vpop.eup %2415 }
 0x5d2   :  { %v2101_v4 = vmul.f32 %v2416_v58, %v2092_v28 }
 0x5d4   :  { %2103 = vst [vmem:[#allocation2 + $0x8] sm:$0xc0] %v2101_v4 }
 0x5db   :  { %v2111_v9 = vld [vmem:[#allocation2 + $0xe] sm:$0x3] }
 0x5dc   :  { %2154 = vst [vmem:[#allocation1 + $0x23] ss:$4 sm:$0xff] %v2111_v9 }
 0x5e3   :  { %v2156_v0 = vld.sshfl [vmem:[#allocation1 + $0x20] sm:$0xff pattern:$0x73625140] }
 0x5e4   :  { %2178 = vmatmul.f32.gmra.mxu0 %v2156_v0 }
 0x62d   :  { %v2219_v62 = vpop.f32.mrf.mxu1 }
 0x62e   :  { %v2220_v31 = vadd.f32 %v2288_v47, %v2219_v62 }
 0x630   :  { %v2227_v6 = vrot.slane %v2220_v31, 2  ;;  %v2228_v40 = vrot.slane %v2220_v31, 4  ;;  %v2229_v17 = vrot.slane %v2220_v31, 6  ;;  %2239 = vst [vmem:[%s3709_s8] sm:$0x3] %v2220_v31 }
 0x632   :  { %2240 = vst [vmem:[%s3709_s8 + $0x2] sm:$0x3] %v2227_v6 }
 0x633   :  { %2241 = vst [vmem:[%s3709_s8 + $0x4] sm:$0x3] %v2228_v40 }
 0x634   :  { %2242 = vst [vmem:[%s3709_s8 + $0x6] sm:$0x3] %v2229_v17 }
 0x661   :  { %v2179_v38 = vpop.f32.mrf.mxu0 }
 0x662   :  { %v2180_v52 = vadd.f32 %v3667_v10, %v2179_v38 }
 0x664   :  { %2221 = vmatmul.f32.gmra.mxu1 %v2180_v52 }
 0x6e1   :  { %v2222_v54 = vpop.f32.mrf.mxu1 }
 0x6e2   :  { %v2223_v32 = vadd.f32 %v2288_v47, %v2222_v54 }
 0x6e4   :  { %v2230_v56 = vrot.slane %v2223_v32, 2  ;;  %v2231_v50 = vrot.slane %v2223_v32, 4  ;;  %v2232_v5 = vrot.slane %v2223_v32, 6  ;;  %2243 = vst [vmem:[%s3709_s8 + $0x8] sm:$0x3] %v2223_v32 }
 0x6e6   :  { %2244 = vst [vmem:[%s3709_s8 + $0xa] sm:$0x3] %v2230_v56 }
 0x6e7   :  { %2245 = vst [vmem:[%s3709_s8 + $0xc] sm:$0x3] %v2231_v50 }
 0x6e8   :  { %2246 = vst [vmem:[%s3709_s8 + $0xe] sm:$0x3] %v2232_v5 }
 0x6e9   :  { %2251 = vsyncpa [#allocation4], 1 }
 0x6ea   :  { %2252 = vsyncpa [#allocation6], 1 }
 0x6eb   :  { %2253 = vsyncpa [#allocation9], 1 }

</bundles_post_ra>
